<compile_context>
chip_gen: v6e
topology: v6e:2x2x1
jax: 0.10.0
libtpu: 0.0.40
codegen_flags: <defaults>
</compile_context>

<pallas_src>
import jax
import jax.numpy as jnp
import numpy as np
from jax import lax
from jax.experimental import pallas as pl
from jax.experimental.pallas import tpu as pltpu

# ---- problem sizes (small, consistent with the module's forward) ----
B = 8                  # batch size
TWO_B = 2 * B          # both SimCLR views stacked
C = 4                  # input channels
H = W = 16             # spatial
KH = KW = 3            # conv kernel
FEATURE_DIM = 32       # encoder output dim (torch default 2048, scaled down)
PROJECT_DIM = 16       # projector hidden == output dim  (MLP(feat, proj, proj))
TEMPERATURE = 0.5

WC2 = (W + 2) * C          # 72   width of one 'same'-padded input row (j2, c)
WF = W * FEATURE_DIM       # 512  wide conv-output row: (j, f) for all 16 columns
MROWS = TWO_B * H          # 256  matmul rows = (image, output-row) pairs
B1_ROW = 48                # row of b1 inside the packed projector params
B2_ROW = 56                # row of b2


# --------------------------------------------------------------------------
# Fused kernel: conv (3 banded matmuls, accumulated over the grid) +
# bias/ReLU/GAP + projector MLP + normalize + SimCLR loss (finalize step)
# --------------------------------------------------------------------------
def _simclr_kernel(x_ref, bw_ref, bcw_ref, wp_ref, loss_ref, y_acc):
    # x_ref  : (1, MROWS, WC2)   bf16  row-shifted padded views (kernel row di)
    # bw_ref : (1, WC2, WF)      bf16  banded conv weight for kernel row di
    # bcw_ref: (1, WF)           f32   conv bias pre-tiled over the W blocks
    # wp_ref : (64, PROJECT_DIM) f32   packed projector params (w1|w2|b1|b2)
    # loss_ref: (1, 1) f32
    # y_acc  : (MROWS, WF)       f32   accumulator for the 3 partial matmuls
    di = pl.program_id(0)

    # one partial conv matmul per kernel row (MXU, bf16 in / f32 accumulate)
    part = jnp.dot(x_ref[0], bw_ref[0], preferred_element_type=jnp.float32)

    @pl.when(di == 0)
    def _():
        y_acc[...] = part

    @pl.when(di > 0)
    def _():
        y_acc[...] = y_acc[...] + part

    @pl.when(di == pl.num_programs(0) - 1)
    def _():
        # ---- encoder tail: bias + ReLU, then global average pool ----
        y = jnp.maximum(y_acc[...] + bcw_ref[...], 0.0)          # (MROWS, WF)
        # sum over output rows i within each image ...
        s = jnp.sum(y.reshape(TWO_B, H, WF), axis=1)             # (2B, WF)
        # ... then over the W column blocks (log2 lane fold: 512->...->32)
        width = WF
        while width > FEATURE_DIM:
            half = width // 2
            s = s[:, :half] + s[:, half:]
            width = half
        h = s * (1.0 / (H * W))                                  # (2B, F)

        # ---- projector MLP: Linear -> ReLU -> Linear (all slices 8-aligned) --
        w1 = wp_ref[0:FEATURE_DIM, :]                            # (F, P)
        w2 = wp_ref[FEATURE_DIM:FEATURE_DIM + PROJECT_DIM, :]    # (P, P)
        b1 = wp_ref[B1_ROW:B1_ROW + 1, :]                        # (1, P)
        b2 = wp_ref[B2_ROW:B2_ROW + 1, :]                        # (1, P)
        a = jnp.maximum(
            jnp.dot(h, w1, preferred_element_type=jnp.float32) + b1, 0.0)
        z = jnp.dot(a, w2, preferred_element_type=jnp.float32) + b2

        # ---- F.normalize(z, p=2, dim=1), eps=1e-12 via rsqrt (EUP) ----
        ss = jnp.sum(z * z, axis=1, keepdims=True)
        z = z * lax.rsqrt(jnp.maximum(ss, 1e-24))                # clamp = eps^2

        z1 = z[0:B]                                              # (B, P)
        z2 = z[B:TWO_B]                                          # (B, P)
        inv_t = 1.0 / TEMPERATURE
        dn = (((1,), (1,)), ((), ()))                            # contract feature
        # sim = z1 @ z2.T / T ; sim_t = z2 @ z1.T / T (= sim.T), kept as a tiny
        # BxB matmul so the column-sum of exp(sim) is available in row
        # orientation without a lane<->sublane transpose.
        sim = lax.dot_general(z1, z2, dn, preferred_element_type=jnp.float32) * inv_t
        sim_t = lax.dot_general(z2, z1, dn, preferred_element_type=jnp.float32) * inv_t

        pos = jnp.sum(z1 * z2, axis=1, keepdims=True) * inv_t    # diag(sim)  (B,1)
        rowsum = jnp.sum(jnp.exp(sim), axis=1, keepdims=True)    # sum(dim=1) (B,1)
        colsum = jnp.sum(jnp.exp(sim_t), axis=1, keepdims=True)  # sum(dim=0) (B,1)
        neg = rowsum + colsum - 2.0 * jnp.exp(pos)               # (B,1)

        # loss = -mean(pos) + mean(log(neg))
        loss = (-jnp.sum(pos) + jnp.sum(jnp.log(neg))) / B
        loss_ref[...] = jnp.reshape(loss, (1, 1))


def simclr_loss_fused(xsh, params):
    out = pl.pallas_call(
        _simclr_kernel,
        out_shape=jax.ShapeDtypeStruct((1, 1), jnp.float32),
        grid_spec=pltpu.PrefetchScalarGridSpec(
            num_scalar_prefetch=0,
            grid=(KH,),
            in_specs=[
                pl.BlockSpec((1, MROWS, WC2), lambda k: (k, 0, 0)),
                pl.BlockSpec((1, WC2, WF), lambda k: (k, 0, 0)),
                pl.BlockSpec((1, WF), lambda k: (0, 0)),
                pl.BlockSpec((64, PROJECT_DIM), lambda k: (0, 0)),
            ],
            out_specs=pl.BlockSpec((1, 1), lambda k: (0, 0)),
            scratch_shapes=[pltpu.VMEM((MROWS, WF), jnp.float32)],
        ),
        compiler_params=pltpu.CompilerParams(
            dimension_semantics=("arbitrary",)),   # reduction over kernel rows
    )(xsh, params["bw"], params["bcw"], params["wp"])
    return out[0, 0]


# --------------------------------------------------------------------------
# Glue: transforms + lane-dense row-shifted views, parameter packing
# --------------------------------------------------------------------------
def _make_views(x_nchw):
    # transform_1 = identity, transform_2 = horizontal flip; both views
    # stacked, NHWC, 'same' zero padding, W folded into the lane dim, plus the
    # KH=3 row-shifted copies the kernel contracts against the banded weight.
    # ~110 KiB bf16 total (vs ~1 MiB im2col + MiBs of wrapper temps before).
    x = jnp.transpose(x_nchw, (0, 2, 3, 1))                  # NCHW -> NHWC
    xb = jnp.concatenate([x, jnp.flip(x, axis=2)], axis=0)   # (2B, H, W, C)
    xp = jnp.pad(xb, ((0, 0), (1, 1), (1, 1), (0, 0)))       # (2B, H+2, W+2, C)
    xr = xp.reshape(TWO_B, H + 2, WC2)                       # (2B, H+2, (W+2)*C)
    views = [xr[:, d:d + H, :].reshape(MROWS, WC2) for d in range(KH)]
    return jnp.stack(views, axis=0).astype(jnp.bfloat16)     # (KH, 2B*H, 72)


def init_params(key):
    ks = jax.random.split(key, 6)
    wc = 0.10 * jax.random.normal(ks[0], (KH, KW, C, FEATURE_DIM), jnp.float32)
    bc = 0.01 * jax.random.normal(ks[1], (FEATURE_DIM,), jnp.float32)
    w1 = 0.10 * jax.random.normal(ks[2], (FEATURE_DIM, PROJECT_DIM), jnp.float32)
    b1 = 0.01 * jax.random.normal(ks[3], (PROJECT_DIM,), jnp.float32)
    w2 = 0.10 * jax.random.normal(ks[4], (PROJECT_DIM, PROJECT_DIM), jnp.float32)
    b2 = 0.01 * jax.random.normal(ks[5], (PROJECT_DIM,), jnp.float32)

    # Banded conv weight: bw[di, (j+dj)*C + c, j*F + f] = wc[di, dj, c, f], so
    # the 3x3 'same' conv over every output column j is exactly KH=3 matmuls
    # of the row-shifted input against bw[di].  Built once at init.
    wc_np = np.asarray(wc)
    bw = np.zeros((KH, WC2, WF), np.float32)
    for di in range(KH):
        for dj in range(KW):
            for j in range(W):
                bw[di, (j + dj) * C:(j + dj + 1) * C,
                   j * FEATURE_DIM:(j + 1) * FEATURE_DIM] = wc_np[di, dj]

    # conv bias pre-tiled over the W column blocks of the wide layout
    bcw = np.tile(np.asarray(bc), W).reshape(1, WF).astype(np.float32)

    # projector weights + biases packed into one array (8-row-aligned slices)
    wp = np.zeros((64, PROJECT_DIM), np.float32)
    wp[0:FEATURE_DIM] = np.asarray(w1)
    wp[FEATURE_DIM:FEATURE_DIM + PROJECT_DIM] = np.asarray(w2)
    wp[B1_ROW] = np.asarray(b1)
    wp[B2_ROW] = np.asarray(b2)

    return dict(bw=jnp.asarray(bw, jnp.bfloat16),   # bf16 MXU feed (221 KiB)
                bcw=jnp.asarray(bcw),               # f32  (2 KiB)
                wp=jnp.asarray(wp))                 # f32  (4 KiB)


@jax.jit
def simclr_forward(x, params):
    # x: (B, C, H, W) float32 (NCHW, PyTorch convention)
    return simclr_loss_fused(_make_views(x), params)


if __name__ == "__main__":
    key = jax.random.PRNGKey(0)
    k_param, k_data = jax.random.split(key)
    params = init_params(k_param)
    x = jax.random.normal(k_data, (B, C, H, W), jnp.float32)

    loss = simclr_forward(x, params)
    loss = jax.block_until_ready(loss)
    assert jnp.isfinite(loss), f"non-finite loss: {loss}"
    print("KERNEL_OK")
</pallas_src>

<mosaic_0001>
module attributes {stable_mosaic.version = 11 : i64} {
  func.func @_simclr_kernel(%arg0: i32, %arg1: memref<1x256x72xbf16, #tpu.memory_space<vmem>>, %arg2: memref<1x72x512xbf16, #tpu.memory_space<vmem>>, %arg3: memref<1x512xf32, #tpu.memory_space<vmem>>, %arg4: memref<64x16xf32, #tpu.memory_space<vmem>>, %arg5: memref<1x1xf32, #tpu.memory_space<vmem>>, %arg6: memref<256x512xf32, #tpu.memory_space<vmem>>) attributes {dimension_semantics = [#tpu.dimension_semantics<arbitrary>], iteration_bounds = array<i64: 3>, scalar_prefetch = 0 : i64, scratch_operands = 1 : i64, tpu.core_type = #tpu.core_type<tc>, window_params = [{transform_indices = @transform_0, window_bounds = array<i64: 1, 256, 72>}, {transform_indices = @transform_1, window_bounds = array<i64: 1, 72, 512>}, {pipeline_mode = #tpu.pipeline_mode<synchronous>, transform_indices = @transform_2, window_bounds = array<i64: 1, 512>}, {pipeline_mode = #tpu.pipeline_mode<synchronous>, transform_indices = @transform_3, window_bounds = array<i64: 64, 16>}, {pipeline_mode = #tpu.pipeline_mode<synchronous>, transform_indices = @transform_4, window_bounds = array<i64: 1, 1>}]} {
    %c0 = arith.constant 0 : index
    %c0_0 = arith.constant 0 : index
    %c0_1 = arith.constant 0 : index
    %0 = vector.load %arg1[%c0, %c0_0, %c0_1] : memref<1x256x72xbf16, #tpu.memory_space<vmem>>, vector<1x256x72xbf16>
    %1 = vector.shape_cast %0 : vector<1x256x72xbf16> to vector<256x72xbf16>
    %c0_2 = arith.constant 0 : index
    %c0_3 = arith.constant 0 : index
    %c0_4 = arith.constant 0 : index
    %2 = vector.load %arg2[%c0_2, %c0_3, %c0_4] : memref<1x72x512xbf16, #tpu.memory_space<vmem>>, vector<1x72x512xbf16>
    %3 = vector.shape_cast %2 : vector<1x72x512xbf16> to vector<72x512xbf16>
    %cst = arith.constant dense<0.000000e+00> : vector<256x512xf32>
    %4 = tpu.matmul %1, %3, %cst {dimension_numbers = #tpu.dot_dimension_numbers<[1], [0], [0], [1], [0, 0, 1, 1], [], []>} : vector<256x72xbf16>, vector<72x512xbf16>, vector<256x512xf32> -> vector<256x512xf32>
    %c0_i32 = arith.constant 0 : i32
    %5 = arith.cmpi eq, %arg0, %c0_i32 : i32
    %6 = arith.extui %5 : i1 to i32
    %c0_i32_5 = arith.constant 0 : i32
    %7 = arith.cmpi ne, %6, %c0_i32_5 : i32
    scf.if %7 {
      %c0_9 = arith.constant 0 : index
      %c0_10 = arith.constant 0 : index
      %14 = vector.load %arg6[%c0_9, %c0_10] : memref<256x512xf32, #tpu.memory_space<vmem>>, vector<256x512xf32>
      tpu.vector_store %arg6[%c0_9, %c0_10], %4 {strides = array<i32>} : memref<256x512xf32, #tpu.memory_space<vmem>>, vector<256x512xf32>,
    } else {
    }
    %c0_i32_6 = arith.constant 0 : i32
    %8 = arith.cmpi sgt, %arg0, %c0_i32_6 : i32
    %9 = arith.extui %8 : i1 to i32
    %c0_i32_7 = arith.constant 0 : i32
    %10 = arith.cmpi ne, %9, %c0_i32_7 : i32
    scf.if %10 {
      %c0_9 = arith.constant 0 : index
      %c0_10 = arith.constant 0 : index
      %14 = vector.load %arg6[%c0_9, %c0_10] : memref<256x512xf32, #tpu.memory_space<vmem>>, vector<256x512xf32>
      %15 = arith.addf %14, %4 : vector<256x512xf32>
      %c0_11 = arith.constant 0 : index
      %c0_12 = arith.constant 0 : index
      %16 = vector.load %arg6[%c0_11, %c0_12] : memref<256x512xf32, #tpu.memory_space<vmem>>, vector<256x512xf32>
      tpu.vector_store %arg6[%c0_11, %c0_12], %15 {strides = array<i32>} : memref<256x512xf32, #tpu.memory_space<vmem>>, vector<256x512xf32>,
    } else {
    }
    %c2_i32 = arith.constant 2 : i32
    %11 = arith.cmpi eq, %arg0, %c2_i32 : i32
    %12 = arith.extui %11 : i1 to i32
    %c0_i32_8 = arith.constant 0 : i32
    %13 = arith.cmpi ne, %12, %c0_i32_8 : i32
    scf.if %13 {
      %c0_9 = arith.constant 0 : index
      %c0_10 = arith.constant 0 : index
      %14 = vector.load %arg6[%c0_9, %c0_10] : memref<256x512xf32, #tpu.memory_space<vmem>>, vector<256x512xf32>
      %c0_11 = arith.constant 0 : index
      %c0_12 = arith.constant 0 : index
      %15 = vector.load %arg3[%c0_11, %c0_12] : memref<1x512xf32, #tpu.memory_space<vmem>>, vector<1x512xf32>
      %16 = vector.broadcast %15 : vector<1x512xf32> to vector<256x512xf32>
      %17 = arith.addf %14, %16 : vector<256x512xf32>
      %cst_13 = arith.constant 0.000000e+00 : f32
      %18 = vector.broadcast %cst_13 : f32 to vector<256x512xf32>
      %19 = arith.maximumf %17, %18 : vector<256x512xf32>
      %20 = vector.shape_cast %19 : vector<256x512xf32> to vector<16x16x512xf32>
      %cst_14 = arith.constant dense<0.000000e+00> : vector<16x512xf32>
      %21 = vector.multi_reduction <add>, %20, %cst_14 [1] : vector<16x16x512xf32> to vector<16x512xf32>
      %22 = vector.extract_strided_slice %21 {offsets = [0, 0], sizes = [16, 256], strides = [1, 1]} : vector<16x512xf32> to vector<16x256xf32>
      %23 = vector.extract_strided_slice %21 {offsets = [0, 256], sizes = [16, 256], strides = [1, 1]} : vector<16x512xf32> to vector<16x256xf32>
      %24 = arith.addf %22, %23 : vector<16x256xf32>
      %25 = vector.extract_strided_slice %24 {offsets = [0, 0], sizes = [16, 128], strides = [1, 1]} : vector<16x256xf32> to vector<16x128xf32>
      %26 = vector.extract_strided_slice %24 {offsets = [0, 128], sizes = [16, 128], strides = [1, 1]} : vector<16x256xf32> to vector<16x128xf32>
      %27 = arith.addf %25, %26 : vector<16x128xf32>
      %28 = vector.extract_strided_slice %27 {offsets = [0, 0], sizes = [16, 64], strides = [1, 1]} : vector<16x128xf32> to vector<16x64xf32>
      %29 = vector.extract_strided_slice %27 {offsets = [0, 64], sizes = [16, 64], strides = [1, 1]} : vector<16x128xf32> to vector<16x64xf32>
      %30 = arith.addf %28, %29 : vector<16x64xf32>
      %31 = vector.extract_strided_slice %30 {offsets = [0, 0], sizes = [16, 32], strides = [1, 1]} : vector<16x64xf32> to vector<16x32xf32>
      %32 = vector.extract_strided_slice %30 {offsets = [0, 32], sizes = [16, 32], strides = [1, 1]} : vector<16x64xf32> to vector<16x32xf32>
      %33 = arith.addf %31, %32 : vector<16x32xf32>
      %cst_15 = arith.constant 3.906250e-03 : f32
      %34 = vector.broadcast %cst_15 : f32 to vector<16x32xf32>
      %35 = arith.mulf %33, %34 : vector<16x32xf32>
      %c0_16 = arith.constant 0 : index
      %c0_17 = arith.constant 0 : index
      %36 = vector.load %arg4[%c0_16, %c0_17] : memref<64x16xf32, #tpu.memory_space<vmem>>, vector<32x16xf32>
      %c32 = arith.constant 32 : index
      %c0_18 = arith.constant 0 : index
      %37 = vector.load %arg4[%c32, %c0_18] : memref<64x16xf32, #tpu.memory_space<vmem>>, vector<16x16xf32>
      %c48 = arith.constant 48 : index
      %c0_19 = arith.constant 0 : index
      %38 = vector.load %arg4[%c48, %c0_19] : memref<64x16xf32, #tpu.memory_space<vmem>>, vector<1x16xf32>
      %c56 = arith.constant 56 : index
      %c0_20 = arith.constant 0 : index
      %39 = vector.load %arg4[%c56, %c0_20] : memref<64x16xf32, #tpu.memory_space<vmem>>, vector<1x16xf32>
      %cst_21 = arith.constant dense<0.000000e+00> : vector<16x16xf32>
      %40 = tpu.matmul %35, %36, %cst_21 {dimension_numbers = #tpu.dot_dimension_numbers<[1], [0], [0], [1], [0, 0, 1, 1], [], []>} : vector<16x32xf32>, vector<32x16xf32>, vector<16x16xf32> -> vector<16x16xf32>
      %41 = vector.broadcast %38 : vector<1x16xf32> to vector<16x16xf32>
      %42 = arith.addf %40, %41 : vector<16x16xf32>
      %cst_22 = arith.constant 0.000000e+00 : f32
      %43 = vector.broadcast %cst_22 : f32 to vector<16x16xf32>
      %44 = arith.maximumf %42, %43 : vector<16x16xf32>
      %cst_23 = arith.constant dense<0.000000e+00> : vector<16x16xf32>
      %45 = tpu.matmul %44, %37, %cst_23 {dimension_numbers = #tpu.dot_dimension_numbers<[1], [0], [0], [1], [0, 0, 1, 1], [], []>} : vector<16x16xf32>, vector<16x16xf32>, vector<16x16xf32> -> vector<16x16xf32>
      %46 = vector.broadcast %39 : vector<1x16xf32> to vector<16x16xf32>
      %47 = arith.addf %45, %46 : vector<16x16xf32>
      %48 = arith.mulf %47, %47 : vector<16x16xf32>
      %cst_24 = arith.constant dense<0.000000e+00> : vector<16xf32>
      %49 = vector.multi_reduction <add>, %48, %cst_24 [1] : vector<16x16xf32> to vector<16xf32>
      %50 = vector.shape_cast %49 : vector<16xf32> to vector<16x1xf32>
      %cst_25 = arith.constant 1.000000e-24 : f32
      %51 = vector.broadcast %cst_25 : f32 to vector<16x1xf32>
      %52 = arith.maximumf %50, %51 : vector<16x1xf32>
      %53 = math.rsqrt %52 : vector<16x1xf32>
      %54 = vector.broadcast %53 : vector<16x1xf32> to vector<16x16xf32>
      %55 = arith.mulf %47, %54 : vector<16x16xf32>
      %56 = vector.extract_strided_slice %55 {offsets = [0, 0], sizes = [8, 16], strides = [1, 1]} : vector<16x16xf32> to vector<8x16xf32>
      %57 = vector.extract_strided_slice %55 {offsets = [8, 0], sizes = [8, 16], strides = [1, 1]} : vector<16x16xf32> to vector<8x16xf32>
      %cst_26 = arith.constant dense<0.000000e+00> : vector<8x8xf32>
      %58 = tpu.matmul %56, %57, %cst_26 {dimension_numbers = #tpu.dot_dimension_numbers<[1], [1], [0], [0], [0, 0, 1, 0], [], []>} : vector<8x16xf32>, vector<8x16xf32>, vector<8x8xf32> -> vector<8x8xf32>
      %cst_27 = arith.constant 2.000000e+00 : f32
      %59 = vector.broadcast %cst_27 : f32 to vector<8x8xf32>
      %60 = arith.mulf %58, %59 : vector<8x8xf32>
      %cst_28 = arith.constant dense<0.000000e+00> : vector<8x8xf32>
      %61 = tpu.matmul %57, %56, %cst_28 {dimension_numbers = #tpu.dot_dimension_numbers<[1], [1], [0], [0], [0, 0, 1, 0], [], []>} : vector<8x16xf32>, vector<8x16xf32>, vector<8x8xf32> -> vector<8x8xf32>
      %cst_29 = arith.constant 2.000000e+00 : f32
      %62 = vector.broadcast %cst_29 : f32 to vector<8x8xf32>
      %63 = arith.mulf %61, %62 : vector<8x8xf32>
      %64 = arith.mulf %56, %57 : vector<8x16xf32>
      %cst_30 = arith.constant dense<0.000000e+00> : vector<8xf32>
      %65 = vector.multi_reduction <add>, %64, %cst_30 [1] : vector<8x16xf32> to vector<8xf32>
      %66 = vector.shape_cast %65 : vector<8xf32> to vector<8x1xf32>
      %cst_31 = arith.constant 2.000000e+00 : f32
      %67 = vector.broadcast %cst_31 : f32 to vector<8x1xf32>
      %68 = arith.mulf %66, %67 : vector<8x1xf32>
      %69 = math.exp %60 : vector<8x8xf32>
      %cst_32 = arith.constant dense<0.000000e+00> : vector<8xf32>
      %70 = vector.multi_reduction <add>, %69, %cst_32 [1] : vector<8x8xf32> to vector<8xf32>
      %71 = vector.shape_cast %70 : vector<8xf32> to vector<8x1xf32>
      %72 = math.exp %63 : vector<8x8xf32>
      %cst_33 = arith.constant dense<0.000000e+00> : vector<8xf32>
      %73 = vector.multi_reduction <add>, %72, %cst_33 [1] : vector<8x8xf32> to vector<8xf32>
      %74 = vector.shape_cast %73 : vector<8xf32> to vector<8x1xf32>
      %75 = arith.addf %71, %74 : vector<8x1xf32>
      %76 = math.exp %68 : vector<8x1xf32>
      %cst_34 = arith.constant 2.000000e+00 : f32
      %77 = vector.broadcast %cst_34 : f32 to vector<8x1xf32>
      %78 = arith.mulf %77, %76 : vector<8x1xf32>
      %79 = arith.subf %75, %78 : vector<8x1xf32>
      %80 = vector.shape_cast %68 : vector<8x1xf32> to vector<1x8x1xf32>
      %cst_35 = arith.constant dense<0.000000e+00> : vector<1xf32>
      %81 = vector.multi_reduction <add>, %80, %cst_35 [1, 2] : vector<1x8x1xf32> to vector<1xf32>
      %82 = vector.shape_cast %81 : vector<1xf32> to vector<1x1x1xf32>
      %83 = vector.extract %82[0, 0, 0] : f32 from vector<1x1x1xf32>
      %cst_36 = arith.constant 0.000000e+00 : f32
      %84 = arith.subf %cst_36, %83 : f32
      %85 = math.log %79 : vector<8x1xf32>
      %86 = vector.shape_cast %85 : vector<8x1xf32> to vector<1x8x1xf32>
      %cst_37 = arith.constant dense<0.000000e+00> : vector<1xf32>
      %87 = vector.multi_reduction <add>, %86, %cst_37 [1, 2] : vector<1x8x1xf32> to vector<1xf32>
      %88 = vector.shape_cast %87 : vector<1xf32> to vector<1x1x1xf32>
      %89 = vector.extract %88[0, 0, 0] : f32 from vector<1x1x1xf32>
      %90 = arith.addf %84, %89 : f32
      %cst_38 = arith.constant 8.000000e+00 : f32
      %91 = arith.divf %90, %cst_38 : f32
      %92 = vector.broadcast %91 : f32 to vector<1x1xf32>
      %c0_39 = arith.constant 0 : index
      %c0_40 = arith.constant 0 : index
      %93 = vector.load %arg5[%c0_39, %c0_40] : memref<1x1xf32, #tpu.memory_space<vmem>>, vector<1x1xf32>
      tpu.vector_store %arg5[%c0_39, %c0_40], %92 {strides = array<i32>} : memref<1x1xf32, #tpu.memory_space<vmem>>, vector<1x1xf32>,
    } else {
    }
    return
  }
  func.func @transform_0(%arg0: i32) -> (i32, i32, i32) {
    %c0_i32 = arith.constant 0 : i32
    %c0_i32_0 = arith.constant 0 : i32
    %c0_i32_1 = arith.constant 0 : i32
    return %arg0, %c0_i32, %c0_i32_0 : i32, i32, i32
  }
  func.func @transform_1(%arg0: i32) -> (i32, i32, i32) {
    %c0_i32 = arith.constant 0 : i32
    %c0_i32_0 = arith.constant 0 : i32
    %c0_i32_1 = arith.constant 0 : i32
    return %arg0, %c0_i32, %c0_i32_0 : i32, i32, i32
  }
  func.func @transform_2(%arg0: i32) -> (i32, i32) {
    %c0_i32 = arith.constant 0 : i32
    %c0_i32_0 = arith.constant 0 : i32
    %c0_i32_1 = arith.constant 0 : i32
    return %c0_i32, %c0_i32_0 : i32, i32
  }
  func.func @transform_3(%arg0: i32) -> (i32, i32) {
    %c0_i32 = arith.constant 0 : i32
    %c0_i32_0 = arith.constant 0 : i32
    %c0_i32_1 = arith.constant 0 : i32
    return %c0_i32, %c0_i32_0 : i32, i32
  }
  func.func @transform_4(%arg0: i32) -> (i32, i32) {
    %c0_i32 = arith.constant 0 : i32
    %c0_i32_0 = arith.constant 0 : i32
    %c0_i32_1 = arith.constant 0 : i32
    return %c0_i32, %c0_i32_0 : i32, i32
  }
}

</mosaic_0001>

<bundles_post_ra>
// kernel: simclr_forward.1
= control target key start
LH: loop header
LB: loop body
LE: loop exit
PB: predicated region body
PF: predicated region fallthrough
CT: control target
= control target key end

     0   :  { %9 = vsyncpa [#allocation4], 0  ;;  %s3263_s15 = smov 0   ;;  %s4235_s0 = inlined_call_operand.vmem [shape: bf16[3,256,72], index: 0, kind: input, shape index: {}]   ;;  %s4236_s1 = inlined_call_operand.vmem [shape: bf16[3,72,512], index: 1, kind: input, shape index: {}]   ;;  %s4237_s2 = inlined_call_operand.vmem [shape: f32[1,512], index: 2, kind: input, shape index: {}]   ;;  %s4238_s3 = inlined_call_operand.vmem [shape: f32[64,16], index: 3, kind: input, shape index: {}]   ;;  %s4239_s4 = inlined_call_operand.hbm [shape: f32[1,1], index: 4, kind: output, shape index: {}]  }
   0x1 LB: > { %s3269_s16 = sadd.s32 4294967295, %s3230_s15   ;;  %p2981_p0 = scmp.ge.s32.totalorder %s3230_s15, 1  ;;  %s3230_s15 = sphi %s3263_s15, %s15_s15  }
   0x2   : > { %p168_p1 = scmp.lt.s32.totalorder %s3230_s15, 4 }
   0x4   : > { %p169_p2 = pnand %p2981_p0, %p168_p1 }
   0x6   : > { %172 = sbr.rel (%p169_p2) target bundleno = 2122 (0x84a), region = 36 }
   0xb   : > { %p194_p3 = scmp.lt.s32.totalorder %s3269_s16, 2  ;;  %v3232_v0 = vmov 0   ;;  %vm474_vm0 = vcmask 1043456   ;;  %vm425_vm1 = vcmask 588800   ;;  %p3055_p4 = scmp.ne.s32.totalorder %s3269_s16, 0 }
   0xc   : > { %519 = vmatprep.mubr.bf16.mxu0 %v3232_v0  ;;  %712 = vmatprep.mubr.bf16.mxu1 %v3232_v0 }
   0xd   : > { %s195_s17 = scalar_select %p194_p3, %s3269_s16, 2 }
   0xf   : > { %s3072_s18 = sshll.u32 %s195_s17, 7  ;;  %s3115_s19 = smul.u32 144, %s195_s17 }
  0x10   : > { %s3280_s22 = scalar_lea.vmem %s4235_s0, %s3072_s18 }
  0x11   : > { %s3285_s25 = scalar_lea.vmem %s4236_s1, %s3115_s19  ;;  %v3168_v25 = vld [vmem:[%s3280_s22] sm:$0xff]   ;;  %v3169_v26 = vld [vmem:[%s3280_s22 + $0x8] sm:$0xff]   ;;  %v3170_v27 = vld [vmem:[%s3280_s22 + $0x10] sm:$0xff]  }
  0x12   : > { %v253_v1 = vld [vmem:[%s3285_s25 + $0x80] sm:$0xff]  ;;  %v254_v2 = vld [vmem:[%s3285_s25 + $0x88] sm:$0xff]  ;;  %v3171_v28 = vld [vmem:[%s3280_s22 + $0x18] sm:$0xff]  }
  0x13   : > { %v3018_v3 = vcombine.high %v253_v1, %v253_v1  ;;  %v3020_v4 = vcombine.high %v254_v2, %v254_v2  ;;  %v3017_v5 = vcombine.low %v253_v1, %v253_v1  ;;  %v3019_v6 = vcombine.low %v254_v2, %v254_v2  ;;  %v3144_v7 = vld [vmem:[%s3285_s25 + $0x64] ss:$16 sps:$4 sm:$0xff]   ;;  %v3146_v8 = vld [vmem:[%s3285_s25 + $0x6c] ss:$16 sps:$4 sm:$0xff]   ;;  %v3148_v11 = vld [vmem:[%s3285_s25 + $0x60] ss:$16 sps:$4 sm:$0xff]  }
  0x14   : > { %v3149_v12 = vld [vmem:[%s3285_s25 + $0x68] ss:$16 sps:$4 sm:$0xff]   ;;  %v3150_v13 = vld [vmem:[%s3285_s25 + $0x44] ss:$16 sps:$4 sm:$0xff]   ;;  %v3152_v14 = vld [vmem:[%s3285_s25 + $0x4c] ss:$16 sps:$4 sm:$0xff]  }
  0x15   : > { %3021 = vmatprep.subr.msk.bf16.mxu0 %vm474_vm0, %v3018_v3  ;;  %3038 = vmatprep.subr.msk.bf16.mxu1 %vm474_vm0, %v3020_v4  ;;  %v476_v9 = vsel %vm474_vm0, %v3017_v5, 0  ;;  %v482_v10 = vsel %vm474_vm0, %v3019_v6, 0  ;;  %v3154_v15 = vld [vmem:[%s3285_s25 + $0x40] ss:$16 sps:$4 sm:$0xff]   ;;  %v3155_v16 = vld [vmem:[%s3285_s25 + $0x48] ss:$16 sps:$4 sm:$0xff]  }
  0x16   : > { %494 = vmatpush1.bf16.msra.mxu0 %v476_v9  ;;  %687 = vmatpush1.bf16.msra.mxu1 %v482_v10  ;;  %v3156_v17 = vld [vmem:[%s3285_s25 + $0x24] ss:$16 sps:$4 sm:$0xff]   ;;  %v3158_v18 = vld [vmem:[%s3285_s25 + $0x2c] ss:$16 sps:$4 sm:$0xff]   ;;  %v3160_v19 = vld [vmem:[%s3285_s25 + $0x20] ss:$16 sps:$4 sm:$0xff]  }
  0x17   : > { %495 = vmatprep.subr.bf16.mxu0 %v3144_v7  ;;  %688 = vmatprep.subr.bf16.mxu1 %v3146_v8  ;;  %v3161_v20 = vld [vmem:[%s3285_s25 + $0x28] ss:$16 sps:$4 sm:$0xff]   ;;  %v3162_v21 = vld [vmem:[%s3285_s25 + $0x4] ss:$16 sps:$4 sm:$0xff]   ;;  %v3164_v22 = vld [vmem:[%s3285_s25 + $0xc] ss:$16 sps:$4 sm:$0xff]  }
  0x18   : > { %v3166_v23 = vld [vmem:[%s3285_s25] ss:$16 sps:$4 sm:$0xff]   ;;  %v3167_v24 = vld [vmem:[%s3285_s25 + $0x8] ss:$16 sps:$4 sm:$0xff]  }
  0x19   : > { %v3172_v29 = vld [vmem:[%s3280_s22 + $0x20] sm:$0xff]   ;;  %v3173_v30 = vld [vmem:[%s3280_s22 + $0x28] sm:$0xff]   ;;  %v3174_v31 = vld [vmem:[%s3280_s22 + $0x30] sm:$0xff]  }
  0x1a   : > { %496 = vmatpush1.bf16.msra.mxu0 %v3148_v11  ;;  %689 = vmatpush1.bf16.msra.mxu1 %v3149_v12  ;;  %v3175_v32 = vld [vmem:[%s3280_s22 + $0x38] sm:$0xff]   ;;  %v3176_v33 = vld [vmem:[%s3280_s22 + $0x40] sm:$0xff]   ;;  %v3177_v34 = vld [vmem:[%s3280_s22 + $0x48] sm:$0xff]  }
  0x1b   : > { %497 = vmatprep.subr.bf16.mxu0 %v3150_v13  ;;  %690 = vmatprep.subr.bf16.mxu1 %v3152_v14  ;;  %v3178_v35 = vld [vmem:[%s3280_s22 + $0x50] sm:$0xff]   ;;  %v3179_v36 = vld [vmem:[%s3280_s22 + $0x58] sm:$0xff]   ;;  %v3180_v37 = vld [vmem:[%s3280_s22 + $0x60] sm:$0xff]  }
  0x1c   : > { %v3181_v38 = vld [vmem:[%s3280_s22 + $0x68] sm:$0xff]   ;;  %v3182_v39 = vld [vmem:[%s3280_s22 + $0x70] sm:$0xff]   ;;  %v3183_v40 = vld [vmem:[%s3280_s22 + $0x78] sm:$0xff]  }
  0x1e   : > { %498 = vmatpush1.bf16.msra.mxu0 %v3154_v15  ;;  %691 = vmatpush1.bf16.msra.mxu1 %v3155_v16 }
  0x1f   : > { %499 = vmatprep.subr.bf16.mxu0 %v3156_v17  ;;  %692 = vmatprep.subr.bf16.mxu1 %v3158_v18 }
  0x22   : > { %500 = vmatpush1.bf16.msra.mxu0 %v3160_v19  ;;  %693 = vmatpush1.bf16.msra.mxu1 %v3161_v20 }
  0x23   : > { %501 = vmatprep.subr.bf16.mxu0 %v3162_v21  ;;  %694 = vmatprep.subr.bf16.mxu1 %v3164_v22 }
  0x26   : > { %502 = vmatpush1.bf16.msra.mxu0 %v3166_v23  ;;  %695 = vmatpush1.bf16.msra.mxu1 %v3167_v24 }
  0x29   : > { %3022 = vmatmul.mubr.msk.bf16.vlgmr.msra.gmra.mxu0 %vm425_vm1, %v3168_v25  ;;  %3039 = vmatmul.mubr.msk.bf16.vlgmr.msra.gmra.mxu1 %vm425_vm1, %v3168_v25 }
  0x2a   : > { %529 = vmatprep.mubr.bf16.mxu0 %v3232_v0  ;;  %722 = vmatprep.mubr.bf16.mxu1 %v3232_v0 }
  0x31   : > { %3023 = vmatmul.mubr.msk.bf16.gmra.mxu0 %vm425_vm1, %v3169_v26  ;;  %3040 = vmatmul.mubr.msk.bf16.gmra.mxu1 %vm425_vm1, %v3169_v26 }
  0x32   : > { %539 = vmatprep.mubr.bf16.mxu0 %v3232_v0  ;;  %732 = vmatprep.mubr.bf16.mxu1 %v3232_v0 }
  0x39   : > { %3024 = vmatmul.mubr.msk.bf16.gmra.mxu0 %vm425_vm1, %v3170_v27  ;;  %3041 = vmatmul.mubr.msk.bf16.gmra.mxu1 %vm425_vm1, %v3170_v27 }
  0x3a   : > { %549 = vmatprep.mubr.bf16.mxu0 %v3232_v0  ;;  %742 = vmatprep.mubr.bf16.mxu1 %v3232_v0 }
  0x41   : > { %3025 = vmatmul.mubr.msk.bf16.gmra.mxu0 %vm425_vm1, %v3171_v28  ;;  %3042 = vmatmul.mubr.msk.bf16.gmra.mxu1 %vm425_vm1, %v3171_v28 }
  0x42   : > { %559 = vmatprep.mubr.bf16.mxu0 %v3232_v0  ;;  %752 = vmatprep.mubr.bf16.mxu1 %v3232_v0 }
  0x49   : > { %3026 = vmatmul.mubr.msk.bf16.gmra.mxu0 %vm425_vm1, %v3172_v29  ;;  %3043 = vmatmul.mubr.msk.bf16.gmra.mxu1 %vm425_vm1, %v3172_v29 }
  0x4a   : > { %569 = vmatprep.mubr.bf16.mxu0 %v3232_v0  ;;  %762 = vmatprep.mubr.bf16.mxu1 %v3232_v0 }
  0x51   : > { %3027 = vmatmul.mubr.msk.bf16.gmra.mxu0 %vm425_vm1, %v3173_v30  ;;  %3044 = vmatmul.mubr.msk.bf16.gmra.mxu1 %vm425_vm1, %v3173_v30 }
  0x52   : > { %579 = vmatprep.mubr.bf16.mxu0 %v3232_v0  ;;  %772 = vmatprep.mubr.bf16.mxu1 %v3232_v0 }
  0x59   : > { %3028 = vmatmul.mubr.msk.bf16.gmra.mxu0 %vm425_vm1, %v3174_v31  ;;  %3045 = vmatmul.mubr.msk.bf16.gmra.mxu1 %vm425_vm1, %v3174_v31 }
  0x5a   : > { %589 = vmatprep.mubr.bf16.mxu0 %v3232_v0  ;;  %782 = vmatprep.mubr.bf16.mxu1 %v3232_v0 }
  0x61   : > { %3029 = vmatmul.mubr.msk.bf16.gmra.mxu0 %vm425_vm1, %v3175_v32  ;;  %3046 = vmatmul.mubr.msk.bf16.gmra.mxu1 %vm425_vm1, %v3175_v32 }
  0x62   : > { %599 = vmatprep.mubr.bf16.mxu0 %v3232_v0  ;;  %792 = vmatprep.mubr.bf16.mxu1 %v3232_v0 }
  0x69   : > { %3030 = vmatmul.mubr.msk.bf16.gmra.mxu0 %vm425_vm1, %v3176_v33  ;;  %3047 = vmatmul.mubr.msk.bf16.gmra.mxu1 %vm425_vm1, %v3176_v33 }
  0x6a   : > { %609 = vmatprep.mubr.bf16.mxu0 %v3232_v0  ;;  %802 = vmatprep.mubr.bf16.mxu1 %v3232_v0 }
  0x71   : > { %3031 = vmatmul.mubr.msk.bf16.gmra.mxu0 %vm425_vm1, %v3177_v34  ;;  %3048 = vmatmul.mubr.msk.bf16.gmra.mxu1 %vm425_vm1, %v3177_v34 }
  0x72   : > { %619 = vmatprep.mubr.bf16.mxu0 %v3232_v0  ;;  %812 = vmatprep.mubr.bf16.mxu1 %v3232_v0 }
  0x79   : > { %3032 = vmatmul.mubr.msk.bf16.gmra.mxu0 %vm425_vm1, %v3178_v35  ;;  %3049 = vmatmul.mubr.msk.bf16.gmra.mxu1 %vm425_vm1, %v3178_v35 }
  0x7a   : > { %629 = vmatprep.mubr.bf16.mxu0 %v3232_v0  ;;  %822 = vmatprep.mubr.bf16.mxu1 %v3232_v0 }
  0x81   : > { %3033 = vmatmul.mubr.msk.bf16.gmra.mxu0 %vm425_vm1, %v3179_v36  ;;  %3050 = vmatmul.mubr.msk.bf16.gmra.mxu1 %vm425_vm1, %v3179_v36 }
  0x82   : > { %639 = vmatprep.mubr.bf16.mxu0 %v3232_v0  ;;  %832 = vmatprep.mubr.bf16.mxu1 %v3232_v0 }
  0x89   : > { %3034 = vmatmul.mubr.msk.bf16.gmra.mxu0 %vm425_vm1, %v3180_v37  ;;  %3051 = vmatmul.mubr.msk.bf16.gmra.mxu1 %vm425_vm1, %v3180_v37 }
  0x8a   : > { %649 = vmatprep.mubr.bf16.mxu0 %v3232_v0  ;;  %842 = vmatprep.mubr.bf16.mxu1 %v3232_v0 }
  0x91   : > { %3035 = vmatmul.mubr.msk.bf16.gmra.mxu0 %vm425_vm1, %v3181_v38  ;;  %3052 = vmatmul.mubr.msk.bf16.gmra.mxu1 %vm425_vm1, %v3181_v38 }
  0x92   : > { %659 = vmatprep.mubr.bf16.mxu0 %v3232_v0  ;;  %852 = vmatprep.mubr.bf16.mxu1 %v3232_v0 }
  0x99   : > { %3036 = vmatmul.mubr.msk.bf16.gmra.mxu0 %vm425_vm1, %v3182_v39  ;;  %3053 = vmatmul.mubr.msk.bf16.gmra.mxu1 %vm425_vm1, %v3182_v39 }
  0x9a   : > { %669 = vmatprep.mubr.bf16.mxu0 %v3232_v0  ;;  %862 = vmatprep.mubr.bf16.mxu1 %v3232_v0 }
  0xa1   : > { %3037 = vmatmul.mubr.msk.bf16.gmra.mxu0 %vm425_vm1, %v3183_v40  ;;  %3054 = vmatmul.mubr.msk.bf16.gmra.mxu1 %vm425_vm1, %v3183_v40 }
  0xe9   : > { %v3383_v41 = vpop.f32.mrf.mxu0  ;;  %v3385_v42 = vpop.f32.mrf.mxu1 }
  0xeb   : > { %v3387_v43 = vpop.f32.mrf.mxu0  ;;  %v3389_v44 = vpop.f32.mrf.mxu1 }
  0xed   : > { %v3391_v45 = vpop.f32.mrf.mxu0  ;;  %v3393_v46 = vpop.f32.mrf.mxu1 }
  0xef   : > { %v3395_v47 = vpop.f32.mrf.mxu0  ;;  %v3397_v48 = vpop.f32.mrf.mxu1 }
  0xf1   : > { %v3399_v49 = vpop.f32.mrf.mxu0  ;;  %v3401_v50 = vpop.f32.mrf.mxu1 }
  0xf3   : > { %v3403_v51 = vpop.f32.mrf.mxu0  ;;  %v3405_v52 = vpop.f32.mrf.mxu1 }
  0xf5   : > { %v3407_v53 = vpop.f32.mrf.mxu0  ;;  %v3409_v54 = vpop.f32.mrf.mxu1 }
  0xf7   : > { %v3411_v55 = vpop.f32.mrf.mxu0  ;;  %v3413_v56 = vpop.f32.mrf.mxu1 }
  0xf9   : > { %v3415_v57 = vpop.f32.mrf.mxu0  ;;  %v3417_v58 = vpop.f32.mrf.mxu1 }
  0xfb   : > { %v3419_v59 = vpop.f32.mrf.mxu0  ;;  %v3421_v60 = vpop.f32.mrf.mxu1 }
  0xfd   : > { %v3423_v61 = vpop.f32.mrf.mxu0  ;;  %v3425_v62 = vpop.f32.mrf.mxu1 }
  0xff   : > { %v3427_v63 = vpop.f32.mrf.mxu0  ;;  %v3429_v0 = vpop.f32.mrf.mxu1 }
 0x101   : > { %v3431_v1 = vpop.f32.mrf.mxu0  ;;  %v3433_v2 = vpop.f32.mrf.mxu1 }
 0x103   : > { %v3435_v3 = vpop.f32.mrf.mxu0  ;;  %v3437_v4 = vpop.f32.mrf.mxu1 }
 0x105   : > { %v3439_v5 = vpop.f32.mrf.mxu0  ;;  %v3441_v6 = vpop.f32.mrf.mxu1 }
 0x107   : > { %v3443_v7 = vpop.f32.mrf.mxu0  ;;  %v3445_v8 = vpop.f32.mrf.mxu1 }
 0x109   : > { %v3447_v9 = vpop.f32.mrf.mxu0  ;;  %v3449_v10 = vpop.f32.mrf.mxu1 }
 0x10b   : > { %v3451_v11 = vpop.f32.mrf.mxu0  ;;  %v3453_v12 = vpop.f32.mrf.mxu1 }
 0x10d   : > { %v3455_v13 = vpop.f32.mrf.mxu0  ;;  %v3457_v14 = vpop.f32.mrf.mxu1 }
 0x10f   : > { %v3459_v15 = vpop.f32.mrf.mxu0  ;;  %v3461_v16 = vpop.f32.mrf.mxu1 }
 0x111   : > { %v3463_v17 = vpop.f32.mrf.mxu0  ;;  %v3465_v18 = vpop.f32.mrf.mxu1 }
 0x112   : > { %4255 = vst [vmem:[#allocation6_spill] sm:$0xff] %v3465_v18 }
 0x113   : > { %v3467_v19 = vpop.f32.mrf.mxu0  ;;  %v3469_v20 = vpop.f32.mrf.mxu1 }
 0x114   : > { %4256 = vst [vmem:[#allocation7_spill] sm:$0xff] %v3469_v20 }
 0x115   : > { %v3471_v21 = vpop.f32.mrf.mxu0  ;;  %v3473_v22 = vpop.f32.mrf.mxu1 }
 0x116   : > { %4257 = vst [vmem:[#allocation8_spill] sm:$0xff] %v3471_v21  ;;  %4258 = vst [vmem:[#allocation9_spill] sm:$0xff] %v3473_v22 }
 0x117   : > { %v3475_v23 = vpop.f32.mrf.mxu0  ;;  %v3477_v24 = vpop.f32.mrf.mxu1 }
 0x118   : > { %4259 = vst [vmem:[#allocation10_spill] sm:$0xff] %v3475_v23  ;;  %4260 = vst [vmem:[#allocation11_spill] sm:$0xff] %v3477_v24 }
 0x119   : > { %v3479_v25 = vpop.f32.mrf.mxu0  ;;  %v3481_v26 = vpop.f32.mrf.mxu1 }
 0x11a   : > { %4261 = vst [vmem:[#allocation12_spill] sm:$0xff] %v3479_v25  ;;  %4262 = vst [vmem:[#allocation13_spill] sm:$0xff] %v3481_v26 }
 0x11b   : > { %v3483_v27 = vpop.f32.mrf.mxu0  ;;  %v3485_v28 = vpop.f32.mrf.mxu1 }
 0x11c   : > { %4263 = vst [vmem:[#allocation14_spill] sm:$0xff] %v3483_v27  ;;  %4264 = vst [vmem:[#allocation15_spill] sm:$0xff] %v3485_v28 }
 0x11d   : > { %v3487_v29 = vpop.f32.mrf.mxu0  ;;  %v3489_v30 = vpop.f32.mrf.mxu1 }
 0x11e   : > { %4265 = vst [vmem:[#allocation16_spill] sm:$0xff] %v3487_v29  ;;  %4266 = vst [vmem:[#allocation17_spill] sm:$0xff] %v3489_v30 }
 0x11f   : > { %v3491_v31 = vpop.f32.mrf.mxu0  ;;  %v3493_v32 = vpop.f32.mrf.mxu1 }
 0x120   : > { %4267 = vst [vmem:[#allocation18_spill] sm:$0xff] %v3491_v31  ;;  %4268 = vst [vmem:[#allocation19_spill] sm:$0xff] %v3493_v32 }
 0x121   : > { %v3495_v33 = vpop.f32.mrf.mxu0  ;;  %v3497_v34 = vpop.f32.mrf.mxu1 }
 0x122   : > { %4269 = vst [vmem:[#allocation20_spill] sm:$0xff] %v3495_v33  ;;  %4270 = vst [vmem:[#allocation21_spill] sm:$0xff] %v3497_v34 }
 0x123   : > { %v3499_v35 = vpop.f32.mrf.mxu0  ;;  %v3501_v36 = vpop.f32.mrf.mxu1 }
 0x124   : > { %4271 = vst [vmem:[#allocation22_spill] sm:$0xff] %v3499_v35  ;;  %4272 = vst [vmem:[#allocation23_spill] sm:$0xff] %v3501_v36 }
 0x125   : > { %v3503_v37 = vpop.f32.mrf.mxu0  ;;  %v3505_v38 = vpop.f32.mrf.mxu1 }
 0x126   : > { %4273 = vst [vmem:[#allocation24_spill] sm:$0xff] %v3503_v37  ;;  %4274 = vst [vmem:[#allocation25_spill] sm:$0xff] %v3505_v38 }
 0x127   : > { %v3507_v39 = vpop.f32.mrf.mxu0  ;;  %v3509_v40 = vpop.f32.mrf.mxu1 }
 0x128   : > { %4275 = vst [vmem:[#allocation26_spill] sm:$0xff] %v3507_v39  ;;  %4276 = vst [vmem:[#allocation27_spill] sm:$0xff] %v3509_v40 }
 0x129   : > { %v3511_v30 = vpop.f32.mrf.mxu0  ;;  %v3513_v31 = vpop.f32.mrf.mxu1 }
 0x12a   : > { %4277 = vst [vmem:[#allocation28_spill] sm:$0xff] %v3511_v30  ;;  %4278 = vst [vmem:[#allocation29_spill] sm:$0xff] %v3513_v31 }
 0x12b   : > { %v3515_v32 = vpop.f32.mrf.mxu0  ;;  %v3517_v33 = vpop.f32.mrf.mxu1 }
 0x12c   : > { %4279 = vst [vmem:[#allocation30_spill] sm:$0xff] %v3515_v32  ;;  %4280 = vst [vmem:[#allocation31_spill] sm:$0xff] %v3517_v33 }
 0x12d   : > { %v3519_v34 = vpop.f32.mrf.mxu0  ;;  %v3521_v35 = vpop.f32.mrf.mxu1 }
 0x12e   : > { %4281 = vst [vmem:[#allocation32_spill] sm:$0xff] %v3519_v34  ;;  %4282 = vst [vmem:[#allocation33_spill] sm:$0xff] %v3521_v35 }
 0x12f   : > { %v3523_v36 = vpop.f32.mrf.mxu0  ;;  %v3525_v37 = vpop.f32.mrf.mxu1 }
 0x130   : > { %4283 = vst [vmem:[#allocation34_spill] sm:$0xff] %v3523_v36  ;;  %4284 = vst [vmem:[#allocation35_spill] sm:$0xff] %v3525_v37 }
 0x131   : > { %v3527_v38 = vpop.f32.mrf.mxu0  ;;  %v3529_v39 = vpop.f32.mrf.mxu1 }
 0x132   : > { %4285 = vst [vmem:[#allocation36_spill] sm:$0xff] %v3527_v38  ;;  %4286 = vst [vmem:[#allocation37_spill] sm:$0xff] %v3529_v39 }
 0x133   : > { %v3531_v40 = vpop.f32.mrf.mxu0  ;;  %v3533_v30 = vpop.f32.mrf.mxu1 }
 0x134   : > { %4287 = vst [vmem:[#allocation38_spill] sm:$0xff] %v3531_v40  ;;  %4288 = vst [vmem:[#allocation39_spill] sm:$0xff] %v3533_v30 }
 0x135   : > { %v3535_v31 = vpop.f32.mrf.mxu0  ;;  %v3537_v32 = vpop.f32.mrf.mxu1 }
 0x136   : > { %4289 = vst [vmem:[#allocation40_spill] sm:$0xff] %v3535_v31  ;;  %4290 = vst [vmem:[#allocation41_spill] sm:$0xff] %v3537_v32 }
 0x137   : > { %v3539_v33 = vpop.f32.mrf.mxu0  ;;  %v3541_v34 = vpop.f32.mrf.mxu1 }
 0x138   : > { %4291 = vst [vmem:[#allocation42_spill] sm:$0xff] %v3539_v33  ;;  %4292 = vst [vmem:[#allocation43_spill] sm:$0xff] %v3541_v34 }
 0x139   : > { %v3543_v35 = vpop.f32.mrf.mxu0  ;;  %v3545_v36 = vpop.f32.mrf.mxu1 }
 0x13a   : > { %4293 = vst [vmem:[#allocation44_spill] sm:$0xff] %v3543_v35  ;;  %4294 = vst [vmem:[#allocation45_spill] sm:$0xff] %v3545_v36 }
 0x13b   : > { %v3547_v37 = vpop.f32.mrf.mxu0  ;;  %v3549_v38 = vpop.f32.mrf.mxu1 }
 0x13c   : > { %4295 = vst [vmem:[#allocation46_spill] sm:$0xff] %v3547_v37  ;;  %4296 = vst [vmem:[#allocation47_spill] sm:$0xff] %v3549_v38 }
 0x13d   : > { %v3551_v39 = vpop.f32.mrf.mxu0  ;;  %v3553_v40 = vpop.f32.mrf.mxu1 }
 0x13e   : > { %4297 = vst [vmem:[#allocation48_spill] sm:$0xff] %v3551_v39  ;;  %4298 = vst [vmem:[#allocation49_spill] sm:$0xff] %v3553_v40 }
 0x13f   : > { %v3555_v30 = vpop.f32.mrf.mxu0  ;;  %v3557_v31 = vpop.f32.mrf.mxu1 }
 0x140   : > { %4299 = vst [vmem:[#allocation50_spill] sm:$0xff] %v3555_v30  ;;  %4300 = vst [vmem:[#allocation51_spill] sm:$0xff] %v3557_v31 }
 0x141   : > { %v3559_v32 = vpop.f32.mrf.mxu0  ;;  %v3561_v33 = vpop.f32.mrf.mxu1 }
 0x142   : > { %4301 = vst [vmem:[#allocation52_spill] sm:$0xff] %v3559_v32  ;;  %4302 = vst [vmem:[#allocation53_spill] sm:$0xff] %v3561_v33 }
 0x143   : > { %v3563_v34 = vpop.f32.mrf.mxu0  ;;  %v3565_v35 = vpop.f32.mrf.mxu1 }
 0x144   : > { %4303 = vst [vmem:[#allocation54_spill] sm:$0xff] %v3563_v34  ;;  %4304 = vst [vmem:[#allocation55_spill] sm:$0xff] %v3565_v35 }
 0x145   : > { %v3567_v36 = vpop.f32.mrf.mxu0  ;;  %v3569_v37 = vpop.f32.mrf.mxu1 }
 0x146   : > { %4305 = vst [vmem:[#allocation56_spill] sm:$0xff] %v3567_v36  ;;  %4306 = vst [vmem:[#allocation57_spill] sm:$0xff] %v3569_v37 }
 0x147   : > { %v3571_v38 = vpop.f32.mrf.mxu0  ;;  %v3573_v39 = vpop.f32.mrf.mxu1 }
 0x148   : > { %4307 = vst [vmem:[#allocation58_spill] sm:$0xff] %v3571_v38  ;;  %4308 = vst [vmem:[#allocation59_spill] sm:$0xff] %v3573_v39 }
 0x149   : > { %v3575_v40 = vpop.f32.mrf.mxu0  ;;  %v3577_v30 = vpop.f32.mrf.mxu1 }
 0x14a   : > { %4309 = vst [vmem:[#allocation60_spill] sm:$0xff] %v3575_v40  ;;  %4310 = vst [vmem:[#allocation61_spill] sm:$0xff] %v3577_v30 }
 0x14b   : > { %v3579_v31 = vpop.f32.mrf.mxu0  ;;  %v3581_v32 = vpop.f32.mrf.mxu1 }
 0x14c   : > { %4311 = vst [vmem:[#allocation62_spill] sm:$0xff] %v3579_v31  ;;  %4312 = vst [vmem:[#allocation63_spill] sm:$0xff] %v3581_v32 }
 0x14d   : > { %v3583_v33 = vpop.f32.mrf.mxu0  ;;  %v3585_v34 = vpop.f32.mrf.mxu1 }
 0x14e   : > { %4313 = vst [vmem:[#allocation64_spill] sm:$0xff] %v3583_v33  ;;  %4314 = vst [vmem:[#allocation65_spill] sm:$0xff] %v3585_v34 }
 0x14f   : > { %v3587_v35 = vpop.f32.mrf.mxu0  ;;  %v3589_v36 = vpop.f32.mrf.mxu1 }
 0x150   : > { %4315 = vst [vmem:[#allocation66_spill] sm:$0xff] %v3587_v35  ;;  %4316 = vst [vmem:[#allocation67_spill] sm:$0xff] %v3589_v36 }
 0x151   : > { %v3591_v37 = vpop.f32.mrf.mxu0  ;;  %v3593_v38 = vpop.f32.mrf.mxu1 }
 0x152   : > { %4317 = vst [vmem:[#allocation68_spill] sm:$0xff] %v3591_v37  ;;  %4318 = vst [vmem:[#allocation69_spill] sm:$0xff] %v3593_v38 }
 0x153   : > { %v3595_v39 = vpop.f32.mrf.mxu0  ;;  %v3597_v40 = vpop.f32.mrf.mxu1 }
 0x154   : > { %4319 = vst [vmem:[#allocation70_spill] sm:$0xff] %v3595_v39  ;;  %4320 = vst [vmem:[#allocation71_spill] sm:$0xff] %v3597_v40 }
 0x155   : > { %v3599_v30 = vpop.f32.mrf.mxu0  ;;  %v3601_v31 = vpop.f32.mrf.mxu1 }
 0x156   : > { %4321 = vst [vmem:[#allocation72_spill] sm:$0xff] %v3599_v30  ;;  %4322 = vst [vmem:[#allocation73_spill] sm:$0xff] %v3601_v31 }
 0x157   : > { %v3603_v32 = vpop.f32.mrf.mxu0  ;;  %v3605_v33 = vpop.f32.mrf.mxu1 }
 0x158   : > { %4323 = vst [vmem:[#allocation74_spill] sm:$0xff] %v3603_v32  ;;  %4324 = vst [vmem:[#allocation75_spill] sm:$0xff] %v3605_v33 }
 0x159   : > { %v3607_v34 = vpop.f32.mrf.mxu0  ;;  %v3609_v35 = vpop.f32.mrf.mxu1 }
 0x15a   : > { %4325 = vst [vmem:[#allocation76_spill] sm:$0xff] %v3607_v34  ;;  %4326 = vst [vmem:[#allocation77_spill] sm:$0xff] %v3609_v35 }
 0x15b   : > { %v3611_v36 = vpop.f32.mrf.mxu0  ;;  %v3613_v37 = vpop.f32.mrf.mxu1 }
 0x15c   : > { %4327 = vst [vmem:[#allocation78_spill] sm:$0xff] %v3611_v36  ;;  %4328 = vst [vmem:[#allocation79_spill] sm:$0xff] %v3613_v37 }
 0x15d   : > { %v3615_v38 = vpop.f32.mrf.mxu0  ;;  %v3617_v39 = vpop.f32.mrf.mxu1 }
 0x15e   : > { %4329 = vst [vmem:[#allocation80_spill] sm:$0xff] %v3615_v38 }
 0x15f   : > { %v3619_v40 = vpop.f32.mrf.mxu0  ;;  %v3621_v30 = vpop.f32.mrf.mxu1 }
 0x161   : > { %v3623_v31 = vpop.f32.mrf.mxu0  ;;  %v3625_v32 = vpop.f32.mrf.mxu1 }
 0x163   : > { %v3627_v33 = vpop.f32.mrf.mxu0  ;;  %v3629_v34 = vpop.f32.mrf.mxu1 }
 0x164   : > { %876 = sbr.rel (%p3055_p4) target bundleno = 425 (0x1a9), region = 40 }
 0x165   : > { %v3631_v35 = vpop.f32.mrf.mxu0  ;;  %v3633_v36 = vpop.f32.mrf.mxu1 }
 0x166   : > { %4330 = vst [vmem:[#allocation81_spill] sm:$0xff] %v3631_v35  ;;  %4331 = vst [vmem:[#allocation82_spill] sm:$0xff] %v3633_v36 }
 0x167   : > { %v3635_v37 = vpop.f32.mrf.mxu0  ;;  %v3637_v38 = vpop.f32.mrf.mxu1 }
 0x168   : > { %4332 = vst [vmem:[#allocation83_spill] sm:$0xff] %v3635_v37  ;;  %4333 = vst [vmem:[#allocation84_spill] sm:$0xff] %v3637_v38 }
 0x169   : > { %877 = vst [vmem:[#allocation2 + $0x2b0] sm:$0xff] %v3383_v41  ;;  %878 = vst [vmem:[#allocation2 + $0x3b0] sm:$0xff] %v3387_v43 }
 0x16a   : > { %879 = vst [vmem:[#allocation2 + $0xd8] sm:$0xff] %v3385_v42  ;;  %880 = vst [vmem:[#allocation2 + $0x18] sm:$0xff] %v3389_v44 }
 0x16b   : > { %881 = vst [vmem:[#allocation2 + $0x50] sm:$0xff] %v3391_v45  ;;  %882 = vst [vmem:[#allocation2 + $0x368] sm:$0xff] %v3395_v47 }
 0x16c   : > { %883 = vst [vmem:[#allocation2 + $0x330] sm:$0xff] %v3393_v46  ;;  %884 = vst [vmem:[#allocation2 + $0x48] sm:$0xff] %v3397_v48 }
 0x16d   : > { %885 = vst [vmem:[#allocation2 + $0x380] sm:$0xff] %v3399_v49  ;;  %886 = vst [vmem:[#allocation2 + $0x110] sm:$0xff] %v3403_v51 }
 0x16e   : > { %887 = vst [vmem:[#allocation2 + $0x118] sm:$0xff] %v3401_v50  ;;  %888 = vst [vmem:[#allocation2 + $0x98] sm:$0xff] %v3405_v52 }
 0x16f   : > { %889 = vst [vmem:[#allocation2 + $0x320] sm:$0xff] %v3407_v53  ;;  %890 = vst [vmem:[#allocation2 + $0x150] sm:$0xff] %v3411_v55 }
 0x170   : > { %891 = vst [vmem:[#allocation2 + $0x108] sm:$0xff] %v3409_v54  ;;  %892 = vst [vmem:[#allocation2 + $0x60] sm:$0xff] %v3413_v56 }
 0x171   : > { %893 = vst [vmem:[#allocation2 + $0x2e0] sm:$0xff] %v3415_v57  ;;  %894 = vst [vmem:[#allocation2 + $0x388] sm:$0xff] %v3419_v59 }
 0x172   : > { %895 = vst [vmem:[#allocation2 + $0x338] sm:$0xff] %v3417_v58  ;;  %896 = vst [vmem:[#allocation2 + $0x340] sm:$0xff] %v3421_v60 }
 0x173   : > { %897 = vst [vmem:[#allocation2 + $0x80] sm:$0xff] %v3423_v61  ;;  %898 = vst [vmem:[#allocation2 + $0x1a8] sm:$0xff] %v3427_v63 }
 0x174   : > { %899 = vst [vmem:[#allocation2 + $0x1b8] sm:$0xff] %v3425_v62  ;;  %900 = vst [vmem:[#allocation2 + $0x168] sm:$0xff] %v3429_v0 }
 0x175   : > { %901 = vst [vmem:[#allocation2 + $0x3e8] sm:$0xff] %v3431_v1  ;;  %902 = vst [vmem:[#allocation2 + $0x2f8] sm:$0xff] %v3435_v3 }
 0x176   : > { %903 = vst [vmem:[#allocation2 + $0x290] sm:$0xff] %v3433_v2  ;;  %904 = vst [vmem:[#allocation2 + $0x28] sm:$0xff] %v3437_v4 }
 0x177   : > { %905 = vst [vmem:[#allocation2 + $0x138] sm:$0xff] %v3439_v5  ;;  %906 = vst [vmem:[#allocation2 + $0xc0] sm:$0xff] %v3443_v7 }
 0x178   : > { %907 = vst [vmem:[#allocation2 + $0x1c0] sm:$0xff] %v3441_v6  ;;  %908 = vst [vmem:[#allocation2 + $0x280] sm:$0xff] %v3445_v8 }
 0x179   : > { %909 = vst [vmem:[#allocation2 + $0x100] sm:$0xff] %v3447_v9  ;;  %910 = vst [vmem:[#allocation2 + $0x3c0] sm:$0xff] %v3451_v11 }
 0x17a   : > { %911 = vst [vmem:[#allocation2 + $0x158] sm:$0xff] %v3449_v10  ;;  %912 = vst [vmem:[#allocation2 + $0x3e0] sm:$0xff] %v3453_v12 }
 0x17b   : > { %913 = vst [vmem:[#allocation2 + $0x218] sm:$0xff] %v3455_v13  ;;  %914 = vst [vmem:[#allocation2 + $0x3f8] sm:$0xff] %v3459_v15 }
 0x17c   : > { %915 = vst [vmem:[#allocation2 + $0x8] sm:$0xff] %v3457_v14  ;;  %916 = vst [vmem:[#allocation2 + $0x128] sm:$0xff] %v3461_v16 }
 0x17d   : > { %917 = vst [vmem:[#allocation2 + $0x2a0] sm:$0xff] %v3463_v17  ;;  %918 = vst [vmem:[#allocation2 + $0x3f0] sm:$0xff] %v3467_v19 }
 0x17e   : > { %919 = vst [vmem:[#allocation2 + $0xa0] sm:$0xff] %v3465_v18  ;;  %920 = vst [vmem:[#allocation2 + $0x2c0] sm:$0xff] %v3469_v20  ;;  %v4334_v18 = vld [vmem:[#allocation18_spill] sm:$0xff]  ;;  %v4335_v20 = vld [vmem:[#allocation17_spill] sm:$0xff] }
 0x17f   : > { %921 = vst [vmem:[#allocation2 + $0xb0] sm:$0xff] %v3471_v21  ;;  %922 = vst [vmem:[#allocation2 + $0x1e0] sm:$0xff] %v3475_v23  ;;  %v4336_v21 = vld [vmem:[#allocation19_spill] sm:$0xff]  ;;  %v4337_v23 = vld [vmem:[#allocation20_spill] sm:$0xff] }
 0x180   : > { %923 = vst [vmem:[#allocation2 + $0x1f0] sm:$0xff] %v3473_v22  ;;  %924 = vst [vmem:[#allocation2 + $0x10] sm:$0xff] %v3477_v24  ;;  %v4338_v22 = vld [vmem:[#allocation22_spill] sm:$0xff]  ;;  %v4339_v24 = vld [vmem:[#allocation21_spill] sm:$0xff] }
 0x181   : > { %925 = vst [vmem:[#allocation2 + $0x230] sm:$0xff] %v3479_v25  ;;  %926 = vst [vmem:[#allocation2 + $0x240] sm:$0xff] %v3483_v27  ;;  %v4340_v25 = vld [vmem:[#allocation23_spill] sm:$0xff]  ;;  %v4341_v27 = vld [vmem:[#allocation24_spill] sm:$0xff] }
 0x182   : > { %927 = vst [vmem:[#allocation2 + $0x90] sm:$0xff] %v3481_v26  ;;  %928 = vst [vmem:[#allocation2 + $0x3a0] sm:$0xff] %v3485_v28  ;;  %v4342_v26 = vld [vmem:[#allocation26_spill] sm:$0xff]  ;;  %v4343_v28 = vld [vmem:[#allocation25_spill] sm:$0xff] }
 0x183   : > { %929 = vst [vmem:[#allocation2 + $0x208] sm:$0xff] %v3487_v29  ;;  %930 = vst [vmem:[#allocation2 + $0xd0] sm:$0xff] %v4334_v18  ;;  %v4344_v29 = vld [vmem:[#allocation27_spill] sm:$0xff]  ;;  %v4345_v18 = vld [vmem:[#allocation28_spill] sm:$0xff] }
 0x184   : > { %931 = vst [vmem:[#allocation2 + $0x88] sm:$0xff] %v4335_v20  ;;  %932 = vst [vmem:[#allocation2 + $0x2f0] sm:$0xff] %v4336_v21  ;;  %v4346_v20 = vld [vmem:[#allocation30_spill] sm:$0xff]  ;;  %v4347_v21 = vld [vmem:[#allocation29_spill] sm:$0xff] }
 0x185   : > { %933 = vst [vmem:[#allocation2 + $0x358] sm:$0xff] %v4337_v23  ;;  %934 = vst [vmem:[#allocation2 + $0x268] sm:$0xff] %v4338_v22  ;;  %v4348_v23 = vld [vmem:[#allocation31_spill] sm:$0xff]  ;;  %v4349_v22 = vld [vmem:[#allocation32_spill] sm:$0xff] }
 0x186   : > { %935 = vst [vmem:[#allocation2 + $0x350] sm:$0xff] %v4339_v24  ;;  %936 = vst [vmem:[#allocation2 + $0x188] sm:$0xff] %v4340_v25  ;;  %v4350_v24 = vld [vmem:[#allocation34_spill] sm:$0xff]  ;;  %v4351_v25 = vld [vmem:[#allocation33_spill] sm:$0xff] }
 0x187   : > { %937 = vst [vmem:[#allocation2 + $0x1d8] sm:$0xff] %v4341_v27  ;;  %938 = vst [vmem:[#allocation2 + $0x30] sm:$0xff] %v4342_v26  ;;  %v4352_v27 = vld [vmem:[#allocation35_spill] sm:$0xff]  ;;  %v4353_v26 = vld [vmem:[#allocation36_spill] sm:$0xff] }
 0x188   : > { %939 = vst [vmem:[#allocation2 + $0x140] sm:$0xff] %v4343_v28  ;;  %940 = vst [vmem:[#allocation2 + $0x2a8] sm:$0xff] %v4344_v29  ;;  %v4354_v28 = vld [vmem:[#allocation38_spill] sm:$0xff]  ;;  %v4355_v29 = vld [vmem:[#allocation37_spill] sm:$0xff] }
 0x189   : > { %941 = vst [vmem:[#allocation2 + $0x130] sm:$0xff] %v4345_v18  ;;  %942 = vst [vmem:[#allocation2 + $0x200] sm:$0xff] %v4346_v20  ;;  %v4356_v18 = vld [vmem:[#allocation39_spill] sm:$0xff]  ;;  %v4357_v20 = vld [vmem:[#allocation40_spill] sm:$0xff] }
 0x18a   : > { %943 = vst [vmem:[#allocation2 + $0x318] sm:$0xff] %v4347_v21  ;;  %944 = vst [vmem:[#allocation2 + $0x220] sm:$0xff] %v4348_v23  ;;  %v4358_v21 = vld [vmem:[#allocation42_spill] sm:$0xff]  ;;  %v4359_v23 = vld [vmem:[#allocation41_spill] sm:$0xff] }
 0x18b   : > { %945 = vst [vmem:[#allocation2 + $0x70] sm:$0xff] %v4349_v22  ;;  %946 = vst [vmem:[#allocation2 + $0x300] sm:$0xff] %v4350_v24  ;;  %v4360_v22 = vld [vmem:[#allocation43_spill] sm:$0xff]  ;;  %v4361_v24 = vld [vmem:[#allocation44_spill] sm:$0xff] }
 0x18c   : > { %947 = vst [vmem:[#allocation2 + $0xe0] sm:$0xff] %v4351_v25  ;;  %948 = vst [vmem:[#allocation2 + $0x178] sm:$0xff] %v4352_v27  ;;  %v4362_v25 = vld [vmem:[#allocation46_spill] sm:$0xff]  ;;  %v4363_v27 = vld [vmem:[#allocation45_spill] sm:$0xff] }
 0x18d   : > { %949 = vst [vmem:[#allocation2 + $0x328] sm:$0xff] %v4353_v26  ;;  %950 = vst [vmem:[#allocation2 + $0x260] sm:$0xff] %v4354_v28  ;;  %v4364_v26 = vld [vmem:[#allocation47_spill] sm:$0xff]  ;;  %v4365_v28 = vld [vmem:[#allocation48_spill] sm:$0xff] }
 0x18e   : > { %951 = vst [vmem:[#allocation2 + $0x3b8] sm:$0xff] %v4355_v29  ;;  %952 = vst [vmem:[#allocation2 + $0x2b8] sm:$0xff] %v4356_v18  ;;  %v4366_v29 = vld [vmem:[#allocation50_spill] sm:$0xff]  ;;  %v4367_v18 = vld [vmem:[#allocation49_spill] sm:$0xff] }
 0x18f   : > { %953 = vst [vmem:[#allocation2 + $0x248] sm:$0xff] %v4357_v20  ;;  %954 = vst [vmem:[#allocation2 + $0x40] sm:$0xff] %v4358_v21  ;;  %v4368_v20 = vld [vmem:[#allocation51_spill] sm:$0xff]  ;;  %v4369_v21 = vld [vmem:[#allocation52_spill] sm:$0xff] }
 0x190   : > { %955 = vst [vmem:[#allocation2 + $0x20] sm:$0xff] %v4359_v23  ;;  %956 = vst [vmem:[#allocation2 + $0xe8] sm:$0xff] %v4360_v22  ;;  %v4370_v23 = vld [vmem:[#allocation54_spill] sm:$0xff]  ;;  %v4371_v22 = vld [vmem:[#allocation53_spill] sm:$0xff] }
 0x191   : > { %957 = vst [vmem:[#allocation2 + $0x288] sm:$0xff] %v4361_v24  ;;  %958 = vst [vmem:[#allocation2 + $0x3a8] sm:$0xff] %v4362_v25  ;;  %v4372_v24 = vld [vmem:[#allocation55_spill] sm:$0xff]  ;;  %v4373_v25 = vld [vmem:[#allocation56_spill] sm:$0xff] }
 0x192   : > { %959 = vst [vmem:[#allocation2 + $0x3c8] sm:$0xff] %v4363_v27  ;;  %960 = vst [vmem:[#allocation2 + $0x160] sm:$0xff] %v4364_v26  ;;  %v4374_v27 = vld [vmem:[#allocation58_spill] sm:$0xff]  ;;  %v4375_v26 = vld [vmem:[#allocation57_spill] sm:$0xff] }
 0x193   : > { %961 = vst [vmem:[#allocation2 + $0x2c8] sm:$0xff] %v4365_v28  ;;  %962 = vst [vmem:[#allocation2 + $0x210] sm:$0xff] %v4366_v29  ;;  %v4376_v28 = vld [vmem:[#allocation59_spill] sm:$0xff]  ;;  %v4377_v29 = vld [vmem:[#allocation60_spill] sm:$0xff] }
 0x194   : > { %963 = vst [vmem:[#allocation2 + $0x3d8] sm:$0xff] %v4367_v18  ;;  %964 = vst [vmem:[#allocation2 + $0x1e8] sm:$0xff] %v4368_v20  ;;  %v4378_v18 = vld [vmem:[#allocation62_spill] sm:$0xff]  ;;  %v4379_v20 = vld [vmem:[#allocation61_spill] sm:$0xff] }
 0x195   : > { %965 = vst [vmem:[#allocation2 + $0x1b0] sm:$0xff] %v4369_v21  ;;  %966 = vst [vmem:[#allocation2 + $0x1c8] sm:$0xff] %v4370_v23  ;;  %v4380_v21 = vld [vmem:[#allocation63_spill] sm:$0xff]  ;;  %v4381_v23 = vld [vmem:[#allocation64_spill] sm:$0xff] }
 0x196   : > { %967 = vst [vmem:[#allocation2 + $0x2d0] sm:$0xff] %v4371_v22  ;;  %968 = vst [vmem:[#allocation2 + $0x1d0] sm:$0xff] %v4372_v24  ;;  %v4382_v22 = vld [vmem:[#allocation66_spill] sm:$0xff]  ;;  %v4383_v24 = vld [vmem:[#allocation65_spill] sm:$0xff] }
 0x197   : > { %969 = vst [vmem:[#allocation2 + $0x58] sm:$0xff] %v4373_v25  ;;  %970 = vst [vmem:[#allocation2 + $0x120] sm:$0xff] %v4374_v27  ;;  %v4384_v25 = vld [vmem:[#allocation67_spill] sm:$0xff]  ;;  %v4385_v27 = vld [vmem:[#allocation68_spill] sm:$0xff] }
 0x198   : > { %971 = vst [vmem:[#allocation2 + $0x198] sm:$0xff] %v4375_v26  ;;  %972 = vst [vmem:[#allocation2 + $0x2e8] sm:$0xff] %v4376_v28  ;;  %v4386_v26 = vld [vmem:[#allocation70_spill] sm:$0xff]  ;;  %v4387_v28 = vld [vmem:[#allocation69_spill] sm:$0xff] }
 0x199   : > { %973 = vst [vmem:[#allocation2 + $0x1f8] sm:$0xff] %v4377_v29  ;;  %974 = vst [vmem:[#allocation2 + $0x238] sm:$0xff] %v4378_v18  ;;  %v4388_v29 = vld [vmem:[#allocation71_spill] sm:$0xff]  ;;  %v4389_v18 = vld [vmem:[#allocation72_spill] sm:$0xff] }
 0x19a   : > { %975 = vst [vmem:[#allocation2 + $0x398] sm:$0xff] %v4379_v20  ;;  %976 = vst [vmem:[#allocation2 + $0x390] sm:$0xff] %v4380_v21  ;;  %v4390_v20 = vld [vmem:[#allocation74_spill] sm:$0xff]  ;;  %v4391_v21 = vld [vmem:[#allocation73_spill] sm:$0xff] }
 0x19b   : > { %977 = vst [vmem:[#allocation2 + $0x1a0] sm:$0xff] %v4381_v23  ;;  %978 = vst [vmem:[#allocation2 + $0xa8] sm:$0xff] %v4382_v22  ;;  %v4392_v23 = vld [vmem:[#allocation75_spill] sm:$0xff]  ;;  %v4393_v22 = vld [vmem:[#allocation76_spill] sm:$0xff] }
 0x19c   : > { %979 = vst [vmem:[#allocation2 + $0x258] sm:$0xff] %v4383_v24  ;;  %980 = vst [vmem:[#allocation2 + $0x2d8] sm:$0xff] %v4384_v25  ;;  %v4394_v24 = vld [vmem:[#allocation78_spill] sm:$0xff]  ;;  %v4395_v25 = vld [vmem:[#allocation77_spill] sm:$0xff] }
 0x19d   : > { %981 = vst [vmem:[#allocation2 + $0xf0] sm:$0xff] %v4385_v27  ;;  %982 = vst [vmem:[#allocation2 + $0x180] sm:$0xff] %v4386_v26  ;;  %v4396_v27 = vld [vmem:[#allocation79_spill] sm:$0xff]  ;;  %v4397_v26 = vld [vmem:[#allocation80_spill] sm:$0xff] }
 0x19e   : > { %983 = vst [vmem:[#allocation2 + $0x170] sm:$0xff] %v4387_v28  ;;  %984 = vst [vmem:[#allocation2 + $0x3d0] sm:$0xff] %v4388_v29 }
 0x19f   : > { %985 = vst [vmem:[#allocation2 + $0x250] sm:$0xff] %v4389_v18  ;;  %986 = vst [vmem:[#allocation2 + $0x378] sm:$0xff] %v4390_v20 }
 0x1a0   : > { %987 = vst [vmem:[#allocation2 + $0xb8] sm:$0xff] %v4391_v21  ;;  %988 = vst [vmem:[#allocation2 + $0x38] sm:$0xff] %v4392_v23 }
 0x1a1   : > { %989 = vst [vmem:[#allocation2 + $0x78] sm:$0xff] %v4393_v22  ;;  %990 = vst [vmem:[#allocation2 + $0x308] sm:$0xff] %v4394_v24 }
 0x1a2   : > { %991 = vst [vmem:[#allocation2 + $0x370] sm:$0xff] %v4395_v25  ;;  %992 = vst [vmem:[#allocation2 + $0xc8] sm:$0xff] %v4396_v27 }
 0x1a3   : > { %993 = vst [vmem:[#allocation2 + $0x278] sm:$0xff] %v4397_v26  ;;  %994 = vst [vmem:[#allocation2 + $0x360] sm:$0xff] %v3619_v40 }
 0x1a4   : > { %995 = vst [vmem:[#allocation2 + $0x228] sm:$0xff] %v3617_v39  ;;  %996 = vst [vmem:[#allocation2 + $0x348] sm:$0xff] %v3621_v30 }
 0x1a5   : > { %997 = vst [vmem:[#allocation2 + $0x148] sm:$0xff] %v3623_v31  ;;  %998 = vst [vmem:[#allocation2 + $0xf8] sm:$0xff] %v3627_v33 }
 0x1a6   : > { %999 = vst [vmem:[#allocation2 + $0x68] sm:$0xff] %v3625_v32  ;;  %1000 = vst [vmem:[#allocation2] sm:$0xff] %v3629_v34 }
 0x1a7   : > { %1001 = vst [vmem:[#allocation2 + $0x298] sm:$0xff] %v3631_v35  ;;  %1002 = vst [vmem:[#allocation2 + $0x270] sm:$0xff] %v3635_v37 }
 0x1a8   : > { %1003 = vst [vmem:[#allocation2 + $0x310] sm:$0xff] %v3633_v36  ;;  %1004 = vst [vmem:[#allocation2 + $0x190] sm:$0xff] %v3637_v38 }
 0x1a9 PF: > { %p3056_p5 = scmp.le.s32.totalorder %s3269_s16, 0 }
 0x1ab   : > { %1008 = sbr.rel (%p3056_p5) target bundleno = 521 (0x209), region = 44 }
 0x1b0   : > { %v1009_v28 = vld [vmem:[#allocation2 + $0x2b0] sm:$0xff]  ;;  %v1011_v18 = vld [vmem:[#allocation2 + $0xd8] sm:$0xff]  ;;  %v1014_v25 = vld [vmem:[#allocation2 + $0x368] sm:$0xff] }
 0x1b1   : > { %v1010_v29 = vld [vmem:[#allocation2 + $0x3b0] sm:$0xff]  ;;  %v1137_v20 = vadd.f32 %v1009_v28, %v3383_v41  ;;  %v1139_v23 = vadd.f32 %v1011_v18, %v3385_v42  ;;  %v1012_v22 = vld [vmem:[#allocation2 + $0x18] sm:$0xff]  ;;  %v1142_v38 = vadd.f32 %v1014_v25, %v3395_v47  ;;  %v1016_v37 = vld [vmem:[#allocation2 + $0x48] sm:$0xff] }
 0x1b2   : > { %v1138_v21 = vadd.f32 %v1010_v29, %v3387_v43  ;;  %v1013_v24 = vld [vmem:[#allocation2 + $0x50] sm:$0xff]  ;;  %v1140_v27 = vadd.f32 %v1012_v22, %v3389_v44  ;;  %v1017_v35 = vld [vmem:[#allocation2 + $0x380] sm:$0xff]  ;;  %v1144_v43 = vadd.f32 %v1016_v37, %v3397_v48  ;;  %v1019_v29 = vld [vmem:[#allocation2 + $0x118] sm:$0xff] }
 0x1b3   : > { %v1141_v26 = vadd.f32 %v1013_v24, %v3391_v45  ;;  %v1015_v36 = vld [vmem:[#allocation2 + $0x330] sm:$0xff]  ;;  %1265 = vst [vmem:[#allocation2 + $0x2b0] sm:$0xff] %v1137_v20  ;;  %1267 = vst [vmem:[#allocation2 + $0xd8] sm:$0xff] %v1139_v23  ;;  %v1145_v42 = vadd.f32 %v1017_v35, %v3399_v49  ;;  %v1020_v18 = vld [vmem:[#allocation2 + $0x98] sm:$0xff]  ;;  %v1147_v45 = vadd.f32 %v1019_v29, %v3401_v50 }
 0x1b4   : > { %1266 = vst [vmem:[#allocation2 + $0x3b0] sm:$0xff] %v1138_v21  ;;  %v1143_v41 = vadd.f32 %v1015_v36, %v3393_v46  ;;  %v1018_v28 = vld [vmem:[#allocation2 + $0x110] sm:$0xff]  ;;  %1268 = vst [vmem:[#allocation2 + $0x18] sm:$0xff] %v1140_v27  ;;  %v1148_v47 = vadd.f32 %v1020_v18, %v3405_v52  ;;  %v1021_v20 = vld [vmem:[#allocation2 + $0x320] sm:$0xff] }
 0x1b5   : > { %1269 = vst [vmem:[#allocation2 + $0x50] sm:$0xff] %v1141_v26  ;;  %1270 = vst [vmem:[#allocation2 + $0x368] sm:$0xff] %v1142_v38  ;;  %v1146_v44 = vadd.f32 %v1018_v28, %v3403_v51  ;;  %v1022_v21 = vld [vmem:[#allocation2 + $0x150] sm:$0xff]  ;;  %v1023_v23 = vld [vmem:[#allocation2 + $0x108] sm:$0xff]  ;;  %v1149_v46 = vadd.f32 %v1021_v20, %v3407_v53 }
 0x1b6   : > { %1271 = vst [vmem:[#allocation2 + $0x330] sm:$0xff] %v1143_v41  ;;  %1272 = vst [vmem:[#allocation2 + $0x48] sm:$0xff] %v1144_v43  ;;  %v1150_v48 = vadd.f32 %v1022_v21, %v3411_v55  ;;  %v1151_v49 = vadd.f32 %v1023_v23, %v3409_v54  ;;  %v1024_v35 = vld [vmem:[#allocation2 + $0x60] sm:$0xff]  ;;  %v1026_v37 = vld [vmem:[#allocation2 + $0x388] sm:$0xff] }
 0x1b7   : > { %1273 = vst [vmem:[#allocation2 + $0x380] sm:$0xff] %v1145_v42  ;;  %v1025_v36 = vld [vmem:[#allocation2 + $0x2e0] sm:$0xff]  ;;  %1274 = vst [vmem:[#allocation2 + $0x110] sm:$0xff] %v1146_v44  ;;  %v1152_v50 = vadd.f32 %v1024_v35, %v3413_v56  ;;  %v1154_v52 = vadd.f32 %v1026_v37, %v3419_v59  ;;  %v1027_v38 = vld [vmem:[#allocation2 + $0x338] sm:$0xff] }
 0x1b8   : > { %1275 = vst [vmem:[#allocation2 + $0x118] sm:$0xff] %v1147_v45  ;;  %1276 = vst [vmem:[#allocation2 + $0x98] sm:$0xff] %v1148_v47  ;;  %v1153_v51 = vadd.f32 %v1025_v36, %v3415_v57  ;;  %v1028_v22 = vld [vmem:[#allocation2 + $0x340] sm:$0xff]  ;;  %v1155_v53 = vadd.f32 %v1027_v38, %v3417_v58  ;;  %v1030_v25 = vld [vmem:[#allocation2 + $0x1a8] sm:$0xff] }
 0x1b9   : > { %v1029_v24 = vld [vmem:[#allocation2 + $0x80] sm:$0xff]  ;;  %1277 = vst [vmem:[#allocation2 + $0x320] sm:$0xff] %v1149_v46  ;;  %1278 = vst [vmem:[#allocation2 + $0x150] sm:$0xff] %v1150_v48  ;;  %v1156_v54 = vadd.f32 %v1028_v22, %v3421_v60  ;;  %v1031_v27 = vld [vmem:[#allocation2 + $0x1b8] sm:$0xff]  ;;  %v1158_v56 = vadd.f32 %v1030_v25, %v3427_v63 }
 0x1ba   : > { %1279 = vst [vmem:[#allocation2 + $0x108] sm:$0xff] %v1151_v49  ;;  %v1157_v55 = vadd.f32 %v1029_v24, %v3423_v61  ;;  %v1032_v26 = vld [vmem:[#allocation2 + $0x168] sm:$0xff]  ;;  %1280 = vst [vmem:[#allocation2 + $0x60] sm:$0xff] %v1152_v50  ;;  %v1159_v57 = vadd.f32 %v1031_v27, %v3425_v62  ;;  %v1034_v43 = vld [vmem:[#allocation2 + $0x2f8] sm:$0xff] }
 0x1bb   : > { %1281 = vst [vmem:[#allocation2 + $0x2e0] sm:$0xff] %v1153_v51  ;;  %1282 = vst [vmem:[#allocation2 + $0x388] sm:$0xff] %v1154_v52  ;;  %v1160_v59 = vadd.f32 %v1032_v26, %v3429_v0  ;;  %v1033_v41 = vld [vmem:[#allocation2 + $0x3e8] sm:$0xff]  ;;  %v1035_v42 = vld [vmem:[#allocation2 + $0x290] sm:$0xff]  ;;  %v1162_v60 = vadd.f32 %v1034_v43, %v3435_v3 }
 0x1bc   : > { %1283 = vst [vmem:[#allocation2 + $0x338] sm:$0xff] %v1155_v53  ;;  %1284 = vst [vmem:[#allocation2 + $0x340] sm:$0xff] %v1156_v54  ;;  %v1161_v58 = vadd.f32 %v1033_v41, %v3431_v1  ;;  %v1163_v61 = vadd.f32 %v1035_v42, %v3433_v2  ;;  %v1036_v28 = vld [vmem:[#allocation2 + $0x28] sm:$0xff]  ;;  %v1037_v29 = vld [vmem:[#allocation2 + $0x138] sm:$0xff] }
 0x1bd   : > { %1285 = vst [vmem:[#allocation2 + $0x80] sm:$0xff] %v1157_v55  ;;  %v1038_v18 = vld [vmem:[#allocation2 + $0xc0] sm:$0xff]  ;;  %1286 = vst [vmem:[#allocation2 + $0x1a8] sm:$0xff] %v1158_v56  ;;  %v1164_v62 = vadd.f32 %v1036_v28, %v3437_v4  ;;  %v1165_v63 = vadd.f32 %v1037_v29, %v3439_v5  ;;  %v1043_v21 = vld [vmem:[#allocation2 + $0x158] sm:$0xff] }
 0x1be   : > { %1287 = vst [vmem:[#allocation2 + $0x1b8] sm:$0xff] %v1159_v57  ;;  %1288 = vst [vmem:[#allocation2 + $0x168] sm:$0xff] %v1160_v59  ;;  %v1166_v0 = vadd.f32 %v1038_v18, %v3443_v7  ;;  %v1039_v44 = vld [vmem:[#allocation2 + $0x1c0] sm:$0xff]  ;;  %v1171_v5 = vadd.f32 %v1043_v21, %v3449_v10  ;;  %v1045_v46 = vld [vmem:[#allocation2 + $0x218] sm:$0xff] }
 0x1bf   : > { %v1040_v45 = vld [vmem:[#allocation2 + $0x280] sm:$0xff]  ;;  %1289 = vst [vmem:[#allocation2 + $0x3e8] sm:$0xff] %v1161_v58  ;;  %1290 = vst [vmem:[#allocation2 + $0x2f8] sm:$0xff] %v1162_v60  ;;  %v1167_v1 = vadd.f32 %v1039_v44, %v3441_v6  ;;  %v1046_v48 = vld [vmem:[#allocation2 + $0x3f8] sm:$0xff]  ;;  %v1173_v6 = vadd.f32 %v1045_v46, %v3455_v13 }
 0x1c0   : > { %v1041_v47 = vld [vmem:[#allocation2 + $0x100] sm:$0xff]  ;;  %1291 = vst [vmem:[#allocation2 + $0x290] sm:$0xff] %v1163_v61  ;;  %v1168_v2 = vadd.f32 %v1040_v45, %v3445_v8  ;;  %1292 = vst [vmem:[#allocation2 + $0x28] sm:$0xff] %v1164_v62  ;;  %v1047_v49 = vld [vmem:[#allocation2 + $0x8] sm:$0xff]  ;;  %v1174_v8 = vadd.f32 %v1046_v48, %v3459_v15 }
 0x1c1   : > { %v1169_v3 = vadd.f32 %v1041_v47, %v3447_v9  ;;  %v1042_v20 = vld [vmem:[#allocation2 + $0x3c0] sm:$0xff]  ;;  %1293 = vst [vmem:[#allocation2 + $0x138] sm:$0xff] %v1165_v63  ;;  %1294 = vst [vmem:[#allocation2 + $0xc0] sm:$0xff] %v1166_v0  ;;  %v1175_v9 = vadd.f32 %v1047_v49, %v3457_v14  ;;  %v1048_v35 = vld [vmem:[#allocation2 + $0x128] sm:$0xff] }
 0x1c2   : > { %v1044_v23 = vld [vmem:[#allocation2 + $0x3e0] sm:$0xff]  ;;  %v1170_v4 = vadd.f32 %v1042_v20, %v3451_v11  ;;  %1295 = vst [vmem:[#allocation2 + $0x1c0] sm:$0xff] %v1167_v1  ;;  %1296 = vst [vmem:[#allocation2 + $0x280] sm:$0xff] %v1168_v2  ;;  %v1050_v37 = vld [vmem:[#allocation2 + $0x3f0] sm:$0xff]  ;;  %v1176_v10 = vadd.f32 %v1048_v35, %v3461_v16 }
 0x1c3   : > { %v1172_v7 = vadd.f32 %v1044_v23, %v3453_v12  ;;  %1297 = vst [vmem:[#allocation2 + $0x100] sm:$0xff] %v1169_v3  ;;  %v1049_v36 = vld [vmem:[#allocation2 + $0x2a0] sm:$0xff]  ;;  %1299 = vst [vmem:[#allocation2 + $0x158] sm:$0xff] %v1171_v5  ;;  %v1178_v12 = vadd.f32 %v1050_v37, %v3467_v19  ;;  %v1053_v52 = vld [vmem:[#allocation2 + $0xb0] sm:$0xff] }
 0x1c4   : > { %1298 = vst [vmem:[#allocation2 + $0x3c0] sm:$0xff] %v1170_v4  ;;  %v1177_v11 = vadd.f32 %v1049_v36, %v3463_v17  ;;  %v1051_v50 = vld [vmem:[#allocation2 + $0xa0] sm:$0xff]  ;;  %1301 = vst [vmem:[#allocation2 + $0x218] sm:$0xff] %v1173_v6  ;;  %v4399_v15 = vld [vmem:[#allocation7_spill] sm:$0xff] }
 0x1c5   : > { %1300 = vst [vmem:[#allocation2 + $0x3e0] sm:$0xff] %v1172_v7  ;;  %v1052_v51 = vld [vmem:[#allocation2 + $0x2c0] sm:$0xff]  ;;  %1302 = vst [vmem:[#allocation2 + $0x3f8] sm:$0xff] %v1174_v8  ;;  %v4400_v22 = vld [vmem:[#allocation8_spill] sm:$0xff] }
 0x1c6   : > { %1303 = vst [vmem:[#allocation2 + $0x8] sm:$0xff] %v1175_v9  ;;  %v4398_v13 = vld [vmem:[#allocation6_spill] sm:$0xff]  ;;  %v1180_v38 = vadd.f32 %v1052_v51, %v4399_v15  ;;  %v1181_v24 = vadd.f32 %v1053_v52, %v4400_v22  ;;  %v1055_v54 = vld [vmem:[#allocation2 + $0x1f0] sm:$0xff]  ;;  %1304 = vst [vmem:[#allocation2 + $0x128] sm:$0xff] %v1176_v10 }
 0x1c7   : > { %v1179_v14 = vadd.f32 %v1051_v50, %v4398_v13  ;;  %v1054_v53 = vld [vmem:[#allocation2 + $0x1e0] sm:$0xff]  ;;  %v1056_v55 = vld [vmem:[#allocation2 + $0x10] sm:$0xff]  ;;  %1305 = vst [vmem:[#allocation2 + $0x2a0] sm:$0xff] %v1177_v11  ;;  %1306 = vst [vmem:[#allocation2 + $0x3f0] sm:$0xff] %v1178_v12 }
 0x1c8   : > { %v4401_v16 = vld [vmem:[#allocation10_spill] sm:$0xff]  ;;  %v4402_v19 = vld [vmem:[#allocation9_spill] sm:$0xff]  ;;  %v4403_v27 = vld [vmem:[#allocation11_spill] sm:$0xff]  ;;  %1308 = vst [vmem:[#allocation2 + $0x2c0] sm:$0xff] %v1180_v38 }
 0x1c9   : > { %v1182_v17 = vadd.f32 %v1054_v53, %v4401_v16  ;;  %v1183_v25 = vadd.f32 %v1055_v54, %v4402_v19  ;;  %v1184_v26 = vadd.f32 %v1056_v55, %v4403_v27  ;;  %v1057_v56 = vld [vmem:[#allocation2 + $0x230] sm:$0xff]  ;;  %v1058_v57 = vld [vmem:[#allocation2 + $0x240] sm:$0xff]  ;;  %1307 = vst [vmem:[#allocation2 + $0xa0] sm:$0xff] %v1179_v14  ;;  %1309 = vst [vmem:[#allocation2 + $0xb0] sm:$0xff] %v1181_v24 }
 0x1ca   : > { %v1059_v59 = vld [vmem:[#allocation2 + $0x90] sm:$0xff]  ;;  %v4405_v42 = vld [vmem:[#allocation14_spill] sm:$0xff]  ;;  %v4406_v60 = vld [vmem:[#allocation13_spill] sm:$0xff] }
 0x1cb   : > { %v4404_v41 = vld [vmem:[#allocation12_spill] sm:$0xff]  ;;  %v1186_v58 = vadd.f32 %v1058_v57, %v4405_v42  ;;  %v1187_v61 = vadd.f32 %v1059_v59, %v4406_v60  ;;  %v1060_v28 = vld [vmem:[#allocation2 + $0x3a0] sm:$0xff]  ;;  %v1061_v29 = vld [vmem:[#allocation2 + $0x208] sm:$0xff]  ;;  %1310 = vst [vmem:[#allocation2 + $0x1e0] sm:$0xff] %v1182_v17 }
 0x1cc   : > { %v1185_v43 = vadd.f32 %v1057_v56, %v4404_v41  ;;  %v1062_v18 = vld [vmem:[#allocation2 + $0xd0] sm:$0xff]  ;;  %1311 = vst [vmem:[#allocation2 + $0x1f0] sm:$0xff] %v1183_v25  ;;  %1312 = vst [vmem:[#allocation2 + $0x10] sm:$0xff] %v1184_v26  ;;  %v4409_v45 = vld [vmem:[#allocation18_spill] sm:$0xff] }
 0x1cd   : > { %v4407_v62 = vld [vmem:[#allocation15_spill] sm:$0xff]  ;;  %v4408_v0 = vld [vmem:[#allocation16_spill] sm:$0xff]  ;;  %v1190_v47 = vadd.f32 %v1062_v18, %v4409_v45  ;;  %1314 = vst [vmem:[#allocation2 + $0x240] sm:$0xff] %v1186_v58  ;;  %1315 = vst [vmem:[#allocation2 + $0x90] sm:$0xff] %v1187_v61 }
 0x1ce   : > { %v1188_v63 = vadd.f32 %v1060_v28, %v4407_v62  ;;  %v1189_v44 = vadd.f32 %v1061_v29, %v4408_v0  ;;  %v1063_v1 = vld [vmem:[#allocation2 + $0x88] sm:$0xff]  ;;  %v1064_v2 = vld [vmem:[#allocation2 + $0x2f0] sm:$0xff]  ;;  %v1065_v3 = vld [vmem:[#allocation2 + $0x358] sm:$0xff]  ;;  %1313 = vst [vmem:[#allocation2 + $0x230] sm:$0xff] %v1185_v43 }
 0x1cf   : > { %v4410_v20 = vld [vmem:[#allocation17_spill] sm:$0xff]  ;;  %v4411_v23 = vld [vmem:[#allocation19_spill] sm:$0xff]  ;;  %v4412_v5 = vld [vmem:[#allocation20_spill] sm:$0xff]  ;;  %1318 = vst [vmem:[#allocation2 + $0xd0] sm:$0xff] %v1190_v47 }
 0x1d0   : > { %v1191_v21 = vadd.f32 %v1063_v1, %v4410_v20  ;;  %v1192_v4 = vadd.f32 %v1064_v2, %v4411_v23  ;;  %v1193_v7 = vadd.f32 %v1065_v3, %v4412_v5  ;;  %v1066_v46 = vld [vmem:[#allocation2 + $0x268] sm:$0xff]  ;;  %v1067_v48 = vld [vmem:[#allocation2 + $0x350] sm:$0xff]  ;;  %1316 = vst [vmem:[#allocation2 + $0x3a0] sm:$0xff] %v1188_v63  ;;  %1317 = vst [vmem:[#allocation2 + $0x208] sm:$0xff] %v1189_v44 }
 0x1d1   : > { %v1068_v49 = vld [vmem:[#allocation2 + $0x188] sm:$0xff]  ;;  %v4414_v9 = vld [vmem:[#allocation21_spill] sm:$0xff]  ;;  %v1070_v11 = vld [vmem:[#allocation2 + $0x30] sm:$0xff] }
 0x1d2   : > { %v4413_v6 = vld [vmem:[#allocation22_spill] sm:$0xff]  ;;  %v1195_v35 = vadd.f32 %v1067_v48, %v4414_v9  ;;  %v4415_v36 = vld [vmem:[#allocation23_spill] sm:$0xff]  ;;  %v1069_v10 = vld [vmem:[#allocation2 + $0x1d8] sm:$0xff]  ;;  %1319 = vst [vmem:[#allocation2 + $0x88] sm:$0xff] %v1191_v21 }
 0x1d3   : > { %v1194_v8 = vadd.f32 %v1066_v46, %v4413_v6  ;;  %v1196_v37 = vadd.f32 %v1068_v49, %v4415_v36  ;;  %v1071_v12 = vld [vmem:[#allocation2 + $0x140] sm:$0xff]  ;;  %1320 = vst [vmem:[#allocation2 + $0x2f0] sm:$0xff] %v1192_v4  ;;  %1321 = vst [vmem:[#allocation2 + $0x358] sm:$0xff] %v1193_v7  ;;  %v4416_v50 = vld [vmem:[#allocation24_spill] sm:$0xff] }
 0x1d4   : > { %v1197_v51 = vadd.f32 %v1069_v10, %v4416_v50  ;;  %v4417_v52 = vld [vmem:[#allocation26_spill] sm:$0xff]  ;;  %v4418_v14 = vld [vmem:[#allocation25_spill] sm:$0xff]  ;;  %v1073_v22 = vld [vmem:[#allocation2 + $0x130] sm:$0xff]  ;;  %1323 = vst [vmem:[#allocation2 + $0x350] sm:$0xff] %v1195_v35 }
 0x1d5   : > { %v1198_v13 = vadd.f32 %v1070_v11, %v4417_v52  ;;  %v1199_v15 = vadd.f32 %v1071_v12, %v4418_v14  ;;  %v1072_v38 = vld [vmem:[#allocation2 + $0x2a8] sm:$0xff]  ;;  %v1074_v24 = vld [vmem:[#allocation2 + $0x200] sm:$0xff]  ;;  %1322 = vst [vmem:[#allocation2 + $0x268] sm:$0xff] %v1194_v8  ;;  %1324 = vst [vmem:[#allocation2 + $0x188] sm:$0xff] %v1196_v37 }
 0x1d6   : > { %v4419_v53 = vld [vmem:[#allocation27_spill] sm:$0xff]  ;;  %v4420_v55 = vld [vmem:[#allocation28_spill] sm:$0xff]  ;;  %v4421_v17 = vld [vmem:[#allocation30_spill] sm:$0xff]  ;;  %1325 = vst [vmem:[#allocation2 + $0x1d8] sm:$0xff] %v1197_v51 }
 0x1d7   : > { %v1200_v54 = vadd.f32 %v1072_v38, %v4419_v53  ;;  %v1201_v16 = vadd.f32 %v1073_v22, %v4420_v55  ;;  %v1202_v19 = vadd.f32 %v1074_v24, %v4421_v17  ;;  %v1075_v25 = vld [vmem:[#allocation2 + $0x318] sm:$0xff]  ;;  %v1076_v27 = vld [vmem:[#allocation2 + $0x220] sm:$0xff]  ;;  %v1077_v26 = vld [vmem:[#allocation2 + $0x70] sm:$0xff]  ;;  %1326 = vst [vmem:[#allocation2 + $0x30] sm:$0xff] %v1198_v13 }
 0x1d8   : > { %1327 = vst [vmem:[#allocation2 + $0x140] sm:$0xff] %v1199_v15  ;;  %v4422_v56 = vld [vmem:[#allocation29_spill] sm:$0xff]  ;;  %v4423_v59 = vld [vmem:[#allocation31_spill] sm:$0xff]  ;;  %v4424_v43 = vld [vmem:[#allocation32_spill] sm:$0xff] }
 0x1d9   : > { %v1203_v57 = vadd.f32 %v1075_v25, %v4422_v56  ;;  %v1204_v41 = vadd.f32 %v1076_v27, %v4423_v59  ;;  %v1205_v42 = vadd.f32 %v1077_v26, %v4424_v43  ;;  %v1078_v58 = vld [vmem:[#allocation2 + $0x300] sm:$0xff]  ;;  %v1080_v61 = vld [vmem:[#allocation2 + $0x178] sm:$0xff]  ;;  %1328 = vst [vmem:[#allocation2 + $0x2a8] sm:$0xff] %v1200_v54  ;;  %1329 = vst [vmem:[#allocation2 + $0x130] sm:$0xff] %v1201_v16 }
 0x1da   : > { %v1079_v60 = vld [vmem:[#allocation2 + $0xe0] sm:$0xff]  ;;  %1330 = vst [vmem:[#allocation2 + $0x200] sm:$0xff] %v1202_v19  ;;  %v4427_v63 = vld [vmem:[#allocation35_spill] sm:$0xff]  ;;  %v1083_v47 = vld [vmem:[#allocation2 + $0x3b8] sm:$0xff] }
 0x1db   : > { %v4425_v28 = vld [vmem:[#allocation34_spill] sm:$0xff]  ;;  %v4426_v18 = vld [vmem:[#allocation33_spill] sm:$0xff]  ;;  %v1208_v0 = vadd.f32 %v1080_v61, %v4427_v63  ;;  %1331 = vst [vmem:[#allocation2 + $0x318] sm:$0xff] %v1203_v57  ;;  %1332 = vst [vmem:[#allocation2 + $0x220] sm:$0xff] %v1204_v41 }
 0x1dc   : > { %v1206_v29 = vadd.f32 %v1078_v58, %v4425_v28  ;;  %v1207_v62 = vadd.f32 %v1079_v60, %v4426_v18  ;;  %v1081_v44 = vld [vmem:[#allocation2 + $0x328] sm:$0xff]  ;;  %v1082_v45 = vld [vmem:[#allocation2 + $0x260] sm:$0xff]  ;;  %1333 = vst [vmem:[#allocation2 + $0x70] sm:$0xff] %v1205_v42  ;;  %v4428_v1 = vld [vmem:[#allocation36_spill] sm:$0xff] }
 0x1dd   : > { %v1209_v2 = vadd.f32 %v1081_v44, %v4428_v1  ;;  %v4429_v3 = vld [vmem:[#allocation38_spill] sm:$0xff]  ;;  %v4430_v21 = vld [vmem:[#allocation37_spill] sm:$0xff]  ;;  %1336 = vst [vmem:[#allocation2 + $0x178] sm:$0xff] %v1208_v0  ;;  %v4431_v46 = vld [vmem:[#allocation39_spill] sm:$0xff] }
 0x1de   : > { %v1210_v20 = vadd.f32 %v1082_v45, %v4429_v3  ;;  %v1211_v23 = vadd.f32 %v1083_v47, %v4430_v21  ;;  %v1084_v4 = vld [vmem:[#allocation2 + $0x2b8] sm:$0xff]  ;;  %v1085_v5 = vld [vmem:[#allocation2 + $0x248] sm:$0xff]  ;;  %v1086_v7 = vld [vmem:[#allocation2 + $0x40] sm:$0xff]  ;;  %1334 = vst [vmem:[#allocation2 + $0x300] sm:$0xff] %v1206_v29 }
 0x1df   : > { %1335 = vst [vmem:[#allocation2 + $0xe0] sm:$0xff] %v1207_v62  ;;  %v1212_v48 = vadd.f32 %v1084_v4, %v4431_v46  ;;  %v4432_v49 = vld [vmem:[#allocation40_spill] sm:$0xff]  ;;  %v4433_v8 = vld [vmem:[#allocation42_spill] sm:$0xff]  ;;  %1337 = vst [vmem:[#allocation2 + $0x328] sm:$0xff] %v1209_v2 }
 0x1e0   : > { %v1213_v6 = vadd.f32 %v1085_v5, %v4432_v49  ;;  %v1214_v9 = vadd.f32 %v1086_v7, %v4433_v8  ;;  %v1087_v35 = vld [vmem:[#allocation2 + $0x20] sm:$0xff]  ;;  %v1088_v36 = vld [vmem:[#allocation2 + $0xe8] sm:$0xff]  ;;  %1338 = vst [vmem:[#allocation2 + $0x260] sm:$0xff] %v1210_v20  ;;  %1339 = vst [vmem:[#allocation2 + $0x3b8] sm:$0xff] %v1211_v23 }
 0x1e1   : > { %v1089_v37 = vld [vmem:[#allocation2 + $0x288] sm:$0xff]  ;;  %v4434_v10 = vld [vmem:[#allocation41_spill] sm:$0xff]  ;;  %v4436_v51 = vld [vmem:[#allocation44_spill] sm:$0xff]  ;;  %1340 = vst [vmem:[#allocation2 + $0x2b8] sm:$0xff] %v1212_v48 }
 0x1e2   : > { %v1215_v11 = vadd.f32 %v1087_v35, %v4434_v10  ;;  %v4435_v12 = vld [vmem:[#allocation43_spill] sm:$0xff]  ;;  %v1217_v52 = vadd.f32 %v1089_v37, %v4436_v51  ;;  %v1092_v15 = vld [vmem:[#allocation2 + $0x160] sm:$0xff]  ;;  %1341 = vst [vmem:[#allocation2 + $0x248] sm:$0xff] %v1213_v6  ;;  %1342 = vst [vmem:[#allocation2 + $0x40] sm:$0xff] %v1214_v9 }
 0x1e3   : > { %v1216_v50 = vadd.f32 %v1088_v36, %v4435_v12  ;;  %v1090_v13 = vld [vmem:[#allocation2 + $0x3a8] sm:$0xff]  ;;  %v4438_v24 = vld [vmem:[#allocation45_spill] sm:$0xff]  ;;  %v1094_v17 = vld [vmem:[#allocation2 + $0x210] sm:$0xff] }
 0x1e4   : > { %v1091_v14 = vld [vmem:[#allocation2 + $0x3c8] sm:$0xff]  ;;  %v1095_v19 = vld [vmem:[#allocation2 + $0x3d8] sm:$0xff]  ;;  %1343 = vst [vmem:[#allocation2 + $0x20] sm:$0xff] %v1215_v11  ;;  %1345 = vst [vmem:[#allocation2 + $0x288] sm:$0xff] %v1217_v52 }
 0x1e5   : > { %v4437_v38 = vld [vmem:[#allocation46_spill] sm:$0xff]  ;;  %v1219_v53 = vadd.f32 %v1091_v14, %v4438_v24  ;;  %v4439_v54 = vld [vmem:[#allocation47_spill] sm:$0xff]  ;;  %1344 = vst [vmem:[#allocation2 + $0xe8] sm:$0xff] %v1216_v50  ;;  %v4440_v25 = vld [vmem:[#allocation48_spill] sm:$0xff] }
 0x1e6   : > { %v1218_v22 = vadd.f32 %v1090_v13, %v4437_v38  ;;  %v1220_v55 = vadd.f32 %v1092_v15, %v4439_v54  ;;  %v1093_v16 = vld [vmem:[#allocation2 + $0x2c8] sm:$0xff]  ;;  %v4442_v57 = vld [vmem:[#allocation49_spill] sm:$0xff]  ;;  %v1097_v43 = vld [vmem:[#allocation2 + $0x1b0] sm:$0xff] }
 0x1e7   : > { %v1221_v27 = vadd.f32 %v1093_v16, %v4440_v25  ;;  %v4441_v26 = vld [vmem:[#allocation50_spill] sm:$0xff]  ;;  %v1223_v59 = vadd.f32 %v1095_v19, %v4442_v57  ;;  %1347 = vst [vmem:[#allocation2 + $0x3c8] sm:$0xff] %v1219_v53  ;;  %v4443_v58 = vld [vmem:[#allocation51_spill] sm:$0xff]  ;;  %v4444_v61 = vld [vmem:[#allocation52_spill] sm:$0xff] }
 0x1e8   : > { %v1222_v56 = vadd.f32 %v1094_v17, %v4441_v26  ;;  %v1096_v41 = vld [vmem:[#allocation2 + $0x1e8] sm:$0xff]  ;;  %1346 = vst [vmem:[#allocation2 + $0x3a8] sm:$0xff] %v1218_v22  ;;  %1348 = vst [vmem:[#allocation2 + $0x160] sm:$0xff] %v1220_v55  ;;  %v1225_v28 = vadd.f32 %v1097_v43, %v4444_v61  ;;  %v1099_v62 = vld [vmem:[#allocation2 + $0x2d0] sm:$0xff] }
 0x1e9   : > { %v1098_v42 = vld [vmem:[#allocation2 + $0x1c8] sm:$0xff]  ;;  %v1224_v60 = vadd.f32 %v1096_v41, %v4443_v58  ;;  %v1100_v63 = vld [vmem:[#allocation2 + $0x1d0] sm:$0xff]  ;;  %v1101_v0 = vld [vmem:[#allocation2 + $0x58] sm:$0xff]  ;;  %1349 = vst [vmem:[#allocation2 + $0x2c8] sm:$0xff] %v1221_v27 }
 0x1ea   : > { %v4445_v29 = vld [vmem:[#allocation54_spill] sm:$0xff]  ;;  %1350 = vst [vmem:[#allocation2 + $0x210] sm:$0xff] %v1222_v56  ;;  %1351 = vst [vmem:[#allocation2 + $0x3d8] sm:$0xff] %v1223_v59  ;;  %v4446_v44 = vld [vmem:[#allocation53_spill] sm:$0xff] }
 0x1eb   : > { %v1226_v18 = vadd.f32 %v1098_v42, %v4445_v29  ;;  %v1227_v45 = vadd.f32 %v1099_v62, %v4446_v44  ;;  %v4447_v47 = vld [vmem:[#allocation55_spill] sm:$0xff]  ;;  %v4448_v2 = vld [vmem:[#allocation56_spill] sm:$0xff]  ;;  %v1102_v20 = vld [vmem:[#allocation2 + $0x120] sm:$0xff]  ;;  %1352 = vst [vmem:[#allocation2 + $0x1e8] sm:$0xff] %v1224_v60 }
 0x1ec   : > { %v1228_v1 = vadd.f32 %v1100_v63, %v4447_v47  ;;  %v1229_v3 = vadd.f32 %v1101_v0, %v4448_v2  ;;  %v1103_v21 = vld [vmem:[#allocation2 + $0x198] sm:$0xff]  ;;  %v1104_v23 = vld [vmem:[#allocation2 + $0x2e8] sm:$0xff]  ;;  %1353 = vst [vmem:[#allocation2 + $0x1b0] sm:$0xff] %v1225_v28  ;;  %v1108_v50 = vld [vmem:[#allocation2 + $0x390] sm:$0xff] }
 0x1ed   : > { %1354 = vst [vmem:[#allocation2 + $0x1c8] sm:$0xff] %v1226_v18  ;;  %v4449_v4 = vld [vmem:[#allocation58_spill] sm:$0xff]  ;;  %v4450_v7 = vld [vmem:[#allocation57_spill] sm:$0xff]  ;;  %v4451_v48 = vld [vmem:[#allocation59_spill] sm:$0xff] }
 0x1ee   : > { %v1230_v5 = vadd.f32 %v1102_v20, %v4449_v4  ;;  %v1231_v46 = vadd.f32 %v1103_v21, %v4450_v7  ;;  %v1232_v49 = vadd.f32 %v1104_v23, %v4451_v48  ;;  %v1105_v6 = vld [vmem:[#allocation2 + $0x1f8] sm:$0xff]  ;;  %1355 = vst [vmem:[#allocation2 + $0x2d0] sm:$0xff] %v1227_v45  ;;  %1356 = vst [vmem:[#allocation2 + $0x1d0] sm:$0xff] %v1228_v1  ;;  %v4453_v37 = vld [vmem:[#allocation62_spill] sm:$0xff] }
 0x1ef   : > { %v1106_v8 = vld [vmem:[#allocation2 + $0x238] sm:$0xff]  ;;  %1357 = vst [vmem:[#allocation2 + $0x58] sm:$0xff] %v1229_v3  ;;  %v1109_v51 = vld [vmem:[#allocation2 + $0x1a0] sm:$0xff]  ;;  %v1110_v52 = vld [vmem:[#allocation2 + $0xa8] sm:$0xff] }
 0x1f0   : > { %v1107_v9 = vld [vmem:[#allocation2 + $0x398] sm:$0xff]  ;;  %v1234_v10 = vadd.f32 %v1106_v8, %v4453_v37  ;;  %1358 = vst [vmem:[#allocation2 + $0x120] sm:$0xff] %v1230_v5  ;;  %1359 = vst [vmem:[#allocation2 + $0x198] sm:$0xff] %v1231_v46  ;;  %v4455_v13 = vld [vmem:[#allocation63_spill] sm:$0xff] }
 0x1f1   : > { %v4452_v35 = vld [vmem:[#allocation60_spill] sm:$0xff]  ;;  %v4454_v11 = vld [vmem:[#allocation61_spill] sm:$0xff]  ;;  %1360 = vst [vmem:[#allocation2 + $0x2e8] sm:$0xff] %v1232_v49  ;;  %v1236_v14 = vadd.f32 %v1108_v50, %v4455_v13  ;;  %v4457_v22 = vld [vmem:[#allocation66_spill] sm:$0xff] }
 0x1f2   : > { %v1233_v36 = vadd.f32 %v1105_v6, %v4452_v35  ;;  %v1235_v12 = vadd.f32 %v1107_v9, %v4454_v11  ;;  %v4456_v15 = vld [vmem:[#allocation64_spill] sm:$0xff]  ;;  %v1238_v24 = vadd.f32 %v1110_v52, %v4457_v22  ;;  %1362 = vst [vmem:[#allocation2 + $0x238] sm:$0xff] %v1234_v10  ;;  %v4458_v16 = vld [vmem:[#allocation65_spill] sm:$0xff]  ;;  %v4459_v19 = vld [vmem:[#allocation67_spill] sm:$0xff] }
 0x1f3   : > { %v1237_v38 = vadd.f32 %v1109_v51, %v4456_v15  ;;  %v1111_v53 = vld [vmem:[#allocation2 + $0x258] sm:$0xff]  ;;  %v1113_v55 = vld [vmem:[#allocation2 + $0xf0] sm:$0xff]  ;;  %v1114_v56 = vld [vmem:[#allocation2 + $0x180] sm:$0xff]  ;;  %1364 = vst [vmem:[#allocation2 + $0x390] sm:$0xff] %v1236_v14 }
 0x1f4   : > { %v1112_v54 = vld [vmem:[#allocation2 + $0x2d8] sm:$0xff]  ;;  %1361 = vst [vmem:[#allocation2 + $0x1f8] sm:$0xff] %v1233_v36  ;;  %1363 = vst [vmem:[#allocation2 + $0x398] sm:$0xff] %v1235_v12  ;;  %v1239_v17 = vadd.f32 %v1111_v53, %v4458_v16  ;;  %v1115_v57 = vld [vmem:[#allocation2 + $0x170] sm:$0xff] }
 0x1f5   : > { %v1240_v25 = vadd.f32 %v1112_v54, %v4459_v19  ;;  %v4460_v27 = vld [vmem:[#allocation68_spill] sm:$0xff]  ;;  %1365 = vst [vmem:[#allocation2 + $0x1a0] sm:$0xff] %v1237_v38  ;;  %1366 = vst [vmem:[#allocation2 + $0xa8] sm:$0xff] %v1238_v24  ;;  %v4461_v41 = vld [vmem:[#allocation70_spill] sm:$0xff] }
 0x1f6   : > { %v1241_v26 = vadd.f32 %v1113_v55, %v4460_v27  ;;  %v1116_v59 = vld [vmem:[#allocation2 + $0x3d0] sm:$0xff]  ;;  %v1242_v43 = vadd.f32 %v1114_v56, %v4461_v41  ;;  %v4462_v42 = vld [vmem:[#allocation69_spill] sm:$0xff]  ;;  %1367 = vst [vmem:[#allocation2 + $0x258] sm:$0xff] %v1239_v17  ;;  %v4465_v0 = vld [vmem:[#allocation74_spill] sm:$0xff] }
 0x1f7   : > { %v1243_v58 = vadd.f32 %v1115_v57, %v4462_v42  ;;  %v4463_v60 = vld [vmem:[#allocation71_spill] sm:$0xff]  ;;  %v1118_v29 = vld [vmem:[#allocation2 + $0x378] sm:$0xff]  ;;  %1368 = vst [vmem:[#allocation2 + $0x2d8] sm:$0xff] %v1240_v25  ;;  %v4469_v5 = vld [vmem:[#allocation78_spill] sm:$0xff] }
 0x1f8   : > { %v1244_v61 = vadd.f32 %v1116_v59, %v4463_v60  ;;  %v1117_v28 = vld [vmem:[#allocation2 + $0x250] sm:$0xff]  ;;  %v1119_v18 = vld [vmem:[#allocation2 + $0xb8] sm:$0xff]  ;;  %1369 = vst [vmem:[#allocation2 + $0xf0] sm:$0xff] %v1241_v26  ;;  %v1246_v44 = vadd.f32 %v1118_v29, %v4465_v0  ;;  %v1122_v3 = vld [vmem:[#allocation2 + $0x308] sm:$0xff] }
 0x1f9   : > { %v4464_v62 = vld [vmem:[#allocation72_spill] sm:$0xff]  ;;  %v4466_v45 = vld [vmem:[#allocation73_spill] sm:$0xff]  ;;  %1370 = vst [vmem:[#allocation2 + $0x180] sm:$0xff] %v1242_v43  ;;  %1371 = vst [vmem:[#allocation2 + $0x170] sm:$0xff] %v1243_v58  ;;  %v1250_v7 = vadd.f32 %v1122_v3, %v4469_v5 }
 0x1fa   : > { %v1245_v63 = vadd.f32 %v1117_v28, %v4464_v62  ;;  %v1247_v47 = vadd.f32 %v1119_v18, %v4466_v45  ;;  %v1120_v1 = vld [vmem:[#allocation2 + $0x38] sm:$0xff]  ;;  %1372 = vst [vmem:[#allocation2 + $0x3d0] sm:$0xff] %v1244_v61  ;;  %v4467_v20 = vld [vmem:[#allocation75_spill] sm:$0xff]  ;;  %1374 = vst [vmem:[#allocation2 + $0x378] sm:$0xff] %v1246_v44 }
 0x1fb   : > { %v1121_v2 = vld [vmem:[#allocation2 + $0x78] sm:$0xff]  ;;  %v1248_v21 = vadd.f32 %v1120_v1, %v4467_v20  ;;  %v1123_v46 = vld [vmem:[#allocation2 + $0x370] sm:$0xff]  ;;  %v1124_v48 = vld [vmem:[#allocation2 + $0xc8] sm:$0xff]  ;;  %1378 = vst [vmem:[#allocation2 + $0x308] sm:$0xff] %v1250_v7 }
 0x1fc   : > { %v4468_v23 = vld [vmem:[#allocation76_spill] sm:$0xff]  ;;  %1373 = vst [vmem:[#allocation2 + $0x250] sm:$0xff] %v1245_v63  ;;  %1375 = vst [vmem:[#allocation2 + $0xb8] sm:$0xff] %v1247_v47  ;;  %v4470_v6 = vld [vmem:[#allocation77_spill] sm:$0xff] }
 0x1fd   : > { %v1249_v4 = vadd.f32 %v1121_v2, %v4468_v23  ;;  %v1125_v49 = vld [vmem:[#allocation2 + $0x278] sm:$0xff]  ;;  %v1251_v8 = vadd.f32 %v1123_v46, %v4470_v6  ;;  %v4471_v9 = vld [vmem:[#allocation79_spill] sm:$0xff]  ;;  %v1126_v10 = vld [vmem:[#allocation2 + $0x360] sm:$0xff]  ;;  %1376 = vst [vmem:[#allocation2 + $0x38] sm:$0xff] %v1248_v21 }
 0x1fe   : > { %v1252_v35 = vadd.f32 %v1124_v48, %v4471_v9  ;;  %v4472_v36 = vld [vmem:[#allocation80_spill] sm:$0xff]  ;;  %v1127_v11 = vld [vmem:[#allocation2 + $0x228] sm:$0xff]  ;;  %v1254_v50 = vadd.f32 %v1126_v10, %v3619_v40  ;;  %v1132_v53 = vld [vmem:[#allocation2] sm:$0xff] }
 0x1ff   : > { %v1253_v37 = vadd.f32 %v1125_v49, %v4472_v36  ;;  %v1128_v12 = vld [vmem:[#allocation2 + $0x348] sm:$0xff]  ;;  %1377 = vst [vmem:[#allocation2 + $0x78] sm:$0xff] %v1249_v4  ;;  %v1255_v51 = vadd.f32 %v1127_v11, %v3617_v39  ;;  %v1130_v14 = vld [vmem:[#allocation2 + $0xf8] sm:$0xff]  ;;  %1379 = vst [vmem:[#allocation2 + $0x370] sm:$0xff] %v1251_v8 }
 0x200   : > { %v1256_v52 = vadd.f32 %v1128_v12, %v3621_v30  ;;  %v1129_v13 = vld [vmem:[#allocation2 + $0x148] sm:$0xff]  ;;  %1380 = vst [vmem:[#allocation2 + $0xc8] sm:$0xff] %v1252_v35  ;;  %v1258_v22 = vadd.f32 %v1130_v14, %v3627_v33  ;;  %v1133_v54 = vld [vmem:[#allocation2 + $0x298] sm:$0xff]  ;;  %v1134_v55 = vld [vmem:[#allocation2 + $0x270] sm:$0xff]  ;;  %v1260_v30 = vadd.f32 %v1132_v53, %v3629_v34 }
 0x201   : > { %v1131_v15 = vld [vmem:[#allocation2 + $0x68] sm:$0xff]  ;;  %1381 = vst [vmem:[#allocation2 + $0x278] sm:$0xff] %v1253_v37  ;;  %v1257_v38 = vadd.f32 %v1129_v13, %v3623_v31  ;;  %1382 = vst [vmem:[#allocation2 + $0x360] sm:$0xff] %v1254_v50  ;;  %v4473_v39 = vld [vmem:[#allocation81_spill] sm:$0xff] }
 0x202   : > { %v1259_v24 = vadd.f32 %v1131_v15, %v3625_v32  ;;  %1383 = vst [vmem:[#allocation2 + $0x228] sm:$0xff] %v1255_v51  ;;  %1384 = vst [vmem:[#allocation2 + $0x348] sm:$0xff] %v1256_v52  ;;  %v1261_v40 = vadd.f32 %v1133_v54, %v4473_v39  ;;  %v4474_v16 = vld [vmem:[#allocation83_spill] sm:$0xff]  ;;  %v4475_v31 = vld [vmem:[#allocation82_spill] sm:$0xff] }
 0x203   : > { %v1262_v17 = vadd.f32 %v1134_v55, %v4474_v16  ;;  %v1135_v19 = vld [vmem:[#allocation2 + $0x310] sm:$0xff]  ;;  %1385 = vst [vmem:[#allocation2 + $0x148] sm:$0xff] %v1257_v38  ;;  %1386 = vst [vmem:[#allocation2 + $0xf8] sm:$0xff] %v1258_v22 }
 0x204   : > { %v1136_v25 = vld [vmem:[#allocation2 + $0x190] sm:$0xff]  ;;  %1387 = vst [vmem:[#allocation2 + $0x68] sm:$0xff] %v1259_v24  ;;  %v1263_v33 = vadd.f32 %v1135_v19, %v4475_v31  ;;  %1388 = vst [vmem:[#allocation2] sm:$0xff] %v1260_v30 }
 0x205   : > { %v4476_v32 = vld [vmem:[#allocation84_spill] sm:$0xff]  ;;  %1389 = vst [vmem:[#allocation2 + $0x298] sm:$0xff] %v1261_v40  ;;  %1390 = vst [vmem:[#allocation2 + $0x270] sm:$0xff] %v1262_v17 }
 0x206   : > { %v1264_v27 = vadd.f32 %v1136_v25, %v4476_v32  ;;  %1391 = vst [vmem:[#allocation2 + $0x310] sm:$0xff] %v1263_v33 }
 0x208   : > { %1392 = vst [vmem:[#allocation2 + $0x190] sm:$0xff] %v1264_v27 }
 0x209 PF: > { %p3057_p6 = scmp.ne.s32.totalorder %s3269_s16, 2 }
 0x20a   : > { %s3233_s28 = smov (!%p3057_p6), 64   ;;  %s3234_s29 = smov (!%p3057_p6), 96  }
 0x20b   : > { %1396 = sbr.rel (%p3057_p6) target bundleno = 2107 (0x83b), region = 48 }
 0x210   : > { %v1527_v34 = vlaneseq  ;;  %v1525_v56 = vld [vmem:[%s4237_s2] sm:$0xf]  ;;  %v1406_v59 = vld [vmem:[#allocation2 + $0x110] sm:$0xff]  ;;  %v1407_v60 = vld [vmem:[#allocation2 + $0x118] sm:$0xff]  ;;  %vm2504_vm2 = vcmask 1041409   ;;  %vm2507_vm3 = vcmask 1042434  }
 0x211   : > { %v1405_v57 = vld [vmem:[#allocation2 + $0x380] sm:$0xff]  ;;  %v1408_v61 = vld [vmem:[#allocation2 + $0x98] sm:$0xff]  ;;  %v1410_v29 = vld [vmem:[#allocation2 + $0x150] sm:$0xff]  ;;  %vm2510_vm4 = vcmask 1043459   ;;  %vm2513_vm5 = vcmask 1044484   ;;  %vm2516_vm6 = vcmask 1045509  }
 0x212   : > { %v1528_v26 = vshrl.u32 %v1527_v34, 7  ;;  %v1409_v28 = vld [vmem:[#allocation2 + $0x320] sm:$0xff]  ;;  %v1411_v18 = vld [vmem:[#allocation2 + $0x108] sm:$0xff]  ;;  %v1471_v46 = vld [vmem:[#allocation2 + $0x3b8] sm:$0xff]  ;;  %vm2519_vm7 = vcmask 1046534   ;;  %vm2522_vm8 = vcmask 1047559  }
 0x213   : > { %v1412_v62 = vld [vmem:[#allocation2 + $0x60] sm:$0xff]  ;;  %v1469_v20 = vld [vmem:[#allocation2 + $0x328] sm:$0xff]  ;;  %v1472_v48 = vld [vmem:[#allocation2 + $0x2b8] sm:$0xff]  ;;  %vm2538_vm9 = vcmask 261120   ;;  %vm2624_vm10 = vcmask 130048   ;;  %vm3236_vm11 = vmmov 0  }
 0x214   : > { %v1529_v41 = vsub.s32 0, %v1528_v26  ;;  %v1533_v43 = vsub.s32 1, %v1528_v26  ;;  %v1537_v42 = vsub.s32 2, %v1528_v26  ;;  %v1541_v58 = vsub.s32 3, %v1528_v26  ;;  %v1470_v7 = vld [vmem:[#allocation2 + $0x260] sm:$0xff]  ;;  %v1473_v35 = vld [vmem:[#allocation2 + $0x248] sm:$0xff] }
 0x215   : > { %v1474_v36 = vld [vmem:[#allocation2 + $0x40] sm:$0xff]  ;;  %v1476_v51 = vld [vmem:[#allocation2 + $0xe8] sm:$0xff]  ;;  %vm2875_vm12 = vcmask 64512   ;;  %vm2889_vm13 = vcmask 7168   ;;  %vm2918_vm14 = vcmask 0  }
 0x216   : > { %v3901_v63 = vrot.slane %v1525_v56, %v1529_v41  ;;  %v3903_v0 = vrot.slane %v1525_v56, %v1533_v43  ;;  %v3905_v44 = vrot.slane %v1525_v56, %v1537_v42  ;;  %v3907_v45 = vrot.slane %v1525_v56, %v1541_v58  ;;  %v1475_v50 = vld [vmem:[#allocation2 + $0x20] sm:$0xff] }
 0x218   : > { %v1555_v47 = vadd.f32 %v3901_v63, %v1405_v57  ;;  %v1556_v1 = vadd.f32 %v3903_v0, %v1406_v59  ;;  %v1557_v2 = vadd.f32 %v3905_v44, %v1407_v60  ;;  %v1558_v3 = vadd.f32 %v3907_v45, %v1408_v61 }
 0x219   : > { %v1559_v21 = vadd.f32 %v3901_v63, %v1409_v28  ;;  %v1560_v23 = vadd.f32 %v3903_v0, %v1410_v29  ;;  %v1561_v4 = vadd.f32 %v3905_v44, %v1411_v18  ;;  %v1562_v5 = vadd.f32 %v3907_v45, %v1412_v62 }
 0x21a   : > { %v1683_v49 = vmax.f32 %v1555_v47, 0.0  ;;  %v1684_v6 = vmax.f32 %v1556_v1, 0.0  ;;  %v1685_v8 = vmax.f32 %v1557_v2, 0.0  ;;  %v1686_v9 = vmax.f32 %v1558_v3, 0.0 }
 0x21b   : > { %v1687_v37 = vmax.f32 %v1559_v21, 0.0  ;;  %v1688_v10 = vmax.f32 %v1560_v23, 0.0  ;;  %v1689_v11 = vmax.f32 %v1561_v4, 0.0  ;;  %v1690_v12 = vmax.f32 %v1562_v5, 0.0 }
 0x21c   : > { %v1619_v52 = vadd.f32 %v3901_v63, %v1469_v20  ;;  %v1620_v13 = vadd.f32 %v3903_v0, %v1470_v7  ;;  %v1621_v14 = vadd.f32 %v3905_v44, %v1471_v46  ;;  %v1622_v15 = vadd.f32 %v3907_v45, %v1472_v48 }
 0x21d   : > { %v1831_v38 = vadd.f32 %v1687_v37, %v1683_v49  ;;  %v1838_v22 = vadd.f32 %v1688_v10, %v1684_v6  ;;  %v1845_v24 = vadd.f32 %v1689_v11, %v1685_v8  ;;  %v1852_v53 = vadd.f32 %v1690_v12, %v1686_v9 }
 0x21e   : > { %v1623_v54 = vadd.f32 %v3901_v63, %v1473_v35  ;;  %v1624_v55 = vadd.f32 %v3903_v0, %v1474_v36  ;;  %v1625_v30 = vadd.f32 %v3905_v44, %v1475_v50  ;;  %v1626_v39 = vadd.f32 %v3907_v45, %v1476_v51  ;;  %v1413_v35 = vld [vmem:[#allocation2 + $0x2e0] sm:$0xff]  ;;  %v1414_v36 = vld [vmem:[#allocation2 + $0x388] sm:$0xff]  ;;  %v1415_v50 = vld [vmem:[#allocation2 + $0x338] sm:$0xff] }
 0x21f   : > { %v1832_v40 = vrot.slane %v1831_v38, 4  ;;  %v1839_v16 = vrot.slane %v1838_v22, 4  ;;  %v1846_v17 = vrot.slane %v1845_v24, 4  ;;  %v1853_v19 = vrot.slane %v1852_v53, 4 }
 0x220   : > { %v1747_v25 = vmax.f32 %v1619_v52, 0.0  ;;  %v1748_v31 = vmax.f32 %v1620_v13, 0.0  ;;  %v1749_v33 = vmax.f32 %v1621_v14, 0.0  ;;  %v1750_v32 = vmax.f32 %v1622_v15, 0.0  ;;  %v1416_v15 = vld [vmem:[#allocation2 + $0x340] sm:$0xff] }
 0x221   : > { %v1833_v27 = vadd.f32 %v1832_v40, %v1831_v38  ;;  %v1840_v34 = vadd.f32 %v1839_v16, %v1838_v22  ;;  %v1847_v26 = vadd.f32 %v1846_v17, %v1845_v24  ;;  %v1854_v56 = vadd.f32 %v1853_v19, %v1852_v53  ;;  %v1417_v38 = vld [vmem:[#allocation2 + $0x80] sm:$0xff]  ;;  %v1418_v16 = vld [vmem:[#allocation2 + $0x1a8] sm:$0xff]  ;;  %v1419_v17 = vld [vmem:[#allocation2 + $0x1b8] sm:$0xff] }
 0x222   : > { %v1751_v57 = vmax.f32 %v1623_v54, 0.0  ;;  %v1752_v59 = vmax.f32 %v1624_v55, 0.0  ;;  %v1753_v41 = vmax.f32 %v1625_v30, 0.0  ;;  %v1754_v43 = vmax.f32 %v1626_v39, 0.0  ;;  %v1420_v19 = vld [vmem:[#allocation2 + $0x168] sm:$0xff] }
 0x223   : > { %v1834_v42 = vrot.slane %v1833_v27, 2  ;;  %v1841_v58 = vrot.slane %v1840_v34, 2  ;;  %v1848_v60 = vrot.slane %v1847_v26, 2  ;;  %v1855_v61 = vrot.slane %v1854_v56, 2 }
 0x224   : > { %v2055_v28 = vadd.f32 %v1751_v57, %v1747_v25  ;;  %v2062_v29 = vadd.f32 %v1752_v59, %v1748_v31  ;;  %v2069_v18 = vadd.f32 %v1753_v41, %v1749_v33  ;;  %v2076_v62 = vadd.f32 %v1754_v43, %v1750_v32 }
 0x225   : > { %v1835_v47 = vadd.f32 %v1834_v42, %v1833_v27  ;;  %v1842_v1 = vadd.f32 %v1841_v58, %v1840_v34  ;;  %v1849_v2 = vadd.f32 %v1848_v60, %v1847_v26  ;;  %v1856_v3 = vadd.f32 %v1855_v61, %v1854_v56 }
 0x226   : > { %v2056_v20 = vrot.slane %v2055_v28, 4  ;;  %v2063_v21 = vrot.slane %v2062_v29, 4  ;;  %v2070_v23 = vrot.slane %v2069_v18, 4  ;;  %v2077_v4 = vrot.slane %v2076_v62, 4 }
 0x227   : > { %v1836_v5 = vrot.slane %v1835_v47, 1  ;;  %v1843_v7 = vrot.slane %v1842_v1, 1  ;;  %v1850_v46 = vrot.slane %v1849_v2, 1  ;;  %v1857_v48 = vrot.slane %v1856_v3, 1 }
 0x228   : > { %v2057_v49 = vadd.f32 %v2056_v20, %v2055_v28  ;;  %v2064_v6 = vadd.f32 %v2063_v21, %v2062_v29  ;;  %v2071_v8 = vadd.f32 %v2070_v23, %v2069_v18  ;;  %v2078_v9 = vadd.f32 %v2077_v4, %v2076_v62  ;;  %v1421_v28 = vld [vmem:[#allocation2 + $0x3e8] sm:$0xff]  ;;  %v1422_v29 = vld [vmem:[#allocation2 + $0x2f8] sm:$0xff] }
 0x229   : > { %v1837_v37 = vadd.f32 %v1836_v5, %v1835_v47  ;;  %v1844_v10 = vadd.f32 %v1843_v7, %v1842_v1  ;;  %v1851_v11 = vadd.f32 %v1850_v46, %v1849_v2  ;;  %v1858_v12 = vadd.f32 %v1857_v48, %v1856_v3  ;;  %v1423_v2 = vld [vmem:[#allocation2 + $0x290] sm:$0xff]  ;;  %v1424_v4 = vld [vmem:[#allocation2 + $0x28] sm:$0xff]  ;;  %v1425_v5 = vld [vmem:[#allocation2 + $0x138] sm:$0xff] }
 0x22a   : > { %v2058_v51 = vrot.slane %v2057_v49, 2  ;;  %v2065_v52 = vrot.slane %v2064_v6, 2  ;;  %v2072_v13 = vrot.slane %v2071_v8, 2  ;;  %v2079_v14 = vrot.slane %v2078_v9, 2  ;;  %v1426_v48 = vld [vmem:[#allocation2 + $0xc0] sm:$0xff] }
 0x22b   : > { %v2253_v22 = vadd.f32 %v1851_v11, %v1837_v37  ;;  %v2254_v24 = vadd.f32 %v1858_v12, %v1844_v10  ;;  %v1563_v53 = vadd.f32 %v3901_v63, %v1413_v35  ;;  %v1564_v54 = vadd.f32 %v3903_v0, %v1414_v36  ;;  %v1428_v37 = vld [vmem:[#allocation2 + $0x280] sm:$0xff] }
 0x22c   : > { %v2059_v55 = vadd.f32 %v2058_v51, %v2057_v49  ;;  %v2066_v30 = vadd.f32 %v2065_v52, %v2064_v6  ;;  %v2073_v39 = vadd.f32 %v2072_v13, %v2071_v8  ;;  %v2080_v40 = vadd.f32 %v2079_v14, %v2078_v9  ;;  %v1427_v49 = vld [vmem:[#allocation2 + $0x1c0] sm:$0xff] }
 0x22d   : > { %v3927_v25 = vadd.f32 %v2254_v24, %v2253_v22  ;;  %v1565_v31 = vadd.f32 %v3905_v44, %v1415_v50  ;;  %v1566_v33 = vadd.f32 %v3907_v45, %v1416_v15  ;;  %v1567_v32 = vadd.f32 %v3901_v63, %v1417_v38 }
 0x22e   : > { %v2060_v27 = vrot.slane %v2059_v55, 1  ;;  %v2067_v34 = vrot.slane %v2066_v30, 1  ;;  %v2074_v26 = vrot.slane %v2073_v39, 1  ;;  %v2081_v56 = vrot.slane %v2080_v40, 1 }
 0x22f   : > { %2317 = vrot.lane.b32.xlu0 %v3927_v25, %s3233_s28  ;;  %v1568_v57 = vadd.f32 %v3903_v0, %v1418_v16  ;;  %v1569_v59 = vadd.f32 %v3905_v44, %v1419_v17  ;;  %v1570_v41 = vadd.f32 %v3907_v45, %v1420_v19  ;;  %v1691_v43 = vmax.f32 %v1563_v53, 0.0 }
 0x230   : > { %v2061_v42 = vadd.f32 %v2060_v27, %v2059_v55  ;;  %v2068_v58 = vadd.f32 %v2067_v34, %v2066_v30  ;;  %v2075_v60 = vadd.f32 %v2074_v26, %v2073_v39  ;;  %v2082_v61 = vadd.f32 %v2081_v56, %v2080_v40 }
 0x231   : > { %v1692_v18 = vmax.f32 %v1564_v54, 0.0  ;;  %v1693_v62 = vmax.f32 %v1565_v31, 0.0  ;;  %v1694_v47 = vmax.f32 %v1566_v33, 0.0  ;;  %v1695_v1 = vmax.f32 %v1567_v32, 0.0 }
 0x232   : > { %v2269_v3 = vadd.f32 %v2075_v60, %v2061_v42  ;;  %v2270_v20 = vadd.f32 %v2082_v61, %v2068_v58  ;;  %v1696_v21 = vmax.f32 %v1568_v57, 0.0  ;;  %v1697_v23 = vmax.f32 %v1569_v59, 0.0 }
 0x233   : > { %v1698_v7 = vmax.f32 %v1570_v41, 0.0  ;;  %v1859_v46 = vadd.f32 %v1695_v1, %v1691_v43  ;;  %v1571_v6 = vadd.f32 %v3901_v63, %v1421_v28  ;;  %v1572_v8 = vadd.f32 %v3903_v0, %v1422_v29  ;;  %v1397_v1 = vld [vmem:[#allocation2 + $0x2b0] sm:$0xff] }
 0x234   : > { %v3939_v9 = vadd.f32 %v2270_v20, %v2269_v3  ;;  %v1866_v35 = vadd.f32 %v1696_v21, %v1692_v18  ;;  %v1873_v36 = vadd.f32 %v1697_v23, %v1693_v62  ;;  %v1573_v10 = vadd.f32 %v3905_v44, %v1423_v2  ;;  %v1398_v23 = vld [vmem:[#allocation2 + $0x3b0] sm:$0xff] }
 0x235   : > { %v1860_v11 = vrot.slane %v1859_v46, 4  ;;  %v1880_v12 = vadd.f32 %v1698_v7, %v1694_v47  ;;  %v1574_v50 = vadd.f32 %v3907_v45, %v1424_v4  ;;  %v1575_v51 = vadd.f32 %v3901_v63, %v1425_v5 }
 0x236   : > { %2333 = vrot.lane.b32.xlu1 %v3939_v9, %s3233_s28  ;;  %v1867_v52 = vrot.slane %v1866_v35, 4  ;;  %v1874_v13 = vrot.slane %v1873_v36, 4  ;;  %v1576_v14 = vadd.f32 %v3903_v0, %v1426_v48  ;;  %v1577_v15 = vadd.f32 %v3905_v44, %v1427_v49  ;;  %v1399_v48 = vld [vmem:[#allocation2 + $0xd8] sm:$0xff] }
 0x237   : > { %v1861_v38 = vadd.f32 %v1860_v11, %v1859_v46  ;;  %v1881_v22 = vrot.slane %v1880_v12, 4  ;;  %v1578_v24 = vadd.f32 %v3907_v45, %v1428_v37  ;;  %v1699_v53 = vmax.f32 %v1571_v6, 0.0 }
 0x238   : > { %v1868_v54 = vadd.f32 %v1867_v52, %v1866_v35  ;;  %v1875_v55 = vadd.f32 %v1874_v13, %v1873_v36  ;;  %v1700_v30 = vmax.f32 %v1572_v8, 0.0  ;;  %v1701_v39 = vmax.f32 %v1573_v10, 0.0  ;;  %v1400_v35 = vld [vmem:[#allocation2 + $0x18] sm:$0xff]  ;;  %v1401_v36 = vld [vmem:[#allocation2 + $0x50] sm:$0xff] }
 0x239   : > { %v1862_v40 = vrot.slane %v1861_v38, 2  ;;  %v1882_v16 = vadd.f32 %v1881_v22, %v1880_v12  ;;  %v1702_v17 = vmax.f32 %v1574_v50, 0.0  ;;  %v1703_v19 = vmax.f32 %v1575_v51, 0.0  ;;  %v1402_v50 = vld [vmem:[#allocation2 + $0x368] sm:$0xff] }
 0x23a   : > { %v1869_v31 = vrot.slane %v1868_v54, 2  ;;  %v1876_v33 = vrot.slane %v1875_v55, 2  ;;  %v1704_v32 = vmax.f32 %v1576_v14, 0.0  ;;  %v1705_v27 = vmax.f32 %v1577_v15, 0.0  ;;  %v1403_v15 = vld [vmem:[#allocation2 + $0x330] sm:$0xff] }
 0x23b   : > { %v1863_v34 = vadd.f32 %v1862_v40, %v1861_v38  ;;  %v1883_v26 = vrot.slane %v1882_v16, 2  ;;  %v1706_v56 = vmax.f32 %v1578_v24, 0.0  ;;  %v1887_v57 = vadd.f32 %v1703_v19, %v1699_v53  ;;  %v1404_v38 = vld [vmem:[#allocation2 + $0x48] sm:$0xff] }
 0x23c   : > { %v1870_v59 = vadd.f32 %v1869_v31, %v1868_v54  ;;  %v1877_v41 = vadd.f32 %v1876_v33, %v1875_v55  ;;  %v1894_v43 = vadd.f32 %v1704_v32, %v1700_v30  ;;  %v1901_v42 = vadd.f32 %v1705_v27, %v1701_v39 }
 0x23d   : > { %v1864_v58 = vrot.slane %v1863_v34, 1  ;;  %v1884_v60 = vadd.f32 %v1883_v26, %v1882_v16  ;;  %v1888_v61 = vrot.slane %v1887_v57, 4  ;;  %v1908_v28 = vadd.f32 %v1706_v56, %v1702_v17  ;;  %v1429_v56 = vld [vmem:[#allocation2 + $0x100] sm:$0xff] }
 0x23e   : > { %v1871_v29 = vrot.slane %v1870_v59, 1  ;;  %v1878_v18 = vrot.slane %v1877_v41, 1  ;;  %v1895_v62 = vrot.slane %v1894_v43, 4  ;;  %v1902_v47 = vrot.slane %v1901_v42, 4 }
 0x23f   : > { %v1865_v2 = vadd.f32 %v1864_v58, %v1863_v34  ;;  %v1885_v3 = vrot.slane %v1884_v60, 1  ;;  %v1889_v20 = vadd.f32 %v1888_v61, %v1887_v57  ;;  %v1909_v21 = vrot.slane %v1908_v28, 4  ;;  %v1430_v57 = vld [vmem:[#allocation2 + $0x3c0] sm:$0xff] }
 0x240   : > { %v1872_v4 = vadd.f32 %v1871_v29, %v1870_v59  ;;  %v1879_v5 = vadd.f32 %v1878_v18, %v1877_v41  ;;  %v1896_v7 = vadd.f32 %v1895_v62, %v1894_v43  ;;  %v1903_v46 = vadd.f32 %v1902_v47, %v1901_v42  ;;  %v1431_v29 = vld [vmem:[#allocation2 + $0x158] sm:$0xff]  ;;  %v1432_v18 = vld [vmem:[#allocation2 + $0x3e0] sm:$0xff] }
 0x241   : > { %v1886_v49 = vadd.f32 %v1885_v3, %v1884_v60  ;;  %v1890_v6 = vrot.slane %v1889_v20, 2  ;;  %v1910_v8 = vadd.f32 %v1909_v21, %v1908_v28  ;;  %v1547_v37 = vadd.f32 %v3901_v63, %v1397_v1  ;;  %v1433_v62 = vld [vmem:[#allocation2 + $0x218] sm:$0xff] }
 0x242   : > { %v2255_v10 = vadd.f32 %v1879_v5, %v1865_v2  ;;  %v1897_v11 = vrot.slane %v1896_v7, 2  ;;  %v1904_v12 = vrot.slane %v1903_v46, 2  ;;  %v1548_v51 = vadd.f32 %v3903_v0, %v1398_v23  ;;  %v1434_v5 = vld [vmem:[#allocation2 + $0x3f8] sm:$0xff] }
 0x243   : > { %v2256_v52 = vadd.f32 %v1886_v49, %v1872_v4  ;;  %v1891_v13 = vadd.f32 %v1890_v6, %v1889_v20  ;;  %v1911_v14 = vrot.slane %v1910_v8, 2  ;;  %v1549_v22 = vadd.f32 %v3905_v44, %v1399_v48 }
 0x244   : > { %v1898_v24 = vadd.f32 %v1897_v11, %v1896_v7  ;;  %v1905_v53 = vadd.f32 %v1904_v12, %v1903_v46  ;;  %v1550_v54 = vadd.f32 %v3907_v45, %v1400_v35  ;;  %v1551_v55 = vadd.f32 %v3901_v63, %v1401_v36  ;;  %v1435_v7 = vld [vmem:[#allocation2 + $0x8] sm:$0xff] }
 0x245   : > { %v3954_v30 = vadd.f32 %v2256_v52, %v2255_v10  ;;  %v1892_v39 = vrot.slane %v1891_v13, 1  ;;  %v1912_v40 = vadd.f32 %v1911_v14, %v1910_v8  ;;  %v1552_v16 = vadd.f32 %v3903_v0, %v1402_v50  ;;  %v1436_v46 = vld [vmem:[#allocation2 + $0x128] sm:$0xff] }
 0x246   : > { %v1899_v17 = vrot.slane %v1898_v24, 1  ;;  %v1906_v19 = vrot.slane %v1905_v53, 1  ;;  %v1553_v31 = vadd.f32 %v3905_v44, %v1403_v15  ;;  %v1554_v33 = vadd.f32 %v3907_v45, %v1404_v38 }
 0x247   : > { %2319 = vrot.lane.b32.xlu0 %v3954_v30, %s3233_s28  ;;  %v1893_v32 = vadd.f32 %v1892_v39, %v1891_v13  ;;  %v1913_v27 = vrot.slane %v1912_v40, 1  ;;  %v1675_v34 = vmax.f32 %v1547_v37, 0.0  ;;  %v1676_v26 = vmax.f32 %v1548_v51, 0.0 }
 0x248   : > { %v1900_v59 = vadd.f32 %v1899_v17, %v1898_v24  ;;  %v1907_v41 = vadd.f32 %v1906_v19, %v1905_v53  ;;  %v1677_v43 = vmax.f32 %v1549_v22, 0.0  ;;  %v1678_v42 = vmax.f32 %v1550_v54, 0.0 }
 0x249   : > { %v1914_v58 = vadd.f32 %v1913_v27, %v1912_v40  ;;  %v1679_v60 = vmax.f32 %v1551_v55, 0.0  ;;  %v1680_v61 = vmax.f32 %v1552_v16, 0.0  ;;  %v1681_v28 = vmax.f32 %v1553_v31, 0.0 }
 0x24a   : > { %v2257_v47 = vadd.f32 %v1907_v41, %v1893_v32  ;;  %v1682_v1 = vmax.f32 %v1554_v33, 0.0  ;;  %v1579_v2 = vadd.f32 %v3901_v63, %v1429_v56  ;;  %v1580_v3 = vadd.f32 %v3903_v0, %v1430_v57 }
 0x24b   : > { %v2258_v20 = vadd.f32 %v1914_v58, %v1900_v59  ;;  %v1803_v21 = vadd.f32 %v1679_v60, %v1675_v34  ;;  %v1810_v23 = vadd.f32 %v1680_v61, %v1676_v26  ;;  %v1817_v4 = vadd.f32 %v1681_v28, %v1677_v43 }
 0x24c   : > { %v1824_v48 = vadd.f32 %v1682_v1, %v1678_v42  ;;  %v1581_v49 = vadd.f32 %v3905_v44, %v1431_v29  ;;  %v1582_v6 = vadd.f32 %v3907_v45, %v1432_v18  ;;  %v1583_v8 = vadd.f32 %v3901_v63, %v1433_v62  ;;  %v1477_v18 = vld [vmem:[#allocation2 + $0x288] sm:$0xff] }
 0x24d   : > { %v3966_v35 = vadd.f32 %v2258_v20, %v2257_v47  ;;  %v1804_v36 = vrot.slane %v1803_v21, 4  ;;  %v1811_v37 = vrot.slane %v1810_v23, 4  ;;  %v1818_v10 = vrot.slane %v1817_v4, 4  ;;  %v1478_v62 = vld [vmem:[#allocation2 + $0x3a8] sm:$0xff] }
 0x24e   : > { %v1825_v11 = vrot.slane %v1824_v48, 4  ;;  %v1584_v12 = vadd.f32 %v3903_v0, %v1434_v5  ;;  %v1585_v50 = vadd.f32 %v3905_v44, %v1435_v7  ;;  %v1586_v51 = vadd.f32 %v3907_v45, %v1436_v46  ;;  %v1479_v5 = vld [vmem:[#allocation2 + $0x3c8] sm:$0xff]  ;;  %v1480_v7 = vld [vmem:[#allocation2 + $0x160] sm:$0xff] }
 0x24f   : > { %2321 = vrot.lane.b32.xlu0 %v3966_v35, %s3233_s28  ;;  %v1805_v52 = vadd.f32 %v1804_v36, %v1803_v21  ;;  %v1812_v13 = vadd.f32 %v1811_v37, %v1810_v23  ;;  %v1819_v14 = vadd.f32 %v1818_v10, %v1817_v4  ;;  %v1707_v15 = vmax.f32 %v1579_v2, 0.0  ;;  %v1481_v46 = vld [vmem:[#allocation2 + $0x2c8] sm:$0xff] }
 0x250   : > { %v1826_v38 = vadd.f32 %v1825_v11, %v1824_v48  ;;  %v1708_v22 = vmax.f32 %v1580_v3, 0.0  ;;  %v1709_v24 = vmax.f32 %v1581_v49, 0.0  ;;  %v1710_v53 = vmax.f32 %v1582_v6, 0.0 }
 0x251   : > { %v1806_v54 = vrot.slane %v1805_v52, 2  ;;  %v1813_v55 = vrot.slane %v1812_v13, 2  ;;  %v1820_v39 = vrot.slane %v1819_v14, 2  ;;  %v1711_v40 = vmax.f32 %v1583_v8, 0.0 }
 0x252   : > { %v1827_v16 = vrot.slane %v1826_v38, 2  ;;  %v1712_v17 = vmax.f32 %v1584_v12, 0.0  ;;  %v1713_v19 = vmax.f32 %v1585_v50, 0.0  ;;  %v1714_v31 = vmax.f32 %v1586_v51, 0.0  ;;  %v1482_v12 = vld [vmem:[#allocation2 + $0x210] sm:$0xff]  ;;  %v1483_v50 = vld [vmem:[#allocation2 + $0x3d8] sm:$0xff] }
 0x253   : > { %v1807_v33 = vadd.f32 %v1806_v54, %v1805_v52  ;;  %v1814_v32 = vadd.f32 %v1813_v55, %v1812_v13  ;;  %v1821_v27 = vadd.f32 %v1820_v39, %v1819_v14  ;;  %v1915_v34 = vadd.f32 %v1711_v40, %v1707_v15  ;;  %v1484_v51 = vld [vmem:[#allocation2 + $0x1e8] sm:$0xff] }
 0x254   : > { %v1828_v26 = vadd.f32 %v1827_v16, %v1826_v38  ;;  %v1922_v56 = vadd.f32 %v1712_v17, %v1708_v22  ;;  %v1929_v57 = vadd.f32 %v1713_v19, %v1709_v24  ;;  %v1936_v59 = vadd.f32 %v1714_v31, %v1710_v53 }
 0x255   : > { %v1808_v41 = vrot.slane %v1807_v33, 1  ;;  %v1815_v43 = vrot.slane %v1814_v32, 1  ;;  %v1822_v42 = vrot.slane %v1821_v27, 1  ;;  %v1916_v58 = vrot.slane %v1915_v34, 4 }
 0x256   : > { %v1829_v60 = vrot.slane %v1828_v26, 1  ;;  %v1923_v61 = vrot.slane %v1922_v56, 4  ;;  %v1930_v28 = vrot.slane %v1929_v57, 4  ;;  %v1937_v29 = vrot.slane %v1936_v59, 4 }
 0x257   : > { %v1809_v47 = vadd.f32 %v1808_v41, %v1807_v33  ;;  %v1816_v1 = vadd.f32 %v1815_v43, %v1814_v32  ;;  %v1823_v2 = vadd.f32 %v1822_v42, %v1821_v27  ;;  %v1917_v3 = vadd.f32 %v1916_v58, %v1915_v34  ;;  %v1485_v33 = vld [vmem:[#allocation2 + $0x1b0] sm:$0xff] }
 0x258   : > { %v1830_v20 = vadd.f32 %v1829_v60, %v1828_v26  ;;  %v1924_v21 = vadd.f32 %v1923_v61, %v1922_v56  ;;  %v1931_v23 = vadd.f32 %v1930_v28, %v1929_v57  ;;  %v1938_v4 = vadd.f32 %v1937_v29, %v1936_v59  ;;  %v1486_v56 = vld [vmem:[#allocation2 + $0x1c8] sm:$0xff]  ;;  %v1487_v42 = vld [vmem:[#allocation2 + $0x2d0] sm:$0xff]  ;;  %v1489_v29 = vld [vmem:[#allocation2 + $0x58] sm:$0xff] }
 0x259   : > { %v2251_v48 = vadd.f32 %v1823_v2, %v1809_v47  ;;  %v1918_v49 = vrot.slane %v1917_v3, 2  ;;  %v1627_v6 = vadd.f32 %v3901_v63, %v1477_v18  ;;  %v1628_v8 = vadd.f32 %v3903_v0, %v1478_v62  ;;  %v1488_v28 = vld [vmem:[#allocation2 + $0x1d0] sm:$0xff]  ;;  %v1490_v2 = vld [vmem:[#allocation2 + $0x120] sm:$0xff] }
 0x25a   : > { %v2252_v36 = vadd.f32 %v1830_v20, %v1816_v1  ;;  %v1925_v37 = vrot.slane %v1924_v21, 2  ;;  %v1932_v10 = vrot.slane %v1931_v23, 2  ;;  %v1939_v11 = vrot.slane %v1938_v4, 2 }
 0x25b   : > { %v1919_v52 = vadd.f32 %v1918_v49, %v1917_v3  ;;  %v1629_v13 = vadd.f32 %v3905_v44, %v1479_v5  ;;  %v1630_v14 = vadd.f32 %v3907_v45, %v1480_v7  ;;  %v1631_v15 = vadd.f32 %v3901_v63, %v1481_v46  ;;  %v1492_v5 = vld [vmem:[#allocation2 + $0x2e8] sm:$0xff] }
 0x25c   : > { %v3978_v38 = vadd.f32 %v2252_v36, %v2251_v48  ;;  %v1926_v22 = vadd.f32 %v1925_v37, %v1924_v21  ;;  %v1933_v24 = vadd.f32 %v1932_v10, %v1931_v23  ;;  %v1940_v53 = vadd.f32 %v1939_v11, %v1938_v4  ;;  %v1491_v4 = vld [vmem:[#allocation2 + $0x198] sm:$0xff] }
 0x25d   : > { %v1920_v54 = vrot.slane %v1919_v52, 1  ;;  %v1632_v55 = vadd.f32 %v3903_v0, %v1482_v12  ;;  %v1633_v39 = vadd.f32 %v3905_v44, %v1483_v50  ;;  %v1634_v40 = vadd.f32 %v3907_v45, %v1484_v51 }
 0x25e   : > { %2315 = vrot.lane.b32.xlu1 %v3978_v38, %s3233_s28  ;;  %v1927_v16 = vrot.slane %v1926_v22, 1  ;;  %v1934_v17 = vrot.slane %v1933_v24, 1  ;;  %v1941_v19 = vrot.slane %v1940_v53, 1  ;;  %v1755_v31 = vmax.f32 %v1627_v6, 0.0 }
 0x25f   : > { %v1921_v32 = vadd.f32 %v1920_v54, %v1919_v52  ;;  %v1756_v27 = vmax.f32 %v1628_v8, 0.0  ;;  %v1757_v34 = vmax.f32 %v1629_v13, 0.0  ;;  %v1758_v26 = vmax.f32 %v1630_v14, 0.0 }
 0x260   : > { %v1928_v57 = vadd.f32 %v1927_v16, %v1926_v22  ;;  %v1935_v59 = vadd.f32 %v1934_v17, %v1933_v24  ;;  %v1942_v41 = vadd.f32 %v1941_v19, %v1940_v53  ;;  %v1759_v43 = vmax.f32 %v1631_v15, 0.0 }
 0x261   : > { %v1760_v58 = vmax.f32 %v1632_v55, 0.0  ;;  %v1761_v60 = vmax.f32 %v1633_v39, 0.0  ;;  %v1762_v61 = vmax.f32 %v1634_v40, 0.0  ;;  %v1635_v18 = vadd.f32 %v3901_v63, %v1485_v33 }
 0x262   : > { %v2259_v62 = vadd.f32 %v1935_v59, %v1921_v32  ;;  %v2260_v47 = vadd.f32 %v1942_v41, %v1928_v57  ;;  %v2083_v1 = vadd.f32 %v1759_v43, %v1755_v31  ;;  %v1636_v3 = vadd.f32 %v3903_v0, %v1486_v56 }
 0x263   : > { %v2090_v20 = vadd.f32 %v1760_v58, %v1756_v27  ;;  %v2097_v21 = vadd.f32 %v1761_v60, %v1757_v34  ;;  %v2104_v23 = vadd.f32 %v1762_v61, %v1758_v26  ;;  %v1637_v7 = vadd.f32 %v3905_v44, %v1487_v42  ;;  %v1461_v61 = vld [vmem:[#allocation2 + $0x130] sm:$0xff] }
 0x264   : > { %v3988_v46 = vadd.f32 %v2260_v47, %v2259_v62  ;;  %v2084_v48 = vrot.slane %v2083_v1, 4  ;;  %v1638_v49 = vadd.f32 %v3907_v45, %v1488_v28  ;;  %v1639_v6 = vadd.f32 %v3901_v63, %v1489_v29  ;;  %v1462_v47 = vld [vmem:[#allocation2 + $0x200] sm:$0xff] }
 0x265   : > { %v2091_v8 = vrot.slane %v2090_v20, 4  ;;  %v2098_v36 = vrot.slane %v2097_v21, 4  ;;  %v2105_v37 = vrot.slane %v2104_v23, 4  ;;  %v1640_v10 = vadd.f32 %v3903_v0, %v1490_v2 }
 0x266   : > { %2323 = vrot.lane.b32.xlu0 %v3988_v46, %s3233_s28  ;;  %v2085_v11 = vadd.f32 %v2084_v48, %v2083_v1  ;;  %v1641_v12 = vadd.f32 %v3905_v44, %v1491_v4  ;;  %v1642_v50 = vadd.f32 %v3907_v45, %v1492_v5  ;;  %v1763_v51 = vmax.f32 %v1635_v18, 0.0  ;;  %v1465_v48 = vld [vmem:[#allocation2 + $0x70] sm:$0xff] }
 0x267   : > { %v2092_v52 = vadd.f32 %v2091_v8, %v2090_v20  ;;  %v2099_v13 = vadd.f32 %v2098_v36, %v2097_v21  ;;  %v2106_v14 = vadd.f32 %v2105_v37, %v2104_v23  ;;  %v1764_v15 = vmax.f32 %v1636_v3, 0.0  ;;  %v1463_v21 = vld [vmem:[#allocation2 + $0x318] sm:$0xff]  ;;  %v1466_v37 = vld [vmem:[#allocation2 + $0x300] sm:$0xff] }
 0x268   : > { %v2086_v22 = vrot.slane %v2085_v11, 2  ;;  %v1765_v24 = vmax.f32 %v1637_v7, 0.0  ;;  %v1766_v53 = vmax.f32 %v1638_v49, 0.0  ;;  %v1767_v54 = vmax.f32 %v1639_v6, 0.0  ;;  %v1464_v7 = vld [vmem:[#allocation2 + $0x220] sm:$0xff] }
 0x269   : > { %v2093_v55 = vrot.slane %v2092_v52, 2  ;;  %v2100_v39 = vrot.slane %v2099_v13, 2  ;;  %v2107_v40 = vrot.slane %v2106_v14, 2  ;;  %v1768_v16 = vmax.f32 %v1640_v10, 0.0 }
 0x26a   : > { %v2087_v17 = vadd.f32 %v2086_v22, %v2085_v11  ;;  %v1769_v19 = vmax.f32 %v1641_v12, 0.0  ;;  %v1770_v31 = vmax.f32 %v1642_v50, 0.0  ;;  %v2111_v33 = vadd.f32 %v1767_v54, %v1763_v51  ;;  %v1467_v51 = vld [vmem:[#allocation2 + $0xe0] sm:$0xff] }
 0x26b   : > { %v2094_v32 = vadd.f32 %v2093_v55, %v2092_v52  ;;  %v2101_v27 = vadd.f32 %v2100_v39, %v2099_v13  ;;  %v2108_v34 = vadd.f32 %v2107_v40, %v2106_v14  ;;  %v2118_v26 = vadd.f32 %v1768_v16, %v1764_v15  ;;  %v1468_v52 = vld [vmem:[#allocation2 + $0x178] sm:$0xff] }
 0x26c   : > { %v2088_v56 = vrot.slane %v2087_v17, 1  ;;  %v2112_v57 = vrot.slane %v2111_v33, 4  ;;  %v2125_v59 = vadd.f32 %v1769_v19, %v1765_v24  ;;  %v2132_v41 = vadd.f32 %v1770_v31, %v1766_v53 }
 0x26d   : > { %v2095_v43 = vrot.slane %v2094_v32, 1  ;;  %v2102_v42 = vrot.slane %v2101_v27, 1  ;;  %v2109_v58 = vrot.slane %v2108_v34, 1  ;;  %v2119_v60 = vrot.slane %v2118_v26, 4 }
 0x26e   : > { %v2089_v28 = vadd.f32 %v2088_v56, %v2087_v17  ;;  %v2113_v29 = vadd.f32 %v2112_v57, %v2111_v33  ;;  %v2126_v18 = vrot.slane %v2125_v59, 4  ;;  %v2133_v62 = vrot.slane %v2132_v41, 4 }
 0x26f   : > { %v2096_v1 = vadd.f32 %v2095_v43, %v2094_v32  ;;  %v2103_v2 = vadd.f32 %v2102_v42, %v2101_v27  ;;  %v2110_v3 = vadd.f32 %v2109_v58, %v2108_v34  ;;  %v2120_v20 = vadd.f32 %v2119_v60, %v2118_v26  ;;  %v1493_v34 = vld [vmem:[#allocation2 + $0x1f8] sm:$0xff] }
 0x270   : > { %v2114_v23 = vrot.slane %v2113_v29, 2  ;;  %v2127_v4 = vadd.f32 %v2126_v18, %v2125_v59  ;;  %v2134_v5 = vadd.f32 %v2133_v62, %v2132_v41  ;;  %v1611_v49 = vadd.f32 %v3901_v63, %v1461_v61  ;;  %v1494_v26 = vld [vmem:[#allocation2 + $0x238] sm:$0xff]  ;;  %v1497_v62 = vld [vmem:[#allocation2 + $0x1a0] sm:$0xff] }
 0x271   : > { %v2271_v6 = vadd.f32 %v2103_v2, %v2089_v28  ;;  %v2272_v8 = vadd.f32 %v2110_v3, %v2096_v1  ;;  %v2121_v36 = vrot.slane %v2120_v20, 2  ;;  %v1612_v10 = vadd.f32 %v3903_v0, %v1462_v47  ;;  %v1495_v61 = vld [vmem:[#allocation2 + $0x398] sm:$0xff]  ;;  %v1496_v28 = vld [vmem:[#allocation2 + $0x390] sm:$0xff] }
 0x272   : > { %v2115_v11 = vadd.f32 %v2114_v23, %v2113_v29  ;;  %v2128_v12 = vrot.slane %v2127_v4, 2  ;;  %v2135_v50 = vrot.slane %v2134_v5, 2  ;;  %v1613_v13 = vadd.f32 %v3905_v44, %v1463_v21  ;;  %v1498_v23 = vld [vmem:[#allocation2 + $0xa8] sm:$0xff] }
 0x273   : > { %v4000_v14 = vadd.f32 %v2272_v8, %v2271_v6  ;;  %v2122_v15 = vadd.f32 %v2121_v36, %v2120_v20  ;;  %v1614_v22 = vadd.f32 %v3907_v45, %v1464_v7  ;;  %v1615_v24 = vadd.f32 %v3901_v63, %v1465_v48  ;;  %v1500_v48 = vld [vmem:[#allocation2 + $0x2d8] sm:$0xff] }
 0x274   : > { %v2116_v53 = vrot.slane %v2115_v11, 1  ;;  %v2129_v54 = vadd.f32 %v2128_v12, %v2127_v4  ;;  %v2136_v55 = vadd.f32 %v2135_v50, %v2134_v5  ;;  %v1616_v39 = vadd.f32 %v3903_v0, %v1466_v37  ;;  %v1499_v4 = vld [vmem:[#allocation2 + $0x258] sm:$0xff] }
 0x275   : > { %2335 = vrot.lane.b32.xlu1 %v4000_v14, %s3233_s28  ;;  %v2123_v40 = vrot.slane %v2122_v15, 1  ;;  %v1617_v16 = vadd.f32 %v3905_v44, %v1467_v51  ;;  %v1618_v17 = vadd.f32 %v3907_v45, %v1468_v52  ;;  %v1739_v19 = vmax.f32 %v1611_v49, 0.0 }
 0x276   : > { %v2117_v31 = vadd.f32 %v2116_v53, %v2115_v11  ;;  %v2130_v33 = vrot.slane %v2129_v54, 1  ;;  %v2137_v32 = vrot.slane %v2136_v55, 1  ;;  %v1740_v27 = vmax.f32 %v1612_v10, 0.0 }
 0x277   : > { %v2124_v56 = vadd.f32 %v2123_v40, %v2122_v15  ;;  %v1741_v57 = vmax.f32 %v1613_v13, 0.0  ;;  %v1742_v59 = vmax.f32 %v1614_v22, 0.0  ;;  %v1743_v41 = vmax.f32 %v1615_v24, 0.0 }
 0x278   : > { %v2131_v43 = vadd.f32 %v2130_v33, %v2129_v54  ;;  %v2138_v42 = vadd.f32 %v2137_v32, %v2136_v55  ;;  %v1744_v58 = vmax.f32 %v1616_v39, 0.0  ;;  %v1745_v60 = vmax.f32 %v1617_v16, 0.0 }
 0x279   : > { %v1746_v29 = vmax.f32 %v1618_v17, 0.0  ;;  %v2027_v18 = vadd.f32 %v1743_v41, %v1739_v19  ;;  %v1643_v47 = vadd.f32 %v3901_v63, %v1493_v34  ;;  %v1644_v1 = vadd.f32 %v3903_v0, %v1494_v26 }
 0x27a   : > { %v2273_v2 = vadd.f32 %v2131_v43, %v2117_v31  ;;  %v2274_v3 = vadd.f32 %v2138_v42, %v2124_v56  ;;  %v2034_v20 = vadd.f32 %v1744_v58, %v1740_v27  ;;  %v2041_v21 = vadd.f32 %v1745_v60, %v1741_v57 }
 0x27b   : > { %v2028_v5 = vrot.slane %v2027_v18, 4  ;;  %v2048_v7 = vadd.f32 %v1746_v29, %v1742_v59  ;;  %v1645_v49 = vadd.f32 %v3905_v44, %v1495_v61  ;;  %v1646_v6 = vadd.f32 %v3907_v45, %v1496_v28  ;;  %v1437_v28 = vld [vmem:[#allocation2 + $0x2a0] sm:$0xff] }
 0x27c   : > { %v4013_v8 = vadd.f32 %v2274_v3, %v2273_v2  ;;  %v2035_v36 = vrot.slane %v2034_v20, 4  ;;  %v2042_v37 = vrot.slane %v2041_v21, 4  ;;  %v1647_v10 = vadd.f32 %v3901_v63, %v1497_v62 }
 0x27d   : > { %v2029_v11 = vadd.f32 %v2028_v5, %v2027_v18  ;;  %v2049_v12 = vrot.slane %v2048_v7, 4  ;;  %v1648_v50 = vadd.f32 %v3903_v0, %v1498_v23  ;;  %v1649_v51 = vadd.f32 %v3905_v44, %v1499_v4  ;;  %v1439_v23 = vld [vmem:[#allocation2 + $0xa0] sm:$0xff] }
 0x27e   : > { %2337 = vrot.lane.b32.xlu0 %v4013_v8, %s3233_s28  ;;  %v2036_v52 = vadd.f32 %v2035_v36, %v2034_v20  ;;  %v2043_v13 = vadd.f32 %v2042_v37, %v2041_v21  ;;  %v1650_v15 = vadd.f32 %v3907_v45, %v1500_v48  ;;  %v1771_v22 = vmax.f32 %v1643_v47, 0.0  ;;  %v1440_v48 = vld [vmem:[#allocation2 + $0x2c0] sm:$0xff] }
 0x27f   : > { %v2030_v24 = vrot.slane %v2029_v11, 2  ;;  %v2050_v53 = vadd.f32 %v2049_v12, %v2048_v7  ;;  %v1772_v54 = vmax.f32 %v1644_v1, 0.0  ;;  %v1773_v55 = vmax.f32 %v1645_v49, 0.0  ;;  %v1438_v1 = vld [vmem:[#allocation2 + $0x3f0] sm:$0xff] }
 0x280   : > { %v2037_v39 = vrot.slane %v2036_v52, 2  ;;  %v2044_v40 = vrot.slane %v2043_v13, 2  ;;  %v1774_v16 = vmax.f32 %v1646_v6, 0.0  ;;  %v1775_v17 = vmax.f32 %v1647_v10, 0.0  ;;  %v1441_v49 = vld [vmem:[#allocation2 + $0xb0] sm:$0xff] }
 0x281   : > { %v2031_v19 = vadd.f32 %v2030_v24, %v2029_v11  ;;  %v2051_v31 = vrot.slane %v2050_v53, 2  ;;  %v1776_v33 = vmax.f32 %v1648_v50, 0.0  ;;  %v1777_v32 = vmax.f32 %v1649_v51, 0.0  ;;  %v1442_v11 = vld [vmem:[#allocation2 + $0x1e0] sm:$0xff] }
 0x282   : > { %v2038_v27 = vadd.f32 %v2037_v39, %v2036_v52  ;;  %v2045_v34 = vadd.f32 %v2044_v40, %v2043_v13  ;;  %v1778_v26 = vmax.f32 %v1650_v15, 0.0  ;;  %v2139_v56 = vadd.f32 %v1775_v17, %v1771_v22  ;;  %v1443_v13 = vld [vmem:[#allocation2 + $0x1f0] sm:$0xff] }
 0x283   : > { %v2032_v57 = vrot.slane %v2031_v19, 1  ;;  %v2052_v59 = vadd.f32 %v2051_v31, %v2050_v53  ;;  %v2146_v41 = vadd.f32 %v1776_v33, %v1772_v54  ;;  %v2153_v43 = vadd.f32 %v1777_v32, %v1773_v55  ;;  %v1444_v15 = vld [vmem:[#allocation2 + $0x10] sm:$0xff] }
 0x284   : > { %v2039_v42 = vrot.slane %v2038_v27, 1  ;;  %v2046_v58 = vrot.slane %v2045_v34, 1  ;;  %v2140_v60 = vrot.slane %v2139_v56, 4  ;;  %v2160_v61 = vadd.f32 %v1778_v26, %v1774_v16 }
 0x285   : > { %v2033_v29 = vadd.f32 %v2032_v57, %v2031_v19  ;;  %v2053_v18 = vrot.slane %v2052_v59, 1  ;;  %v2147_v62 = vrot.slane %v2146_v41, 4  ;;  %v2154_v47 = vrot.slane %v2153_v43, 4  ;;  %v1501_v57 = vld [vmem:[#allocation2 + $0xf0] sm:$0xff] }
 0x286   : > { %v2040_v2 = vadd.f32 %v2039_v42, %v2038_v27  ;;  %v2047_v3 = vadd.f32 %v2046_v58, %v2045_v34  ;;  %v2141_v20 = vadd.f32 %v2140_v60, %v2139_v56  ;;  %v2161_v21 = vrot.slane %v2160_v61, 4  ;;  %v1502_v58 = vld [vmem:[#allocation2 + $0x180] sm:$0xff] }
 0x287   : > { %v2054_v4 = vadd.f32 %v2053_v18, %v2052_v59  ;;  %v2148_v5 = vadd.f32 %v2147_v62, %v2146_v41  ;;  %v2155_v7 = vadd.f32 %v2154_v47, %v2153_v43  ;;  %v1587_v6 = vadd.f32 %v3901_v63, %v1437_v28  ;;  %v1503_v18 = vld [vmem:[#allocation2 + $0x170] sm:$0xff] }
 0x288   : > { %v2267_v36 = vadd.f32 %v2047_v3, %v2033_v29  ;;  %v2142_v37 = vrot.slane %v2141_v20, 2  ;;  %v2162_v10 = vadd.f32 %v2161_v21, %v2160_v61  ;;  %v1588_v12 = vadd.f32 %v3903_v0, %v1438_v1  ;;  %v1505_v3 = vld [vmem:[#allocation2 + $0x250] sm:$0xff] }
 0x289   : > { %v2268_v50 = vadd.f32 %v2054_v4, %v2040_v2  ;;  %v2149_v51 = vrot.slane %v2148_v5, 2  ;;  %v2156_v52 = vrot.slane %v2155_v7, 2  ;;  %v1589_v22 = vadd.f32 %v3905_v44, %v1439_v23  ;;  %v1504_v2 = vld [vmem:[#allocation2 + $0x3d0] sm:$0xff] }
 0x28a   : > { %v2143_v24 = vadd.f32 %v2142_v37, %v2141_v20  ;;  %v2163_v53 = vrot.slane %v2162_v10, 2  ;;  %v1590_v54 = vadd.f32 %v3907_v45, %v1440_v48  ;;  %v1591_v55 = vadd.f32 %v3901_v63, %v1441_v49  ;;  %v1508_v37 = vld [vmem:[#allocation2 + $0x38] sm:$0xff] }
 0x28b   : > { %v4026_v39 = vadd.f32 %v2268_v50, %v2267_v36  ;;  %v2150_v40 = vadd.f32 %v2149_v51, %v2148_v5  ;;  %v2157_v16 = vadd.f32 %v2156_v52, %v2155_v7  ;;  %v1592_v17 = vadd.f32 %v3903_v0, %v1442_v11  ;;  %v1506_v5 = vld [vmem:[#allocation2 + $0x378] sm:$0xff] }
 0x28c   : > { %v2144_v19 = vrot.slane %v2143_v24, 1  ;;  %v2164_v31 = vadd.f32 %v2163_v53, %v2162_v10  ;;  %v1593_v33 = vadd.f32 %v3905_v44, %v1443_v13  ;;  %v1594_v32 = vadd.f32 %v3907_v45, %v1444_v15  ;;  %v1507_v36 = vld [vmem:[#allocation2 + $0xb8] sm:$0xff] }
 0x28d   : > { %2331 = vrot.lane.b32.xlu1 %v4026_v39, %s3233_s28  ;;  %v2151_v27 = vrot.slane %v2150_v40, 1  ;;  %v2158_v34 = vrot.slane %v2157_v16, 1  ;;  %v1715_v26 = vmax.f32 %v1587_v6, 0.0  ;;  %v1716_v56 = vmax.f32 %v1588_v12, 0.0 }
 0x28e   : > { %v2145_v59 = vadd.f32 %v2144_v19, %v2143_v24  ;;  %v2165_v41 = vrot.slane %v2164_v31, 1  ;;  %v1717_v43 = vmax.f32 %v1589_v22, 0.0  ;;  %v1718_v42 = vmax.f32 %v1590_v54, 0.0 }
 0x28f   : > { %v2152_v60 = vadd.f32 %v2151_v27, %v2150_v40  ;;  %v2159_v61 = vadd.f32 %v2158_v34, %v2157_v16  ;;  %v1719_v28 = vmax.f32 %v1591_v55, 0.0  ;;  %v1720_v29 = vmax.f32 %v1592_v17, 0.0 }
 0x290   : > { %v2166_v62 = vadd.f32 %v2165_v41, %v2164_v31  ;;  %v1721_v47 = vmax.f32 %v1593_v33, 0.0  ;;  %v1722_v1 = vmax.f32 %v1594_v32, 0.0  ;;  %v1651_v20 = vadd.f32 %v3901_v63, %v1501_v57 }
 0x291   : > { %v2275_v21 = vadd.f32 %v2159_v61, %v2145_v59  ;;  %v1943_v23 = vadd.f32 %v1719_v28, %v1715_v26  ;;  %v1950_v4 = vadd.f32 %v1720_v29, %v1716_v56  ;;  %v1652_v7 = vadd.f32 %v3903_v0, %v1502_v58 }
 0x292   : > { %v2276_v48 = vadd.f32 %v2166_v62, %v2152_v60  ;;  %v1957_v49 = vadd.f32 %v1721_v47, %v1717_v43  ;;  %v1964_v6 = vadd.f32 %v1722_v1, %v1718_v42  ;;  %v1653_v10 = vadd.f32 %v3905_v44, %v1503_v18 }
 0x293   : > { %v1944_v11 = vrot.slane %v1943_v23, 4  ;;  %v1951_v12 = vrot.slane %v1950_v4, 4  ;;  %v1654_v50 = vadd.f32 %v3907_v45, %v1504_v2  ;;  %v1655_v51 = vadd.f32 %v3901_v63, %v1505_v3 }
 0x294   : > { %v4038_v52 = vadd.f32 %v2276_v48, %v2275_v21  ;;  %v1958_v13 = vrot.slane %v1957_v49, 4  ;;  %v1965_v15 = vrot.slane %v1964_v6, 4  ;;  %v1656_v22 = vadd.f32 %v3903_v0, %v1506_v5  ;;  %v1445_v21 = vld [vmem:[#allocation2 + $0x230] sm:$0xff] }
 0x295   : > { %v1945_v24 = vadd.f32 %v1944_v11, %v1943_v23  ;;  %v1952_v53 = vadd.f32 %v1951_v12, %v1950_v4  ;;  %v1657_v54 = vadd.f32 %v3905_v44, %v1507_v36  ;;  %v1658_v55 = vadd.f32 %v3907_v45, %v1508_v37  ;;  %v1446_v23 = vld [vmem:[#allocation2 + $0x240] sm:$0xff] }
 0x296   : > { %2339 = vrot.lane.b32.xlu0 %v4038_v52, %s3233_s28  ;;  %v1959_v40 = vadd.f32 %v1958_v13, %v1957_v49  ;;  %v1966_v16 = vadd.f32 %v1965_v15, %v1964_v6  ;;  %v1779_v17 = vmax.f32 %v1651_v20, 0.0  ;;  %v1780_v19 = vmax.f32 %v1652_v7, 0.0  ;;  %v1448_v11 = vld [vmem:[#allocation2 + $0x3a0] sm:$0xff] }
 0x297   : > { %v1946_v31 = vrot.slane %v1945_v24, 2  ;;  %v1953_v33 = vrot.slane %v1952_v53, 2  ;;  %v1781_v32 = vmax.f32 %v1653_v10, 0.0  ;;  %v1782_v27 = vmax.f32 %v1654_v50, 0.0  ;;  %v1447_v10 = vld [vmem:[#allocation2 + $0x90] sm:$0xff] }
 0x298   : > { %v1960_v34 = vrot.slane %v1959_v40, 2  ;;  %v1967_v26 = vrot.slane %v1966_v16, 2  ;;  %v1783_v56 = vmax.f32 %v1655_v51, 0.0  ;;  %v1784_v57 = vmax.f32 %v1656_v22, 0.0  ;;  %v1449_v51 = vld [vmem:[#allocation2 + $0x208] sm:$0xff] }
 0x299   : > { %v1947_v59 = vadd.f32 %v1946_v31, %v1945_v24  ;;  %v1954_v41 = vadd.f32 %v1953_v33, %v1952_v53  ;;  %v1785_v43 = vmax.f32 %v1657_v54, 0.0  ;;  %v1786_v42 = vmax.f32 %v1658_v55, 0.0  ;;  %v1450_v55 = vld [vmem:[#allocation2 + $0xd0] sm:$0xff] }
 0x29a   : > { %v1961_v58 = vadd.f32 %v1960_v34, %v1959_v40  ;;  %v1968_v60 = vadd.f32 %v1967_v26, %v1966_v16  ;;  %v2167_v61 = vadd.f32 %v1783_v56, %v1779_v17  ;;  %v2174_v28 = vadd.f32 %v1784_v57, %v1780_v19  ;;  %v1451_v40 = vld [vmem:[#allocation2 + $0x88] sm:$0xff]  ;;  %v1452_v19 = vld [vmem:[#allocation2 + $0x2f0] sm:$0xff] }
 0x29b   : > { %v1948_v29 = vrot.slane %v1947_v59, 1  ;;  %v1955_v18 = vrot.slane %v1954_v41, 1  ;;  %v2181_v62 = vadd.f32 %v1785_v43, %v1781_v32  ;;  %v2188_v47 = vadd.f32 %v1786_v42, %v1782_v27 }
 0x29c   : > { %v1962_v1 = vrot.slane %v1961_v58, 1  ;;  %v1969_v2 = vrot.slane %v1968_v60, 1  ;;  %v2168_v3 = vrot.slane %v2167_v61, 4  ;;  %v2175_v20 = vrot.slane %v2174_v28, 4 }
 0x29d   : > { %v1949_v4 = vadd.f32 %v1948_v29, %v1947_v59  ;;  %v1956_v5 = vadd.f32 %v1955_v18, %v1954_v41  ;;  %v2182_v7 = vrot.slane %v2181_v62, 4  ;;  %v2189_v48 = vrot.slane %v2188_v47, 4 }
 0x29e   : > { %v1963_v49 = vadd.f32 %v1962_v1, %v1961_v58  ;;  %v1970_v6 = vadd.f32 %v1969_v2, %v1968_v60  ;;  %v2169_v36 = vadd.f32 %v2168_v3, %v2167_v61  ;;  %v2176_v37 = vadd.f32 %v2175_v20, %v2174_v28 }
 0x29f   : > { %v2183_v12 = vadd.f32 %v2182_v7, %v2181_v62  ;;  %v2190_v50 = vadd.f32 %v2189_v48, %v2188_v47  ;;  %v1595_v13 = vadd.f32 %v3901_v63, %v1445_v21  ;;  %v1596_v15 = vadd.f32 %v3903_v0, %v1446_v23  ;;  %v1509_v62 = vld [vmem:[#allocation2 + $0x78] sm:$0xff]  ;;  %v1510_v47 = vld [vmem:[#allocation2 + $0x308] sm:$0xff]  ;;  %v1511_v7 = vld [vmem:[#allocation2 + $0x370] sm:$0xff] }
 0x2a0   : > { %v2261_v22 = vadd.f32 %v1963_v49, %v1949_v4  ;;  %v2262_v24 = vadd.f32 %v1970_v6, %v1956_v5  ;;  %v2170_v53 = vrot.slane %v2169_v36, 2  ;;  %v2177_v54 = vrot.slane %v2176_v37, 2  ;;  %v1512_v48 = vld [vmem:[#allocation2 + $0xc8] sm:$0xff] }
 0x2a1   : > { %v2184_v16 = vrot.slane %v2183_v12, 2  ;;  %v2191_v17 = vrot.slane %v2190_v50, 2  ;;  %v1597_v31 = vadd.f32 %v3905_v44, %v1447_v10  ;;  %v1598_v33 = vadd.f32 %v3907_v45, %v1448_v11 }
 0x2a2   : > { %v4049_v32 = vadd.f32 %v2262_v24, %v2261_v22  ;;  %v2171_v27 = vadd.f32 %v2170_v53, %v2169_v36  ;;  %v2178_v34 = vadd.f32 %v2177_v54, %v2176_v37  ;;  %v1599_v26 = vadd.f32 %v3901_v63, %v1449_v51  ;;  %v1513_v36 = vld [vmem:[#allocation2 + $0x278] sm:$0xff]  ;;  %v1516_v53 = vld [vmem:[#allocation2 + $0x348] sm:$0xff] }
 0x2a3   : > { %v2185_v56 = vadd.f32 %v2184_v16, %v2183_v12  ;;  %v2192_v57 = vadd.f32 %v2191_v17, %v2190_v50  ;;  %v1600_v59 = vadd.f32 %v3903_v0, %v1450_v55  ;;  %v1601_v41 = vadd.f32 %v3905_v44, %v1451_v40 }
 0x2a4   : > { %2325 = vrot.lane.b32.xlu1 %v4049_v32, %s3233_s28  ;;  %v2172_v43 = vrot.slane %v2171_v27, 1  ;;  %v2179_v42 = vrot.slane %v2178_v34, 1  ;;  %v1602_v58 = vadd.f32 %v3907_v45, %v1452_v19  ;;  %v1723_v60 = vmax.f32 %v1595_v13, 0.0  ;;  %v1514_v13 = vld [vmem:[#allocation2 + $0x360] sm:$0xff] }
 0x2a5   : > { %v2186_v61 = vrot.slane %v2185_v56, 1  ;;  %v2193_v28 = vrot.slane %v2192_v57, 1  ;;  %v1724_v29 = vmax.f32 %v1596_v15, 0.0  ;;  %v1725_v18 = vmax.f32 %v1597_v31, 0.0  ;;  %v1515_v15 = vld [vmem:[#allocation2 + $0x228] sm:$0xff] }
 0x2a6   : > { %v2173_v1 = vadd.f32 %v2172_v43, %v2171_v27  ;;  %v2180_v2 = vadd.f32 %v2179_v42, %v2178_v34  ;;  %v1726_v3 = vmax.f32 %v1598_v33, 0.0  ;;  %v1727_v20 = vmax.f32 %v1599_v26, 0.0 }
 0x2a7   : > { %v2187_v21 = vadd.f32 %v2186_v61, %v2185_v56  ;;  %v2194_v23 = vadd.f32 %v2193_v28, %v2192_v57  ;;  %v1728_v4 = vmax.f32 %v1600_v59, 0.0  ;;  %v1729_v5 = vmax.f32 %v1601_v41, 0.0 }
 0x2a8   : > { %v1730_v49 = vmax.f32 %v1602_v58, 0.0  ;;  %v1971_v6 = vadd.f32 %v1727_v20, %v1723_v60  ;;  %v1659_v37 = vadd.f32 %v3901_v63, %v1509_v62  ;;  %v1660_v10 = vadd.f32 %v3903_v0, %v1510_v47 }
 0x2a9   : > { %v2277_v11 = vadd.f32 %v2187_v21, %v2173_v1  ;;  %v2278_v12 = vadd.f32 %v2194_v23, %v2180_v2  ;;  %v1978_v50 = vadd.f32 %v1728_v4, %v1724_v29  ;;  %v1985_v51 = vadd.f32 %v1729_v5, %v1725_v18 }
 0x2aa   : > { %v1972_v22 = vrot.slane %v1971_v6, 4  ;;  %v1992_v24 = vadd.f32 %v1730_v49, %v1726_v3  ;;  %v1661_v54 = vadd.f32 %v3905_v44, %v1511_v7  ;;  %v1662_v55 = vadd.f32 %v3907_v45, %v1512_v48 }
 0x2ab   : > { %v4061_v40 = vadd.f32 %v2278_v12, %v2277_v11  ;;  %v1979_v16 = vrot.slane %v1978_v50, 4  ;;  %v1986_v17 = vrot.slane %v1985_v51, 4  ;;  %v1663_v19 = vadd.f32 %v3901_v63, %v1513_v36 }
 0x2ac   : > { %v1973_v31 = vadd.f32 %v1972_v22, %v1971_v6  ;;  %v1993_v33 = vrot.slane %v1992_v24, 4  ;;  %v1664_v27 = vadd.f32 %v3903_v0, %v1514_v13  ;;  %v1665_v34 = vadd.f32 %v3905_v44, %v1515_v15 }
 0x2ad   : > { %2341 = vrot.lane.b32.xlu0 %v4061_v40, %s3233_s28  ;;  %v1980_v26 = vadd.f32 %v1979_v16, %v1978_v50  ;;  %v1987_v56 = vadd.f32 %v1986_v17, %v1985_v51  ;;  %v1666_v57 = vadd.f32 %v3907_v45, %v1516_v53  ;;  %v1787_v59 = vmax.f32 %v1659_v37, 0.0  ;;  %v1453_v37 = vld [vmem:[#allocation2 + $0x358] sm:$0xff]  ;;  %v1454_v51 = vld [vmem:[#allocation2 + $0x268] sm:$0xff]  ;;  %v1455_v53 = vld [vmem:[#allocation2 + $0x350] sm:$0xff] }
 0x2ae   : > { %v1974_v41 = vrot.slane %v1973_v31, 2  ;;  %v1994_v43 = vadd.f32 %v1993_v33, %v1992_v24  ;;  %v1788_v42 = vmax.f32 %v1660_v10, 0.0  ;;  %v1789_v58 = vmax.f32 %v1661_v54, 0.0  ;;  %v1456_v17 = vld [vmem:[#allocation2 + $0x188] sm:$0xff] }
 0x2af   : > { %v1981_v60 = vrot.slane %v1980_v26, 2  ;;  %v1988_v61 = vrot.slane %v1987_v56, 2  ;;  %v1790_v28 = vmax.f32 %v1662_v55, 0.0  ;;  %v1791_v29 = vmax.f32 %v1663_v19, 0.0  ;;  %v1457_v19 = vld [vmem:[#allocation2 + $0x1d8] sm:$0xff] }
 0x2b0   : > { %v1975_v18 = vadd.f32 %v1974_v41, %v1973_v31  ;;  %v1995_v62 = vrot.slane %v1994_v43, 2  ;;  %v1792_v47 = vmax.f32 %v1664_v27, 0.0  ;;  %v1793_v1 = vmax.f32 %v1665_v34, 0.0 }
 0x2b1   : > { %v1982_v2 = vadd.f32 %v1981_v60, %v1980_v26  ;;  %v1989_v3 = vadd.f32 %v1988_v61, %v1987_v56  ;;  %v1794_v20 = vmax.f32 %v1666_v57, 0.0  ;;  %v2195_v21 = vadd.f32 %v1791_v29, %v1787_v59  ;;  %v1458_v26 = vld [vmem:[#allocation2 + $0x30] sm:$0xff] }
 0x2b2   : > { %v1976_v23 = vrot.slane %v1975_v18, 1  ;;  %v1996_v4 = vadd.f32 %v1995_v62, %v1994_v43  ;;  %v2202_v5 = vadd.f32 %v1792_v47, %v1788_v42  ;;  %v2209_v7 = vadd.f32 %v1793_v1, %v1789_v58  ;;  %v1459_v43 = vld [vmem:[#allocation2 + $0x140] sm:$0xff]  ;;  %v1460_v42 = vld [vmem:[#allocation2 + $0x2a8] sm:$0xff] }
 0x2b3   : > { %v1983_v48 = vrot.slane %v1982_v2, 1  ;;  %v1990_v49 = vrot.slane %v1989_v3, 1  ;;  %v2196_v6 = vrot.slane %v2195_v21, 4  ;;  %v2216_v36 = vadd.f32 %v1794_v20, %v1790_v28 }
 0x2b4   : > { %v1977_v10 = vadd.f32 %v1976_v23, %v1975_v18  ;;  %v1997_v11 = vrot.slane %v1996_v4, 1  ;;  %v2203_v12 = vrot.slane %v2202_v5, 4  ;;  %v2210_v50 = vrot.slane %v2209_v7, 4 }
 0x2b5   : > { %v1984_v13 = vadd.f32 %v1983_v48, %v1982_v2  ;;  %v1991_v15 = vadd.f32 %v1990_v49, %v1989_v3  ;;  %v2197_v22 = vadd.f32 %v2196_v6, %v2195_v21  ;;  %v2217_v24 = vrot.slane %v2216_v36, 4  ;;  %v1517_v48 = vld [vmem:[#allocation2 + $0x148] sm:$0xff] }
 0x2b6   : > { %v1998_v54 = vadd.f32 %v1997_v11, %v1996_v4  ;;  %v2204_v55 = vadd.f32 %v2203_v12, %v2202_v5  ;;  %v2211_v16 = vadd.f32 %v2210_v50, %v2209_v7  ;;  %v1603_v31 = vadd.f32 %v3901_v63, %v1453_v37 }
 0x2b7   : > { %v2263_v33 = vadd.f32 %v1991_v15, %v1977_v10  ;;  %v2198_v27 = vrot.slane %v2197_v22, 2  ;;  %v2218_v34 = vadd.f32 %v2217_v24, %v2216_v36  ;;  %v1604_v56 = vadd.f32 %v3903_v0, %v1454_v51  ;;  %v1518_v10 = vld [vmem:[#allocation2 + $0xf8] sm:$0xff] }
 0x2b8   : > { %v2264_v57 = vadd.f32 %v1998_v54, %v1984_v13  ;;  %v2205_v59 = vrot.slane %v2204_v55, 2  ;;  %v2212_v41 = vrot.slane %v2211_v16, 2  ;;  %v1605_v58 = vadd.f32 %v3905_v44, %v1455_v53  ;;  %v1519_v13 = vld [vmem:[#allocation2 + $0x68] sm:$0xff]  ;;  %v1520_v53 = vld [vmem:[#allocation2] sm:$0xff]  ;;  %v1521_v54 = vld [vmem:[#allocation2 + $0x298] sm:$0xff] }
 0x2b9   : > { %v2199_v60 = vadd.f32 %v2198_v27, %v2197_v22  ;;  %v2219_v61 = vrot.slane %v2218_v34, 2  ;;  %v1606_v28 = vadd.f32 %v3907_v45, %v1456_v17  ;;  %v1607_v29 = vadd.f32 %v3901_v63, %v1457_v19 }
 0x2ba   : > { %v4074_v18 = vadd.f32 %v2264_v57, %v2263_v33  ;;  %v2206_v62 = vadd.f32 %v2205_v59, %v2204_v55  ;;  %v2213_v47 = vadd.f32 %v2212_v41, %v2211_v16  ;;  %v1608_v1 = vadd.f32 %v3903_v0, %v1458_v26  ;;  %v1524_v57 = vld [vmem:[#allocation2 + $0x190] sm:$0xff] }
 0x2bb   : > { %v2200_v2 = vrot.slane %v2199_v60, 1  ;;  %v2220_v3 = vadd.f32 %v2219_v61, %v2218_v34  ;;  %v1609_v20 = vadd.f32 %v3905_v44, %v1459_v43  ;;  %v1610_v21 = vadd.f32 %v3907_v45, %v1460_v42 }
 0x2bc   : > { %2327 = vrot.lane.b32.xlu1 %v4074_v18, %s3233_s28  ;;  %v2207_v23 = vrot.slane %v2206_v62, 1  ;;  %v2214_v4 = vrot.slane %v2213_v47, 1  ;;  %v1731_v5 = vmax.f32 %v1603_v31, 0.0  ;;  %v1732_v7 = vmax.f32 %v1604_v56, 0.0  ;;  %v1522_v31 = vld [vmem:[#allocation2 + $0x270] sm:$0xff] }
 0x2bd   : > { %v2201_v49 = vadd.f32 %v2200_v2, %v2199_v60  ;;  %v2221_v6 = vrot.slane %v2220_v3, 1  ;;  %v1733_v36 = vmax.f32 %v1605_v58, 0.0  ;;  %v1734_v37 = vmax.f32 %v1606_v28, 0.0  ;;  %v1523_v56 = vld [vmem:[#allocation2 + $0x310] sm:$0xff] }
 0x2be   : > { %v2208_v11 = vadd.f32 %v2207_v23, %v2206_v62  ;;  %v2215_v12 = vadd.f32 %v2214_v4, %v2213_v47  ;;  %v1735_v50 = vmax.f32 %v1607_v29, 0.0  ;;  %v1736_v51 = vmax.f32 %v1608_v1, 0.0 }
 0x2bf   : > { %v2222_v15 = vadd.f32 %v2221_v6, %v2220_v3  ;;  %v1737_v22 = vmax.f32 %v1609_v20, 0.0  ;;  %v1738_v24 = vmax.f32 %v1610_v21, 0.0  ;;  %v1667_v55 = vadd.f32 %v3901_v63, %v1517_v48 }
 0x2c0   : > { %v2279_v16 = vadd.f32 %v2215_v12, %v2201_v49  ;;  %v1999_v17 = vadd.f32 %v1735_v50, %v1731_v5  ;;  %v2006_v19 = vadd.f32 %v1736_v51, %v1732_v7  ;;  %v1668_v33 = vadd.f32 %v3903_v0, %v1518_v10 }
 0x2c1   : > { %v2280_v27 = vadd.f32 %v2222_v15, %v2208_v11  ;;  %v2013_v34 = vadd.f32 %v1737_v22, %v1733_v36  ;;  %v2020_v26 = vadd.f32 %v1738_v24, %v1734_v37  ;;  %v1669_v59 = vadd.f32 %v3905_v44, %v1519_v13 }
 0x2c2   : > { %v2000_v41 = vrot.slane %v1999_v17, 4  ;;  %v2007_v43 = vrot.slane %v2006_v19, 4  ;;  %v1670_v42 = vadd.f32 %v3907_v45, %v1520_v53  ;;  %v1671_v58 = vadd.f32 %v3901_v63, %v1521_v54  ;;  %v2318_v63 = vpop.permute.xlu0 %2317 }
 0x2c3   : > { %v4086_v60 = vadd.f32 %v2280_v27, %v2279_v16  ;;  %v2014_v61 = vrot.slane %v2013_v34, 4  ;;  %v2021_v28 = vrot.slane %v2020_v26, 4  ;;  %v1672_v29 = vadd.f32 %v3903_v0, %v1522_v31 }
 0x2c4   : > { %v2001_v62 = vadd.f32 %v2000_v41, %v1999_v17  ;;  %v2008_v47 = vadd.f32 %v2007_v43, %v2006_v19  ;;  %v1673_v1 = vadd.f32 %v3905_v44, %v1523_v56  ;;  %v1674_v2 = vadd.f32 %v3907_v45, %v1524_v57 }
 0x2c5   : > { %2343 = vrot.lane.b32.xlu0 %v4086_v60, %s3233_s28  ;;  %v2015_v3 = vadd.f32 %v2014_v61, %v2013_v34  ;;  %v2022_v20 = vadd.f32 %v2021_v28, %v2020_v26  ;;  %v1795_v21 = vmax.f32 %v1667_v55, 0.0  ;;  %v1796_v23 = vmax.f32 %v1668_v33, 0.0 }
 0x2c6   : > { %v2002_v4 = vrot.slane %v2001_v62, 2  ;;  %v2009_v5 = vrot.slane %v2008_v47, 2  ;;  %v1797_v7 = vmax.f32 %v1669_v59, 0.0  ;;  %v1798_v48 = vmax.f32 %v1670_v42, 0.0  ;;  %v2320_v17 = vpop.permute.xlu0 %2319  ;;  %v2334_v59 = vpop.permute.xlu1 %2333 }
 0x2c7   : > { %v2016_v49 = vrot.slane %v2015_v3, 2  ;;  %v2023_v0 = vrot.slane %v2022_v20, 2  ;;  %v1799_v6 = vmax.f32 %v1671_v58, 0.0  ;;  %v1800_v36 = vmax.f32 %v1672_v29, 0.0 }
 0x2c8   : > { %v2003_v37 = vadd.f32 %v2002_v4, %v2001_v62  ;;  %v2010_v44 = vadd.f32 %v2009_v5, %v2008_v47  ;;  %v1801_v10 = vmax.f32 %v1673_v1, 0.0  ;;  %v1802_v45 = vmax.f32 %v1674_v2, 0.0 }
 0x2c9   : > { %v2017_v11 = vadd.f32 %v2016_v49, %v2015_v3  ;;  %v2024_v12 = vadd.f32 %v2023_v0, %v2022_v20  ;;  %v2223_v50 = vadd.f32 %v1799_v6, %v1795_v21  ;;  %v2230_v51 = vadd.f32 %v1800_v36, %v1796_v23 }
 0x2ca   : > { %v2004_v13 = vrot.slane %v2003_v37, 1  ;;  %v2011_v15 = vrot.slane %v2010_v44, 1  ;;  %v2237_v22 = vadd.f32 %v1801_v10, %v1797_v7  ;;  %v2244_v24 = vadd.f32 %v1802_v45, %v1798_v48  ;;  %v2322_v21 = vpop.permute.xlu0 %2321 }
 0x2cb   : > { %v2018_v53 = vrot.slane %v2017_v11, 1  ;;  %v2025_v54 = vrot.slane %v2024_v12, 1  ;;  %v2224_v55 = vrot.slane %v2223_v50, 4  ;;  %v2231_v16 = vrot.slane %v2230_v51, 4 }
 0x2cc   : > { %v2005_v19 = vadd.f32 %v2004_v13, %v2003_v37  ;;  %v2012_v31 = vadd.f32 %v2011_v15, %v2010_v44  ;;  %v2238_v33 = vrot.slane %v2237_v22, 4  ;;  %v2245_v27 = vrot.slane %v2244_v24, 4 }
 0x2cd   : > { %v2019_v34 = vadd.f32 %v2018_v53, %v2017_v11  ;;  %v2026_v26 = vadd.f32 %v2025_v54, %v2024_v12  ;;  %v2225_v56 = vadd.f32 %v2224_v55, %v2223_v50  ;;  %v2232_v57 = vadd.f32 %v2231_v16, %v2230_v51 }
 0x2ce   : > { %v2239_v41 = vadd.f32 %v2238_v33, %v2237_v22  ;;  %v2246_v43 = vadd.f32 %v2245_v27, %v2244_v24  ;;  %v4094_v42 = vadd.f32 %v2318_v63, %v3927_v25  ;;  %v4099_v1 = vadd.f32 %v2334_v59, %v3939_v9 }
 0x2cf   : > { %v2265_v58 = vadd.f32 %v2019_v34, %v2005_v19  ;;  %v2266_v61 = vadd.f32 %v2026_v26, %v2012_v31  ;;  %v2226_v28 = vrot.slane %v2225_v56, 2  ;;  %v2233_v29 = vrot.slane %v2232_v57, 2 }
 0x2d0   : > { %v2240_v62 = vrot.slane %v2239_v41, 2  ;;  %v2247_v47 = vrot.slane %v2246_v43, 2  ;;  %2397 = vrot.lane.b32.xlu0 %v4094_v42, %s3234_s29  ;;  %v4105_v48 = vadd.f32 %v2322_v21, %v3966_v35  ;;  %v2365_v11 = vadd.f32 %v2320_v17, %v3954_v30  ;;  %v2316_v35 = vpop.permute.xlu1 %2315  ;;  %v2475_v17 = vld [vmem:[%s4238_s3] sm:$0xff] }
 0x2d1   : > { %v2290_v2 = vadd.f32 %v2266_v61, %v2265_v58  ;;  %v2227_v3 = vadd.f32 %v2226_v28, %v2225_v56  ;;  %v2234_v20 = vadd.f32 %v2233_v29, %v2232_v57  ;;  %v2363_v12 = vadd.f32 %v2316_v35, %v3978_v38 }
 0x2d2   : > { %v2241_v23 = vadd.f32 %v2240_v62, %v2239_v41  ;;  %v2248_v25 = vadd.f32 %v2247_v47, %v2246_v43 }
 0x2d3   : > { %2329 = vrot.lane.b32.xlu1 %v2290_v2, %s3233_s28  ;;  %v2228_v63 = vrot.slane %v2227_v3, 1  ;;  %v2235_v4 = vrot.slane %v2234_v20, 1 }
 0x2d4   : > { %v2242_v5 = vrot.slane %v2241_v23, 1  ;;  %v2249_v7 = vrot.slane %v2248_v25, 1  ;;  %2413 = vrot.lane.b32.xlu0 %v4099_v1, %s3234_s29 }
 0x2d5   : > { %v2229_v9 = vadd.f32 %v2228_v63, %v2227_v3  ;;  %v2236_v49 = vadd.f32 %v2235_v4, %v2234_v20 }
 0x2d6   : > { %v2243_v0 = vadd.f32 %v2242_v5, %v2241_v23  ;;  %v2250_v6 = vadd.f32 %v2249_v7, %v2248_v25 }
 0x2d8   : > { %v2281_v36 = vadd.f32 %v2243_v0, %v2229_v9  ;;  %v2282_v37 = vadd.f32 %v2250_v6, %v2236_v49  ;;  %2401 = vrot.lane.b32.xlu0 %v4105_v48, %s3234_s29  ;;  %v2324_v44 = vpop.permute.xlu0 %2323 }
 0x2d9   : > { %v4110_v10 = vadd.f32 %v2324_v44, %v3988_v46 }
 0x2da   : > { %v2298_v45 = vadd.f32 %v2282_v37, %v2281_v36 }
 0x2dc   : > { %2345 = vrot.lane.b32.xlu1 %v2298_v45, %s3233_s28  ;;  %2403 = vrot.lane.b32.xlu0 %v4110_v10, %s3234_s29 }
 0x2e0   : > { %2399 = vrot.lane.b32.xlu1 %v2365_v11, %s3234_s29 }
 0x2e4   : > { %2395 = vrot.lane.b32.xlu1 %v2363_v12, %s3234_s29 }
 0x2e7   : > { %v2336_v50 = vpop.permute.xlu1 %2335 }
 0x2e8   : > { %v4120_v51 = vadd.f32 %v2336_v50, %v4000_v14 }
 0x2ea   : > { %2415 = vrot.lane.b32.xlu1 %v4120_v51, %s3234_s29 }
 0x2f0   : > { %v2338_v46 = vpop.permute.xlu0 %2337 }
 0x2f1   : > { %v4125_v30 = vadd.f32 %v2338_v46, %v4013_v8 }
 0x2f3   : > { %2417 = vrot.lane.b32.xlu0 %v4125_v30, %s3234_s29 }
 0x2ff   : > { %v2332_v13 = vpop.permute.xlu1 %2331 }
 0x300   : > { %v4130_v15 = vadd.f32 %v2332_v13, %v4026_v39 }
 0x302   : > { %2411 = vrot.lane.b32.xlu1 %v4130_v15, %s3234_s29 }
 0x308   : > { %v2340_v38 = vpop.permute.xlu0 %2339 }
 0x309   : > { %v4135_v14 = vadd.f32 %v2340_v38, %v4038_v52 }
 0x30b   : > { %2419 = vrot.lane.b32.xlu0 %v4135_v14, %s3234_s29 }
 0x316   : > { %v2326_v22 = vpop.permute.xlu1 %2325 }
 0x317   : > { %v2368_v8 = vadd.f32 %v2326_v22, %v4049_v32  ;;  %v2478_v32 = vld [vmem:[%s4238_s3 + $0x18] sm:$0xff] }
 0x318   : > { %3087 = vmatprep.subr.mxu0 %v2478_v32 }
 0x319   : > { %2405 = vrot.lane.b32.xlu1 %v2368_v8, %s3234_s29  ;;  %3088 = vmatpush3.msra.mxu0 %v2478_v32 }
 0x31f   : > { %v2342_v24 = vpop.permute.xlu0 %2341 }
 0x320   : > { %v4142_v53 = vadd.f32 %v2342_v24, %v4061_v40  ;;  %v2477_v40 = vld [vmem:[%s4238_s3 + $0x10] sm:$0xff] }
 0x321   : > { %3089 = vmatprep.subr.mxu0 %v2477_v40 }
 0x322   : > { %2421 = vrot.lane.b32.xlu0 %v4142_v53, %s3234_s29  ;;  %3090 = vmatpush3.msra.mxu0 %v2477_v40 }
 0x32e   : > { %v2328_v39 = vpop.permute.xlu1 %2327 }
 0x32f   : > { %v2369_v54 = vadd.f32 %v2328_v39, %v4074_v18 }
 0x331   : > { %2407 = vrot.lane.b32.xlu1 %v2369_v54, %s3234_s29 }
 0x337   : > { %v2344_v52 = vpop.permute.xlu0 %2343 }
 0x338   : > { %v4149_v55 = vadd.f32 %v2344_v52, %v4086_v60  ;;  %v2476_v60 = vld [vmem:[%s4238_s3 + $0x8] sm:$0xff] }
 0x339   : > { %3091 = vmatprep.subr.mxu0 %v2476_v60 }
 0x33a   : > { %2423 = vrot.lane.b32.xlu0 %v4149_v55, %s3234_s29  ;;  %3092 = vmatpush3.msra.mxu0 %v2476_v60 }
 0x33b   : > { %3093 = vmatprep.subr.mxu0 %v2475_v17 }
 0x33c   : > { %3094 = vmatpush3.msra.mxu0 %v2475_v17 }
 0x342   : > { %v2398_v33 = vpop.permute.xlu0 %2397 }
 0x343   : > { %v2444_v61 = vadd.f32 %v2398_v33, %v4094_v42 }
 0x345   : > { %v2330_v18 = vpop.permute.xlu1 %2329  ;;  %v2460_v47 = vmul.f32 0.00390625, %v2444_v61 }
 0x346   : > { %v2370_v16 = vadd.f32 %v2330_v18, %v2290_v2  ;;  %v2414_v34 = vpop.permute.xlu0 %2413 }
 0x347   : > { %v2503_v5 = vrot.slane %v2460_v47, 7  ;;  %v2452_v9 = vadd.f32 %v2414_v34, %v4099_v1  ;;  %v3058_v47 = vld [vmem:[%s4238_s3 + $0x30] ss:$0 sm:$0xff] }
 0x348   : > { %2409 = vrot.lane.b32.xlu1 %v2370_v16, %s3234_s29 }
 0x34a   : > { %v2402_v56 = vpop.permute.xlu0 %2401 }
 0x34b   : > { %v2446_v2 = vadd.f32 %v2402_v56, %v4105_v48 }
 0x34d   : > { %v2462_v7 = vmul.f32 0.00390625, %v2446_v2 }
 0x34e   : > { %v2346_v19 = vpop.permute.xlu1 %2345  ;;  %v2404_v59 = vpop.permute.xlu0 %2403 }
 0x34f   : > { %v4166_v31 = vadd.f32 %v2346_v19, %v2298_v45  ;;  %v2447_v20 = vadd.f32 %v2404_v59, %v4110_v10  ;;  %v2509_v37 = vrot.slane %v2462_v7, 5  ;;  %v2468_v10 = vmul.f32 0.00390625, %v2452_v9 }
 0x351   : > { %2425 = vrot.lane.b32.xlu1 %v4166_v31, %s3234_s29  ;;  %v2463_v42 = vmul.f32 0.00390625, %v2447_v20 }
 0x352   : > { %v2400_v27 = vpop.permute.xlu1 %2399 }
 0x353   : > { %v2445_v62 = vadd.f32 %v2400_v27, %v2365_v11  ;;  %v2512_v11 = vrot.slane %v2463_v42, 4 }
 0x355   : > { %v2461_v25 = vmul.f32 0.00390625, %v2445_v62  ;;  %v2480_v62 = vld [vmem:[%s4238_s3 + $0x28] sm:$0xff] }
 0x356   : > { %v2396_v26 = vpop.permute.xlu1 %2395  ;;  %3098 = vmatprep.subr.mxu1 %v2480_v62 }
 0x357   : > { %v2443_v29 = vadd.f32 %v2396_v26, %v2363_v12  ;;  %v2506_v6 = vrot.slane %v2461_v25, 6  ;;  %3099 = vmatpush3.msra.mxu1 %v2480_v62 }
 0x359   : > { %v2459_v21 = vmul.f32 0.00390625, %v2443_v29 }
 0x35b   : > { %v2505_v49 = vsel %vm2504_vm2, %v2503_v5, %v2459_v21 }
 0x35c   : > { %v2416_v57 = vpop.permute.xlu1 %2415  ;;  %v2508_v45 = vsel %vm2507_vm3, %v2506_v6, %v2505_v49 }
 0x35d   : > { %v2453_v44 = vadd.f32 %v2416_v57, %v4120_v51  ;;  %v2511_v51 = vsel %vm2510_vm4, %v2509_v37, %v2508_v45 }
 0x365   : > { %v2418_v43 = vpop.permute.xlu0 %2417 }
 0x366   : > { %v2454_v1 = vadd.f32 %v2418_v43, %v4125_v30  ;;  %v2514_v30 = vsel %vm2513_vm5, %v2512_v11, %v2511_v51 }
 0x368   : > { %v2470_v52 = vmul.f32 0.00390625, %v2454_v1 }
 0x36a   : > { %v2528_v19 = vrot.slane %v2470_v52, 5 }
 0x374   : > { %v2412_v41 = vpop.permute.xlu1 %2411 }
 0x375   : > { %v2451_v48 = vadd.f32 %v2412_v41, %v4130_v15 }
 0x377   : > { %v2467_v15 = vmul.f32 0.00390625, %v2451_v48  ;;  %v3235_v48 = vmov 0.0  }
 0x378   : > { %3110 = vmatprep.subr.mxu0 %v3235_v48 }
 0x37d   : > { %v2420_v28 = vpop.permute.xlu0 %2419 }
 0x37e   : > { %v2455_v50 = vadd.f32 %v2420_v28, %v4135_v14 }
 0x380   : > { %v2471_v14 = vmul.f32 0.00390625, %v2455_v50 }
 0x382   : > { %v2530_v27 = vrot.slane %v2471_v14, 4 }
 0x38b   : > { %v2406_v58 = vpop.permute.xlu1 %2405 }
 0x38c   : > { %v2448_v23 = vadd.f32 %v2406_v58, %v2368_v8  ;;  %v2469_v8 = vmul.f32 0.00390625, %v2453_v44 }
 0x38e   : > { %v2464_v0 = vmul.f32 0.00390625, %v2448_v23  ;;  %v2526_v60 = vrot.slane %v2469_v8, 6 }
 0x390   : > { %v2515_v46 = vrot.slane %v2464_v0, 3 }
 0x392   : > { %v2517_v40 = vsel %vm2516_vm6, %v2515_v46, %v2514_v30 }
 0x394   : > { %v2422_v63 = vpop.permute.xlu0 %2421 }
 0x395   : > { %v2456_v38 = vadd.f32 %v2422_v63, %v4142_v53  ;;  %v3061_v63 = vld [vmem:[%s4238_s3 + $0x38] ss:$0 sm:$0xff] }
 0x397   : > { %v2472_v18 = vmul.f32 0.00390625, %v2456_v38 }
 0x399   : > { %v2532_v26 = vrot.slane %v2472_v18, 3 }
 0x3a3   : > { %v2408_v3 = vpop.permute.xlu1 %2407 }
 0x3a4   : > { %v2449_v4 = vadd.f32 %v2408_v3, %v2369_v54  ;;  %v2524_v54 = vrot.slane %v2468_v10, 7 }
 0x3a6   : > { %v2465_v36 = vmul.f32 0.00390625, %v2449_v4  ;;  %v2525_v53 = vsel %vm2504_vm2, %v2524_v54, %v2467_v15 }
 0x3a7   : > { %v2527_v33 = vsel %vm2507_vm3, %v2526_v60, %v2525_v53 }
 0x3a8   : > { %v2518_v22 = vrot.slane %v2465_v36, 2  ;;  %v2529_v59 = vsel %vm2510_vm4, %v2528_v19, %v2527_v33 }
 0x3a9   : > { %v2531_v43 = vsel %vm2513_vm5, %v2530_v27, %v2529_v59 }
 0x3aa   : > { %v2533_v58 = vsel %vm2516_vm6, %v2532_v26, %v2531_v43 }
 0x3ac   : > { %v2424_v35 = vpop.permute.xlu0 %2423 }
 0x3ad   : > { %v2457_v24 = vadd.f32 %v2424_v35, %v4149_v55 }
 0x3af   : > { %v2473_v17 = vmul.f32 0.00390625, %v2457_v24 }
 0x3b1   : > { %v2534_v57 = vrot.slane %v2473_v17, 2 }
 0x3b3   : > { %v2535_v28 = vsel %vm2519_vm7, %v2534_v57, %v2533_v58 }
 0x3ba   : > { %v2410_v12 = vpop.permute.xlu1 %2409 }
 0x3bb   : > { %v2450_v13 = vadd.f32 %v2410_v12, %v2370_v16  ;;  %v2520_v16 = vsel %vm2519_vm7, %v2518_v22, %v2517_v40 }
 0x3bd   : > { %v2466_v39 = vmul.f32 0.00390625, %v2450_v13 }
 0x3bf   : > { %v2521_v32 = vrot.slane %v2466_v39, 1 }
 0x3c1   : > { %v2523_v55 = vsel %vm2522_vm8, %v2521_v32, %v2520_v16 }
 0x3c2   : > { %3095 = vmatprep.mubr.msk.f32.mxu0 %vm2538_vm9, %v2523_v55 }
 0x3c3   : > { %v2426_v34 = vpop.permute.xlu1 %2425 }
 0x3c4   : > { %v2458_v56 = vadd.f32 %v2426_v34, %v4166_v31  ;;  %v2479_v31 = vld [vmem:[%s4238_s3 + $0x20] sm:$0xff] }
 0x3c5   : > { %3100 = vmatprep.subr.mxu1 %v2479_v31 }
 0x3c6   : > { %v2474_v41 = vmul.f32 0.00390625, %v2458_v56  ;;  %3101 = vmatpush3.msra.mxu1 %v2479_v31 }
 0x3c7   : > { %3105 = vmatprep.subr.mxu1 %v3235_v48 }
 0x3c8   : > { %v2536_v61 = vrot.slane %v2474_v41, 1 }
 0x3ca   : > { %v2537_v29 = vsel %vm2522_vm8, %v2536_v61, %v2535_v28 }
 0x3cb   : > { %3096 = vmatmul.mubr.msk.f32.vlgmr.msra.gmra.mxu0 %vm2538_vm9, %v2537_v29 }
 0x3cc   : > { %3112 = vmatprep.mubr.msk.f32.mxu0 %vm3236_vm11, %v3235_v48 }
 0x48b   : > { %v3097_v2 = vpop.f32.mrf.mxu0 }
 0x48c   : > { %v2615_v3 = vadd.f32 %v3097_v2, %v3058_v47 }
 0x48d   : > { %v2609_v20 = vpop.f32.mrf.mxu0 }
 0x48e   : > { %v2610_v21 = vadd.f32 %v3058_v47, %v2609_v20  ;;  %v2619_v25 = vmax.f32 %v2615_v3, 0.0 }
 0x490   : > { %v2618_v23 = vmax.f32 %v2610_v21, 0.0 }
 0x492   : > { %3102 = vmatprep.mubr.msk.f32.mxu1 %vm2624_vm10, %v2618_v23 }
 0x493   : > { %3103 = vmatmul.mubr.msk.f32.vlgmr.msra.gmra.mxu1 %vm2624_vm10, %v2619_v25 }
 0x494   : > { %3107 = vmatprep.mubr.msk.f32.mxu1 %vm3236_vm11, %v3235_v48 }
 0x553   : > { %v3104_v4 = vpop.f32.mrf.mxu1 }
 0x554   : > { %v2703_v5 = vadd.f32 %v3104_v4, %v3061_v63 }
 0x555   : > { %v2697_v7 = vpop.f32.mrf.mxu1 }
 0x556   : > { %v2698_v9 = vadd.f32 %v3061_v63, %v2697_v7  ;;  %v2707_v42 = vmul.f32 %v2703_v5, %v2703_v5 }
 0x558   : > { %v2711_v49 = vsel %vm2624_vm10, %v2707_v42, 0.0  ;;  %v2706_v0 = vmul.f32 %v2698_v9, %v2698_v9 }
 0x559   : > { %2712 = vadd.xlane.f32.xlu1 %v2711_v49 }
 0x55a   : > { %v2708_v6 = vsel %vm2624_vm10, %v2706_v0, 0.0 }
 0x55b   : > { %2709 = vadd.xlane.f32.xlu0 %v2708_v6 }
 0x5e2   : > { %v2713_v36 = vpop.xlane.xlu1 %2712 }
 0x5e3   : > { %v2715_v37 = vmax.f32 %v2713_v36, 1e-24 }
 0x5e4   : > { %v2710_v44 = vpop.xlane.xlu0 %2709 }
 0x5e5   : > { %3184 = vrsqrt.f32 %v2715_v37  ;;  %v2714_v10 = vmax.f32 %v2710_v44, 1e-24 }
 0x5e7   : > { %3186 = vrsqrt.f32 %v2714_v10 }
 0x5f2   : > { %v3185_v45 = vpop.eup %3184 }
 0x5f3   : > { %v2719_v11 = vmul.f32 %v3185_v45, %v2703_v5 }
 0x5f4   : > { %v3187_v1 = vpop.eup %3186 }
 0x5f5   : > { %3106 = vmatpush3.xpose.msk.msra.mxu1 %vm2624_vm10, %v2719_v11  ;;  %v2718_v35 = vmul.f32 %v3187_v1, %v2698_v9 }
 0x5f7   : > { %3111 = vmatpush3.xpose.msk.msra.mxu0 %vm2624_vm10, %v2718_v35  ;;  %v2868_v12 = vmul.f32 %v2719_v11, %v2718_v35 }
 0x5f8   : > { %3108 = vmatmul.mubr.msk.f32.vlgmr.msra.gmra.mxu1 %vm2624_vm10, %v2718_v35 }
 0x5f9   : > { %v2869_v50 = vsel %vm2624_vm10, %v2868_v12, 0.0 }
 0x5fa   : > { %2870 = vadd.xlane.f32.xlu0 %v2869_v50  ;;  %3113 = vmatmul.mubr.msk.f32.vlgmr.msra.gmra.mxu0 %vm2624_vm10, %v2719_v11 }
 0x683   : > { %v2871_v39 = vpop.xlane.xlu0 %2870 }
 0x684   : > { %v2872_v30 = vmul.f32 2.0, %v2871_v39 }
 0x686   : > { %v2890_v40 = vsel %vm2889_vm13, %v2872_v30, 0.0  ;;  %v2885_v53 = vmul.f32 1.442695, %v2872_v30 }
 0x6b8   : > { %v2792_v46 = vpop.f32.mrf.mxu1 }
 0x6b9   : > { %v2796_v13 = vmul.f32 2.0, %v2792_v46 }
 0x6ba   : > { %v3109_v15 = vpop.f32.mrf.mxu1  ;;  %v2863_v38 = vpop.f32.mrf.mxu0 }
 0x6bb   : > { %v2873_v22 = vmul.f32 1.442695, %v2796_v13  ;;  %v2867_v51 = vmul.f32 2.0, %v2863_v38 }
 0x6bc   : > { %v3114_v8 = vpop.f32.mrf.mxu0 }
 0x6bd   : > { %3188 = vpow2.f32 %v2873_v22  ;;  %v2879_v24 = vmul.f32 1.442695, %v2867_v51 }
 0x6bf   : > { %3190 = vpow2.f32 %v2879_v24 }
 0x6c0   : > { %3192 = vpow2.f32 %v2885_v53 }
 0x6ca   : > { %v3189_v54 = vpop.eup %3188 }
 0x6cb   : > { %v2876_v52 = vsel %vm2875_vm12, %v3189_v54, 0.0 }
 0x6cc   : > { %v3191_v14 = vpop.eup %3190  ;;  %2877 = vadd.xlane.f32.xlu0 %v2876_v52 }
 0x6cd   : > { %v2881_v32 = vsel %vm2875_vm12, %v3191_v14, 0.0  ;;  %v3193_v18 = vpop.eup %3192 }
 0x6ce   : > { %2882 = vadd.xlane.f32.xlu1 %v2881_v32  ;;  %v2887_v17 = vmul.f32 2.0, %v3193_v18 }
 0x6d0   : > { %2891 = vadd.xlane.f32.xlu0 %v2890_v40 }
 0x755   : > { %v2878_v16 = vpop.xlane.xlu0 %2877 }
 0x757   : > { %v2883_v60 = vpop.xlane.xlu1 %2882 }
 0x758   : > { %v2884_v55 = vadd.f32 %v2883_v60, %v2878_v16 }
 0x759   : > { %v2892_v19 = vpop.xlane.xlu0 %2891 }
 0x75a   : > { %v2888_v33 = vsub.f32 %v2884_v55, %v2887_v17  ;;  %v2893_v27 = vrot.slane %v2892_v19, 4 }
 0x75c   : > { %3194 = vlog2.f32 %v2888_v33  ;;  %v2894_v34 = vadd.f32 %v2893_v27, %v2892_v19 }
 0x75e   : > { %v2895_v26 = vrot.slane %v2894_v34, 2 }
 0x760   : > { %v2896_v56 = vadd.f32 %v2895_v26, %v2894_v34 }
 0x762   : > { %v2897_v57 = vrot.slane %v2896_v56, 1 }
 0x764   : > { %v2898_v59 = vadd.f32 %v2897_v57, %v2896_v56 }
 0x766   : > { %3116 = vpush %v2898_v59 }
 0x769   : > { %v3195_v41 = vpop.eup %3194 }
 0x76a   : > { %v2902_v43 = vmul.f32 0.6931472, %v3195_v41 }
 0x76c   : > { %v2903_v58 = vsel %vm2889_vm13, %v2902_v43, 0.0 }
 0x76d   : > { %2904 = vadd.xlane.f32.xlu1 %v2903_v58 }
 0x797   : > { %s3117_s22 = spop %3116 }
 0x798   : > { %s2900_s23 = ssub.f32 0.0, %s3117_s22 }
 0x7f6   : > { %v2905_v61 = vpop.xlane.xlu1 %2904 }
 0x7f7   : > { %v2906_v28 = vrot.slane %v2905_v61, 4 }
 0x7f9   : > { %v2907_v29 = vadd.f32 %v2906_v28, %v2905_v61 }
 0x7fb   : > { %v2908_v62 = vrot.slane %v2907_v29, 2 }
 0x7fd   : > { %v2909_v31 = vadd.f32 %v2908_v62, %v2907_v29 }
 0x7ff   : > { %v2910_v47 = vrot.slane %v2909_v31, 1 }
 0x801   : > { %v2911_v2 = vadd.f32 %v2910_v47, %v2909_v31 }
 0x803   : > { %3118 = vpush %v2911_v2 }
 0x834   : > { %s3119_s24 = spop %3118 }
 0x835   : > { %s2913_s25 = sadd.f32 %s3119_s24, %s2900_s23 }
 0x837   : > { %s2916_s26 = smul.f32 0.125, %s2913_s25 }
 0x839   : > { %v2917_v3 = vstv %s2916_s26 }
 0x83a   : > { %2919 = vst.msk [vmem:[#allocation3] sm:$0x1] %vm2918_vm14, %v2917_v3 }
 0x83b PF: > { %p3124_p7 = scmp.eq.s32.totalorder %s3269_s16, 2  ;;  %s3237_s27 = smov [#allocation3]  }
 0x83c   : > { %s2927_s28 = sshll.u32 %s3237_s27, 4  ;;  %s2928_s28 = int_to_ptr.vmem [resolvable:$true] %s2927_s28 }
 0x83d   : > { %s3196_s29 = scalar_lea.vmem %s2928_s28, 16  ;;  %s3202_s30 = scalar_lea.vmem %s2928_s28, 32 }
 0x83e   : > { %p3197_p8 = scmp.ne.s32.totalorder %s2928_s28, %s3196_s29  ;;  %p3203_p11 = scmp.lt.s32.totalorder %s2928_s28, %s2928_s28 }
 0x83f   : > { %p3204_p12 = scmp.lt.s32.totalorder %s3202_s30, %s3196_s29 }
 0x840   : > { %p3198_p9 = pnand %p3197_p8, %p3124_p7 }
 0x841   : > { %p3205_p13 = por %p3204_p12, %p3203_p11 }
 0x842   : > { %p3199_p10 = pneg %p3198_p9 }
 0x844   : > { %p3206_p0 = pnand %p3205_p13, %p3199_p10 }
 0x846   : > { %3209 = shalt.err (!%p3206_p0)
}
 0x847   : > { %3121 = dma.vmem_to_hbm [thread:$0]  (%p3124_p7), %s2928_s28, 16, %s4239_s4, [#allocation4]  }
 0x848   : > { %3225 = dma.done.wait (%p3124_p7), [#allocation4], 16  }
 0x849   : > { %3227 = vsyncadd (%p3124_p7), [#allocation4], 4294967280 }
 0x84a PF: > { %s15_s15 = sadd.s32 1, %s3230_s15  }
 0x84b   : > { %p12_p1 = scmp.ge.s32.totalorder %s15_s15, 5  }
 0x84d   :  { %14 = sbr.rel (!%p12_p1) target bundleno = 1 (0x1), region = 78 }
 0x852   :  { %2940 = vsyncpa [#allocation4], 1 }
 0x853   :  { %2942 = vsyncpa [#allocation4 + $0x1], 1 }

</bundles_post_ra>
